<compile_context>
chip_gen: v7x
topology: tpu7x:2x2x1
jax: 0.10.0
libtpu: 0.0.40
codegen_flags: <defaults>
</compile_context>

<pallas_src>
import functools

import jax
import jax.numpy as jnp
from jax.experimental import pallas as pl
from jax.experimental.pallas import tpu as pltpu


# ----------------------------------------------------------------------------
# Fused kernel: conv1 -> conv2 -> conv3 -> flatten -> fc1 -> (mu | logvar)
# ----------------------------------------------------------------------------
def _cnn_encoder_kernel(xpad_ref, w1_ref, b1_ref, w2_ref, b2_ref, w3_ref, b3_ref,
                        wfc1_ref, bfc1_ref, whead_ref, bhead_ref,
                        out_ref, buf1, buf2, flat, *, Bp, T):
    TBp = T * Bp
    bf16 = jnp.bfloat16
    f32 = jnp.float32

    def conv3x1(src_ref, w_ref, b_ref):
        # src_ref: ((T+2)*Bp, Cin) zero-padded activation, rows = t*Bp + b.
        # w_ref:   (3, Cin, Cout) bf16 taps.  b_ref: (1, Cout) f32.
        # Three shifted (T*Bp, Cin) @ (Cin, Cout) MXU matmuls cover the whole
        # batch; shifts are multiples of Bp=8 -> tile-aligned reads.
        acc = jnp.dot(src_ref[0:TBp, :].astype(bf16), w_ref[0],
                      preferred_element_type=f32)
        acc = acc + jnp.dot(src_ref[Bp:Bp + TBp, :].astype(bf16), w_ref[1],
                            preferred_element_type=f32)
        acc = acc + jnp.dot(src_ref[2 * Bp:2 * Bp + TBp, :].astype(bf16), w_ref[2],
                            preferred_element_type=f32)
        return jnp.maximum(acc + b_ref[...], 0.0)            # (T*Bp, Cout) f32

    c1 = buf1.shape[-1]
    c2 = buf2.shape[-1]
    zpad1 = jnp.zeros((Bp, c1), f32)
    zpad2 = jnp.zeros((Bp, c2), f32)

    # ---- conv1 (ReLU) -------------------------------------------------------
    a1 = conv3x1(xpad_ref, w1_ref, b1_ref)                   # (T*Bp, 32)
    buf1[0:Bp, :] = zpad1                                    # leading time pad
    buf1[Bp + TBp:2 * Bp + TBp, :] = zpad1                   # trailing time pad
    buf1[Bp:Bp + TBp, :] = a1

    # ---- conv2 (ReLU) -------------------------------------------------------
    a2 = conv3x1(buf1, w2_ref, b2_ref)                       # (T*Bp, 64)
    buf2[0:Bp, :] = zpad2
    buf2[Bp + TBp:2 * Bp + TBp, :] = zpad2
    buf2[Bp:Bp + TBp, :] = a2

    # ---- conv3 (ReLU) -> write straight into flattened (Bp, T*c3) layout ----
    a3 = conv3x1(buf2, w3_ref, b3_ref)                       # (T*Bp, 128)
    c3 = a3.shape[-1]
    for t in range(T):                                       # T static: aligned tile copies
        flat[:, t * c3:(t + 1) * c3] = a3[t * Bp:(t + 1) * Bp, :]

    # ---- fc1 (ReLU): ONE big-K matmul (Bp, T*c3) @ (T*c3, 256) ---------------
    h = jnp.dot(flat[...].astype(bf16), wfc1_ref[...],
                preferred_element_type=f32)
    h = jnp.maximum(h + bfc1_ref[...], 0.0)                  # (Bp, 256) f32

    # ---- fused, lane-padded mu|logvar head -> one unmasked (8,128) store -----
    out_ref[...] = (jnp.dot(h.astype(bf16), whead_ref[...],
                            preferred_element_type=f32)
                    + bhead_ref[...])


# ----------------------------------------------------------------------------
# One-time parameter repack (hoisted out of the per-call path)
# ----------------------------------------------------------------------------
def pack_params(params):
    """Repack PyTorch-layout parameters into kernel layout. Call ONCE."""
    c3 = params["conv3_w"].shape[0]
    hfc = params["fc1_w"].shape[0]
    L = params["fc_mu_w"].shape[0]
    T = params["fc1_w"].shape[1] // c3
    bf16 = jnp.bfloat16

    def tap(w):  # (Cout, Cin, 3) -> (3, Cin, Cout), bf16
        return jnp.transpose(w, (2, 1, 0)).astype(bf16)

    # fc1.weight is (256, c3*T) with column index c*T + t (torch channel-major
    # flatten).  Reorder to rows t*c3 + c so fc1 contracts the kernel's
    # (b, t*c3 + c) flattened conv3 output directly.
    wfc1 = (params["fc1_w"].reshape(hfc, c3, T).transpose(2, 1, 0)
            .reshape(T * c3, hfc).astype(bf16))

    # Fused mu/logvar head, zero-padded to a lane-dense (multiple-of-128) width.
    whead = jnp.concatenate([params["fc_mu_w"].T, params["fc_lv_w"].T], axis=1)  # (256, 2L)
    bhead = jnp.concatenate([params["fc_mu_b"], params["fc_lv_b"]])[None, :]     # (1, 2L)
    head_n = max(128, ((2 * L + 127) // 128) * 128)
    whead = jnp.pad(whead, ((0, 0), (0, head_n - 2 * L))).astype(bf16)
    bhead = jnp.pad(bhead, ((0, 0), (0, head_n - 2 * L))).astype(jnp.float32)

    return {
        "w1": tap(params["conv1_w"]), "b1": params["conv1_b"][None, :].astype(jnp.float32),
        "w2": tap(params["conv2_w"]), "b2": params["conv2_b"][None, :].astype(jnp.float32),
        "w3": tap(params["conv3_w"]), "b3": params["conv3_b"][None, :].astype(jnp.float32),
        "wfc1": wfc1, "bfc1": params["fc1_b"][None, :].astype(jnp.float32),
        "whead": whead, "bhead": bhead,
    }


# ----------------------------------------------------------------------------
# Jitted forward: tiny x repack + one pallas_call
# ----------------------------------------------------------------------------
@functools.partial(jax.jit, static_argnames=("latent_dim",))
def cnn_encoder_forward(x, packed, latent_dim):
    """x: (B, T, n_nucleotides) float32, batch_first like the torch module."""
    B, T, Cin = x.shape
    L = latent_dim
    c1 = packed["w1"].shape[2]
    c2 = packed["w2"].shape[2]
    c3 = packed["w3"].shape[2]
    hfc = packed["wfc1"].shape[1]
    head_n = packed["whead"].shape[1]

    # Pad batch to a full sublane tile and time by one zero step at each end;
    # time-major / batch-minor rows: row r = t*Bp + b.
    Bp = ((B + 7) // 8) * 8
    x_tm = jnp.transpose(x, (1, 0, 2))                             # (T, B, Cin)
    x_tm = jnp.pad(x_tm, ((1, 1), (0, Bp - B), (0, 0)))            # (T+2, Bp, Cin)
    xpad = x_tm.reshape((T + 2) * Bp, Cin)                         # f32

    rows_pad = (T + 2) * Bp
    kernel = functools.partial(_cnn_encoder_kernel, Bp=Bp, T=T)

    def full(shape):
        nd = len(shape)
        return pl.BlockSpec(shape, lambda i, nd=nd: (0,) * nd)

    out = pl.pallas_call(
        kernel,
        out_shape=jax.ShapeDtypeStruct((Bp, head_n), jnp.float32),
        grid=(1,),
        in_specs=[
            full((rows_pad, Cin)),
            full((3, Cin, c1)), full((1, c1)),
            full((3, c1, c2)), full((1, c2)),
            full((3, c2, c3)), full((1, c3)),
            full((T * c3, hfc)), full((1, hfc)),
            full((hfc, head_n)), full((1, head_n)),
        ],
        out_specs=full((Bp, head_n)),
        scratch_shapes=[
            pltpu.VMEM((rows_pad, c1), jnp.float32),
            pltpu.VMEM((rows_pad, c2), jnp.float32),
            pltpu.VMEM((Bp, T * c3), jnp.float32),
        ],
        compiler_params=pltpu.CompilerParams(
            dimension_semantics=("arbitrary",),
            vmem_limit_bytes=32 * 1024 * 1024),
    )(xpad, packed["w1"], packed["b1"], packed["w2"], packed["b2"],
      packed["w3"], packed["b3"], packed["wfc1"], packed["bfc1"],
      packed["whead"], packed["bhead"])

    return out[:B, :L], out[:B, L:2 * L]


# ----------------------------------------------------------------------------
# Parameters (PyTorch-default-like uniform init) and pure-JAX reference
# ----------------------------------------------------------------------------
def init_params(key, seq_length=22, n_nucleotides=5, latent_dim=32):
    def uni(k, shape, bound):
        return jax.random.uniform(k, shape, jnp.float32, -bound, bound)

    keys = jax.random.split(key, 12)
    p = {}
    ki = 0
    for name, cin, cout in (("conv1", n_nucleotides, 32), ("conv2", 32, 64),
                            ("conv3", 64, 128)):
        bound = 1.0 / (cin * 3) ** 0.5
        p[f"{name}_w"] = uni(keys[ki], (cout, cin, 3), bound); ki += 1
        p[f"{name}_b"] = uni(keys[ki], (cout,), bound); ki += 1
    feat = 128 * seq_length
    bfc = 1.0 / feat ** 0.5
    p["fc1_w"] = uni(keys[ki], (256, feat), bfc); ki += 1
    p["fc1_b"] = uni(keys[ki], (256,), bfc); ki += 1
    bh = 1.0 / 256 ** 0.5
    p["fc_mu_w"] = uni(keys[ki], (latent_dim, 256), bh); ki += 1
    p["fc_mu_b"] = uni(keys[ki], (latent_dim,), bh); ki += 1
    p["fc_lv_w"] = uni(keys[ki], (latent_dim, 256), bh); ki += 1
    p["fc_lv_b"] = uni(keys[ki], (latent_dim,), bh); ki += 1
    return p


def reference_forward(x, params):
    """Pure-JAX mirror of the PyTorch CNNEncoder forward (f32, HIGHEST)."""
    h = jnp.transpose(x, (0, 2, 1))                          # (B, C, T)

    def conv(h, w, b):
        y = jax.lax.conv_general_dilated(
            h, w, window_strides=(1,), padding=((1, 1),),
            dimension_numbers=("NCH", "OIH", "NCH"),
            precision=jax.lax.Precision.HIGHEST)
        return jax.nn.relu(y + b[None, :, None])

    h = conv(h, params["conv1_w"], params["conv1_b"])
    h = conv(h, params["conv2_w"], params["conv2_b"])
    h = conv(h, params["conv3_w"], params["conv3_b"])
    flat = h.reshape(h.shape[0], -1)                         # (B, 128*T), c-major
    hp = jax.lax.Precision.HIGHEST
    hfc = jax.nn.relu(jnp.dot(flat, params["fc1_w"].T, precision=hp) + params["fc1_b"])
    mu = jnp.dot(hfc, params["fc_mu_w"].T, precision=hp) + params["fc_mu_b"]
    logvar = jnp.dot(hfc, params["fc_lv_w"].T, precision=hp) + params["fc_lv_b"]
    return mu, logvar


if __name__ == "__main__":
    seq_length, n_nucleotides, latent_dim, batch = 22, 5, 32, 2

    key = jax.random.PRNGKey(0)
    k_params, k_x = jax.random.split(key)
    params = init_params(k_params, seq_length, n_nucleotides, latent_dim)
    x = jax.random.uniform(k_x, (batch, seq_length, n_nucleotides), jnp.float32)

    packed = pack_params(params)          # one-time weight repack (hoisted)

    mu, logvar = cnn_encoder_forward(x, packed, latent_dim=latent_dim)
    jax.block_until_ready((mu, logvar))

    assert mu.shape == (batch, latent_dim)
    assert logvar.shape == (batch, latent_dim)

    mu_ref, lv_ref = reference_forward(x, params)
    # bf16 MXU operands with f32 accumulation: comfortably within 2e-2.
    assert jnp.allclose(mu, mu_ref, atol=2e-2, rtol=2e-2)
    assert jnp.allclose(logvar, lv_ref, atol=2e-2, rtol=2e-2)

    print("KERNEL_OK")
</pallas_src>

<mosaic_0001>
module attributes {stable_mosaic.version = 11 : i64} {
  func.func @_cnn_encoder_kernel(%arg0: i32, %arg1: memref<192x5xf32, #tpu.memory_space<vmem>>, %arg2: memref<3x5x32xbf16, #tpu.memory_space<vmem>>, %arg3: memref<1x32xf32, #tpu.memory_space<vmem>>, %arg4: memref<3x32x64xbf16, #tpu.memory_space<vmem>>, %arg5: memref<1x64xf32, #tpu.memory_space<vmem>>, %arg6: memref<3x64x128xbf16, #tpu.memory_space<vmem>>, %arg7: memref<1x128xf32, #tpu.memory_space<vmem>>, %arg8: memref<2816x256xbf16, #tpu.memory_space<vmem>>, %arg9: memref<1x256xf32, #tpu.memory_space<vmem>>, %arg10: memref<256x128xbf16, #tpu.memory_space<vmem>>, %arg11: memref<1x128xf32, #tpu.memory_space<vmem>>, %arg12: memref<8x128xf32, #tpu.memory_space<vmem>>, %arg13: memref<192x32xf32, #tpu.memory_space<vmem>>, %arg14: memref<192x64xf32, #tpu.memory_space<vmem>>, %arg15: memref<8x2816xf32, #tpu.memory_space<vmem>>) attributes {dimension_semantics = [#tpu.dimension_semantics<arbitrary>], iteration_bounds = array<i64: 1>, scalar_prefetch = 0 : i64, scratch_operands = 3 : i64, tpu.core_type = #tpu.core_type<tc>, window_params = [{pipeline_mode = #tpu.pipeline_mode<synchronous>, transform_indices = @transform_0, window_bounds = array<i64: 192, 5>}, {pipeline_mode = #tpu.pipeline_mode<synchronous>, transform_indices = @transform_1, window_bounds = array<i64: 3, 5, 32>}, {pipeline_mode = #tpu.pipeline_mode<synchronous>, transform_indices = @transform_2, window_bounds = array<i64: 1, 32>}, {pipeline_mode = #tpu.pipeline_mode<synchronous>, transform_indices = @transform_3, window_bounds = array<i64: 3, 32, 64>}, {pipeline_mode = #tpu.pipeline_mode<synchronous>, transform_indices = @transform_4, window_bounds = array<i64: 1, 64>}, {pipeline_mode = #tpu.pipeline_mode<synchronous>, transform_indices = @transform_5, window_bounds = array<i64: 3, 64, 128>}, {pipeline_mode = #tpu.pipeline_mode<synchronous>, transform_indices = @transform_6, window_bounds = array<i64: 1, 128>}, {pipeline_mode = #tpu.pipeline_mode<synchronous>, transform_indices = @transform_7, window_bounds = array<i64: 2816, 256>}, {pipeline_mode = #tpu.pipeline_mode<synchronous>, transform_indices = @transform_8, window_bounds = array<i64: 1, 256>}, {pipeline_mode = #tpu.pipeline_mode<synchronous>, transform_indices = @transform_9, window_bounds = array<i64: 256, 128>}, {pipeline_mode = #tpu.pipeline_mode<synchronous>, transform_indices = @transform_10, window_bounds = array<i64: 1, 128>}, {pipeline_mode = #tpu.pipeline_mode<synchronous>, transform_indices = @transform_11, window_bounds = array<i64: 8, 128>}]} {
    %cst = arith.constant 0.000000e+00 : f32
    %0 = vector.broadcast %cst : f32 to vector<8x32xf32>
    %cst_0 = arith.constant 0.000000e+00 : f32
    %1 = vector.broadcast %cst_0 : f32 to vector<8x64xf32>
    %c0 = arith.constant 0 : index
    %c0_1 = arith.constant 0 : index
    %2 = vector.load %arg1[%c0, %c0_1] : memref<192x5xf32, #tpu.memory_space<vmem>>, vector<176x5xf32>
    %3 = arith.truncf %2 : vector<176x5xf32> to vector<176x5xbf16>
    %c0_2 = arith.constant 0 : index
    %c0_3 = arith.constant 0 : index
    %c0_4 = arith.constant 0 : index
    %4 = vector.load %arg2[%c0_2, %c0_3, %c0_4] : memref<3x5x32xbf16, #tpu.memory_space<vmem>>, vector<1x5x32xbf16>
    %5 = vector.shape_cast %4 : vector<1x5x32xbf16> to vector<5x32xbf16>
    %cst_5 = arith.constant dense<0.000000e+00> : vector<176x32xf32>
    %6 = tpu.matmul %3, %5, %cst_5 {dimension_numbers = #tpu.dot_dimension_numbers<[1], [0], [0], [1], [0, 0, 1, 1], [], []>} : vector<176x5xbf16>, vector<5x32xbf16>, vector<176x32xf32> -> vector<176x32xf32>
    %c8 = arith.constant 8 : index
    %c0_6 = arith.constant 0 : index
    %7 = vector.load %arg1[%c8, %c0_6] : memref<192x5xf32, #tpu.memory_space<vmem>>, vector<176x5xf32>
    %8 = arith.truncf %7 : vector<176x5xf32> to vector<176x5xbf16>
    %c1 = arith.constant 1 : index
    %c0_7 = arith.constant 0 : index
    %c0_8 = arith.constant 0 : index
    %9 = vector.load %arg2[%c1, %c0_7, %c0_8] : memref<3x5x32xbf16, #tpu.memory_space<vmem>>, vector<1x5x32xbf16>
    %10 = vector.shape_cast %9 : vector<1x5x32xbf16> to vector<5x32xbf16>
    %cst_9 = arith.constant dense<0.000000e+00> : vector<176x32xf32>
    %11 = tpu.matmul %8, %10, %cst_9 {dimension_numbers = #tpu.dot_dimension_numbers<[1], [0], [0], [1], [0, 0, 1, 1], [], []>} : vector<176x5xbf16>, vector<5x32xbf16>, vector<176x32xf32> -> vector<176x32xf32>
    %12 = arith.addf %6, %11 : vector<176x32xf32>
    %c16 = arith.constant 16 : index
    %c0_10 = arith.constant 0 : index
    %13 = vector.load %arg1[%c16, %c0_10] : memref<192x5xf32, #tpu.memory_space<vmem>>, vector<176x5xf32>
    %14 = arith.truncf %13 : vector<176x5xf32> to vector<176x5xbf16>
    %c2 = arith.constant 2 : index
    %c0_11 = arith.constant 0 : index
    %c0_12 = arith.constant 0 : index
    %15 = vector.load %arg2[%c2, %c0_11, %c0_12] : memref<3x5x32xbf16, #tpu.memory_space<vmem>>, vector<1x5x32xbf16>
    %16 = vector.shape_cast %15 : vector<1x5x32xbf16> to vector<5x32xbf16>
    %cst_13 = arith.constant dense<0.000000e+00> : vector<176x32xf32>
    %17 = tpu.matmul %14, %16, %cst_13 {dimension_numbers = #tpu.dot_dimension_numbers<[1], [0], [0], [1], [0, 0, 1, 1], [], []>} : vector<176x5xbf16>, vector<5x32xbf16>, vector<176x32xf32> -> vector<176x32xf32>
    %18 = arith.addf %12, %17 : vector<176x32xf32>
    %c0_14 = arith.constant 0 : index
    %c0_15 = arith.constant 0 : index
    %19 = vector.load %arg3[%c0_14, %c0_15] : memref<1x32xf32, #tpu.memory_space<vmem>>, vector<1x32xf32>
    %20 = vector.broadcast %19 : vector<1x32xf32> to vector<176x32xf32>
    %21 = arith.addf %18, %20 : vector<176x32xf32>
    %cst_16 = arith.constant 0.000000e+00 : f32
    %22 = vector.broadcast %cst_16 : f32 to vector<176x32xf32>
    %23 = arith.maximumf %21, %22 : vector<176x32xf32>
    %c0_17 = arith.constant 0 : index
    %c0_18 = arith.constant 0 : index
    %24 = vector.load %arg13[%c0_17, %c0_18] : memref<192x32xf32, #tpu.memory_space<vmem>>, vector<8x32xf32>
    tpu.vector_store %arg13[%c0_17, %c0_18], %0 {strides = array<i32>} : memref<192x32xf32, #tpu.memory_space<vmem>>, vector<8x32xf32>,
    %c184 = arith.constant 184 : index
    %c0_19 = arith.constant 0 : index
    %25 = vector.load %arg13[%c184, %c0_19] : memref<192x32xf32, #tpu.memory_space<vmem>>, vector<8x32xf32>
    tpu.vector_store %arg13[%c184, %c0_19], %0 {strides = array<i32>} : memref<192x32xf32, #tpu.memory_space<vmem>>, vector<8x32xf32>,
    %c8_20 = arith.constant 8 : index
    %c0_21 = arith.constant 0 : index
    %26 = vector.load %arg13[%c8_20, %c0_21] : memref<192x32xf32, #tpu.memory_space<vmem>>, vector<176x32xf32>
    tpu.vector_store %arg13[%c8_20, %c0_21], %23 {strides = array<i32>} : memref<192x32xf32, #tpu.memory_space<vmem>>, vector<176x32xf32>,
    %c0_22 = arith.constant 0 : index
    %c0_23 = arith.constant 0 : index
    %27 = vector.load %arg13[%c0_22, %c0_23] : memref<192x32xf32, #tpu.memory_space<vmem>>, vector<176x32xf32>
    %28 = arith.truncf %27 : vector<176x32xf32> to vector<176x32xbf16>
    %c0_24 = arith.constant 0 : index
    %c0_25 = arith.constant 0 : index
    %c0_26 = arith.constant 0 : index
    %29 = vector.load %arg4[%c0_24, %c0_25, %c0_26] : memref<3x32x64xbf16, #tpu.memory_space<vmem>>, vector<1x32x64xbf16>
    %30 = vector.shape_cast %29 : vector<1x32x64xbf16> to vector<32x64xbf16>
    %cst_27 = arith.constant dense<0.000000e+00> : vector<176x64xf32>
    %31 = tpu.matmul %28, %30, %cst_27 {dimension_numbers = #tpu.dot_dimension_numbers<[1], [0], [0], [1], [0, 0, 1, 1], [], []>} : vector<176x32xbf16>, vector<32x64xbf16>, vector<176x64xf32> -> vector<176x64xf32>
    %c8_28 = arith.constant 8 : index
    %c0_29 = arith.constant 0 : index
    %32 = vector.load %arg13[%c8_28, %c0_29] : memref<192x32xf32, #tpu.memory_space<vmem>>, vector<176x32xf32>
    %33 = arith.truncf %32 : vector<176x32xf32> to vector<176x32xbf16>
    %c1_30 = arith.constant 1 : index
    %c0_31 = arith.constant 0 : index
    %c0_32 = arith.constant 0 : index
    %34 = vector.load %arg4[%c1_30, %c0_31, %c0_32] : memref<3x32x64xbf16, #tpu.memory_space<vmem>>, vector<1x32x64xbf16>
    %35 = vector.shape_cast %34 : vector<1x32x64xbf16> to vector<32x64xbf16>
    %cst_33 = arith.constant dense<0.000000e+00> : vector<176x64xf32>
    %36 = tpu.matmul %33, %35, %cst_33 {dimension_numbers = #tpu.dot_dimension_numbers<[1], [0], [0], [1], [0, 0, 1, 1], [], []>} : vector<176x32xbf16>, vector<32x64xbf16>, vector<176x64xf32> -> vector<176x64xf32>
    %37 = arith.addf %31, %36 : vector<176x64xf32>
    %c16_34 = arith.constant 16 : index
    %c0_35 = arith.constant 0 : index
    %38 = vector.load %arg13[%c16_34, %c0_35] : memref<192x32xf32, #tpu.memory_space<vmem>>, vector<176x32xf32>
    %39 = arith.truncf %38 : vector<176x32xf32> to vector<176x32xbf16>
    %c2_36 = arith.constant 2 : index
    %c0_37 = arith.constant 0 : index
    %c0_38 = arith.constant 0 : index
    %40 = vector.load %arg4[%c2_36, %c0_37, %c0_38] : memref<3x32x64xbf16, #tpu.memory_space<vmem>>, vector<1x32x64xbf16>
    %41 = vector.shape_cast %40 : vector<1x32x64xbf16> to vector<32x64xbf16>
    %cst_39 = arith.constant dense<0.000000e+00> : vector<176x64xf32>
    %42 = tpu.matmul %39, %41, %cst_39 {dimension_numbers = #tpu.dot_dimension_numbers<[1], [0], [0], [1], [0, 0, 1, 1], [], []>} : vector<176x32xbf16>, vector<32x64xbf16>, vector<176x64xf32> -> vector<176x64xf32>
    %43 = arith.addf %37, %42 : vector<176x64xf32>
    %c0_40 = arith.constant 0 : index
    %c0_41 = arith.constant 0 : index
    %44 = vector.load %arg5[%c0_40, %c0_41] : memref<1x64xf32, #tpu.memory_space<vmem>>, vector<1x64xf32>
    %45 = vector.broadcast %44 : vector<1x64xf32> to vector<176x64xf32>
    %46 = arith.addf %43, %45 : vector<176x64xf32>
    %cst_42 = arith.constant 0.000000e+00 : f32
    %47 = vector.broadcast %cst_42 : f32 to vector<176x64xf32>
    %48 = arith.maximumf %46, %47 : vector<176x64xf32>
    %c0_43 = arith.constant 0 : index
    %c0_44 = arith.constant 0 : index
    %49 = vector.load %arg14[%c0_43, %c0_44] : memref<192x64xf32, #tpu.memory_space<vmem>>, vector<8x64xf32>
    tpu.vector_store %arg14[%c0_43, %c0_44], %1 {strides = array<i32>} : memref<192x64xf32, #tpu.memory_space<vmem>>, vector<8x64xf32>,
    %c184_45 = arith.constant 184 : index
    %c0_46 = arith.constant 0 : index
    %50 = vector.load %arg14[%c184_45, %c0_46] : memref<192x64xf32, #tpu.memory_space<vmem>>, vector<8x64xf32>
    tpu.vector_store %arg14[%c184_45, %c0_46], %1 {strides = array<i32>} : memref<192x64xf32, #tpu.memory_space<vmem>>, vector<8x64xf32>,
    %c8_47 = arith.constant 8 : index
    %c0_48 = arith.constant 0 : index
    %51 = vector.load %arg14[%c8_47, %c0_48] : memref<192x64xf32, #tpu.memory_space<vmem>>, vector<176x64xf32>
    tpu.vector_store %arg14[%c8_47, %c0_48], %48 {strides = array<i32>} : memref<192x64xf32, #tpu.memory_space<vmem>>, vector<176x64xf32>,
    %c0_49 = arith.constant 0 : index
    %c0_50 = arith.constant 0 : index
    %52 = vector.load %arg14[%c0_49, %c0_50] : memref<192x64xf32, #tpu.memory_space<vmem>>, vector<176x64xf32>
    %53 = arith.truncf %52 : vector<176x64xf32> to vector<176x64xbf16>
    %c0_51 = arith.constant 0 : index
    %c0_52 = arith.constant 0 : index
    %c0_53 = arith.constant 0 : index
    %54 = vector.load %arg6[%c0_51, %c0_52, %c0_53] : memref<3x64x128xbf16, #tpu.memory_space<vmem>>, vector<1x64x128xbf16>
    %55 = vector.shape_cast %54 : vector<1x64x128xbf16> to vector<64x128xbf16>
    %cst_54 = arith.constant dense<0.000000e+00> : vector<176x128xf32>
    %56 = tpu.matmul %53, %55, %cst_54 {dimension_numbers = #tpu.dot_dimension_numbers<[1], [0], [0], [1], [0, 0, 1, 1], [], []>} : vector<176x64xbf16>, vector<64x128xbf16>, vector<176x128xf32> -> vector<176x128xf32>
    %c8_55 = arith.constant 8 : index
    %c0_56 = arith.constant 0 : index
    %57 = vector.load %arg14[%c8_55, %c0_56] : memref<192x64xf32, #tpu.memory_space<vmem>>, vector<176x64xf32>
    %58 = arith.truncf %57 : vector<176x64xf32> to vector<176x64xbf16>
    %c1_57 = arith.constant 1 : index
    %c0_58 = arith.constant 0 : index
    %c0_59 = arith.constant 0 : index
    %59 = vector.load %arg6[%c1_57, %c0_58, %c0_59] : memref<3x64x128xbf16, #tpu.memory_space<vmem>>, vector<1x64x128xbf16>
    %60 = vector.shape_cast %59 : vector<1x64x128xbf16> to vector<64x128xbf16>
    %cst_60 = arith.constant dense<0.000000e+00> : vector<176x128xf32>
    %61 = tpu.matmul %58, %60, %cst_60 {dimension_numbers = #tpu.dot_dimension_numbers<[1], [0], [0], [1], [0, 0, 1, 1], [], []>} : vector<176x64xbf16>, vector<64x128xbf16>, vector<176x128xf32> -> vector<176x128xf32>
    %62 = arith.addf %56, %61 : vector<176x128xf32>
    %c16_61 = arith.constant 16 : index
    %c0_62 = arith.constant 0 : index
    %63 = vector.load %arg14[%c16_61, %c0_62] : memref<192x64xf32, #tpu.memory_space<vmem>>, vector<176x64xf32>
    %64 = arith.truncf %63 : vector<176x64xf32> to vector<176x64xbf16>
    %c2_63 = arith.constant 2 : index
    %c0_64 = arith.constant 0 : index
    %c0_65 = arith.constant 0 : index
    %65 = vector.load %arg6[%c2_63, %c0_64, %c0_65] : memref<3x64x128xbf16, #tpu.memory_space<vmem>>, vector<1x64x128xbf16>
    %66 = vector.shape_cast %65 : vector<1x64x128xbf16> to vector<64x128xbf16>
    %cst_66 = arith.constant dense<0.000000e+00> : vector<176x128xf32>
    %67 = tpu.matmul %64, %66, %cst_66 {dimension_numbers = #tpu.dot_dimension_numbers<[1], [0], [0], [1], [0, 0, 1, 1], [], []>} : vector<176x64xbf16>, vector<64x128xbf16>, vector<176x128xf32> -> vector<176x128xf32>
    %68 = arith.addf %62, %67 : vector<176x128xf32>
    %c0_67 = arith.constant 0 : index
    %c0_68 = arith.constant 0 : index
    %69 = vector.load %arg7[%c0_67, %c0_68] : memref<1x128xf32, #tpu.memory_space<vmem>>, vector<1x128xf32>
    %70 = vector.broadcast %69 : vector<1x128xf32> to vector<176x128xf32>
    %71 = arith.addf %68, %70 : vector<176x128xf32>
    %cst_69 = arith.constant 0.000000e+00 : f32
    %72 = vector.broadcast %cst_69 : f32 to vector<176x128xf32>
    %73 = arith.maximumf %71, %72 : vector<176x128xf32>
    %74 = vector.extract_strided_slice %73 {offsets = [0, 0], sizes = [8, 128], strides = [1, 1]} : vector<176x128xf32> to vector<8x128xf32>
    %c0_70 = arith.constant 0 : index
    %c0_71 = arith.constant 0 : index
    %75 = vector.load %arg15[%c0_70, %c0_71] : memref<8x2816xf32, #tpu.memory_space<vmem>>, vector<8x128xf32>
    tpu.vector_store %arg15[%c0_70, %c0_71], %74 {strides = array<i32>} : memref<8x2816xf32, #tpu.memory_space<vmem>>, vector<8x128xf32>,
    %76 = vector.extract_strided_slice %73 {offsets = [8, 0], sizes = [8, 128], strides = [1, 1]} : vector<176x128xf32> to vector<8x128xf32>
    %c0_72 = arith.constant 0 : index
    %c128 = arith.constant 128 : index
    %77 = vector.load %arg15[%c0_72, %c128] : memref<8x2816xf32, #tpu.memory_space<vmem>>, vector<8x128xf32>
    tpu.vector_store %arg15[%c0_72, %c128], %76 {strides = array<i32>} : memref<8x2816xf32, #tpu.memory_space<vmem>>, vector<8x128xf32>,
    %78 = vector.extract_strided_slice %73 {offsets = [16, 0], sizes = [8, 128], strides = [1, 1]} : vector<176x128xf32> to vector<8x128xf32>
    %c0_73 = arith.constant 0 : index
    %c256 = arith.constant 256 : index
    %79 = vector.load %arg15[%c0_73, %c256] : memref<8x2816xf32, #tpu.memory_space<vmem>>, vector<8x128xf32>
    tpu.vector_store %arg15[%c0_73, %c256], %78 {strides = array<i32>} : memref<8x2816xf32, #tpu.memory_space<vmem>>, vector<8x128xf32>,
    %80 = vector.extract_strided_slice %73 {offsets = [24, 0], sizes = [8, 128], strides = [1, 1]} : vector<176x128xf32> to vector<8x128xf32>
    %c0_74 = arith.constant 0 : index
    %c384 = arith.constant 384 : index
    %81 = vector.load %arg15[%c0_74, %c384] : memref<8x2816xf32, #tpu.memory_space<vmem>>, vector<8x128xf32>
    tpu.vector_store %arg15[%c0_74, %c384], %80 {strides = array<i32>} : memref<8x2816xf32, #tpu.memory_space<vmem>>, vector<8x128xf32>,
    %82 = vector.extract_strided_slice %73 {offsets = [32, 0], sizes = [8, 128], strides = [1, 1]} : vector<176x128xf32> to vector<8x128xf32>
    %c0_75 = arith.constant 0 : index
    %c512 = arith.constant 512 : index
    %83 = vector.load %arg15[%c0_75, %c512] : memref<8x2816xf32, #tpu.memory_space<vmem>>, vector<8x128xf32>
    tpu.vector_store %arg15[%c0_75, %c512], %82 {strides = array<i32>} : memref<8x2816xf32, #tpu.memory_space<vmem>>, vector<8x128xf32>,
    %84 = vector.extract_strided_slice %73 {offsets = [40, 0], sizes = [8, 128], strides = [1, 1]} : vector<176x128xf32> to vector<8x128xf32>
    %c0_76 = arith.constant 0 : index
    %c640 = arith.constant 640 : index
    %85 = vector.load %arg15[%c0_76, %c640] : memref<8x2816xf32, #tpu.memory_space<vmem>>, vector<8x128xf32>
    tpu.vector_store %arg15[%c0_76, %c640], %84 {strides = array<i32>} : memref<8x2816xf32, #tpu.memory_space<vmem>>, vector<8x128xf32>,
    %86 = vector.extract_strided_slice %73 {offsets = [48, 0], sizes = [8, 128], strides = [1, 1]} : vector<176x128xf32> to vector<8x128xf32>
    %c0_77 = arith.constant 0 : index
    %c768 = arith.constant 768 : index
    %87 = vector.load %arg15[%c0_77, %c768] : memref<8x2816xf32, #tpu.memory_space<vmem>>, vector<8x128xf32>
    tpu.vector_store %arg15[%c0_77, %c768], %86 {strides = array<i32>} : memref<8x2816xf32, #tpu.memory_space<vmem>>, vector<8x128xf32>,
    %88 = vector.extract_strided_slice %73 {offsets = [56, 0], sizes = [8, 128], strides = [1, 1]} : vector<176x128xf32> to vector<8x128xf32>
    %c0_78 = arith.constant 0 : index
    %c896 = arith.constant 896 : index
    %89 = vector.load %arg15[%c0_78, %c896] : memref<8x2816xf32, #tpu.memory_space<vmem>>, vector<8x128xf32>
    tpu.vector_store %arg15[%c0_78, %c896], %88 {strides = array<i32>} : memref<8x2816xf32, #tpu.memory_space<vmem>>, vector<8x128xf32>,
    %90 = vector.extract_strided_slice %73 {offsets = [64, 0], sizes = [8, 128], strides = [1, 1]} : vector<176x128xf32> to vector<8x128xf32>
    %c0_79 = arith.constant 0 : index
    %c1024 = arith.constant 1024 : index
    %91 = vector.load %arg15[%c0_79, %c1024] : memref<8x2816xf32, #tpu.memory_space<vmem>>, vector<8x128xf32>
    tpu.vector_store %arg15[%c0_79, %c1024], %90 {strides = array<i32>} : memref<8x2816xf32, #tpu.memory_space<vmem>>, vector<8x128xf32>,
    %92 = vector.extract_strided_slice %73 {offsets = [72, 0], sizes = [8, 128], strides = [1, 1]} : vector<176x128xf32> to vector<8x128xf32>
    %c0_80 = arith.constant 0 : index
    %c1152 = arith.constant 1152 : index
    %93 = vector.load %arg15[%c0_80, %c1152] : memref<8x2816xf32, #tpu.memory_space<vmem>>, vector<8x128xf32>
    tpu.vector_store %arg15[%c0_80, %c1152], %92 {strides = array<i32>} : memref<8x2816xf32, #tpu.memory_space<vmem>>, vector<8x128xf32>,
    %94 = vector.extract_strided_slice %73 {offsets = [80, 0], sizes = [8, 128], strides = [1, 1]} : vector<176x128xf32> to vector<8x128xf32>
    %c0_81 = arith.constant 0 : index
    %c1280 = arith.constant 1280 : index
    %95 = vector.load %arg15[%c0_81, %c1280] : memref<8x2816xf32, #tpu.memory_space<vmem>>, vector<8x128xf32>
    tpu.vector_store %arg15[%c0_81, %c1280], %94 {strides = array<i32>} : memref<8x2816xf32, #tpu.memory_space<vmem>>, vector<8x128xf32>,
    %96 = vector.extract_strided_slice %73 {offsets = [88, 0], sizes = [8, 128], strides = [1, 1]} : vector<176x128xf32> to vector<8x128xf32>
    %c0_82 = arith.constant 0 : index
    %c1408 = arith.constant 1408 : index
    %97 = vector.load %arg15[%c0_82, %c1408] : memref<8x2816xf32, #tpu.memory_space<vmem>>, vector<8x128xf32>
    tpu.vector_store %arg15[%c0_82, %c1408], %96 {strides = array<i32>} : memref<8x2816xf32, #tpu.memory_space<vmem>>, vector<8x128xf32>,
    %98 = vector.extract_strided_slice %73 {offsets = [96, 0], sizes = [8, 128], strides = [1, 1]} : vector<176x128xf32> to vector<8x128xf32>
    %c0_83 = arith.constant 0 : index
    %c1536 = arith.constant 1536 : index
    %99 = vector.load %arg15[%c0_83, %c1536] : memref<8x2816xf32, #tpu.memory_space<vmem>>, vector<8x128xf32>
    tpu.vector_store %arg15[%c0_83, %c1536], %98 {strides = array<i32>} : memref<8x2816xf32, #tpu.memory_space<vmem>>, vector<8x128xf32>,
    %100 = vector.extract_strided_slice %73 {offsets = [104, 0], sizes = [8, 128], strides = [1, 1]} : vector<176x128xf32> to vector<8x128xf32>
    %c0_84 = arith.constant 0 : index
    %c1664 = arith.constant 1664 : index
    %101 = vector.load %arg15[%c0_84, %c1664] : memref<8x2816xf32, #tpu.memory_space<vmem>>, vector<8x128xf32>
    tpu.vector_store %arg15[%c0_84, %c1664], %100 {strides = array<i32>} : memref<8x2816xf32, #tpu.memory_space<vmem>>, vector<8x128xf32>,
    %102 = vector.extract_strided_slice %73 {offsets = [112, 0], sizes = [8, 128], strides = [1, 1]} : vector<176x128xf32> to vector<8x128xf32>
    %c0_85 = arith.constant 0 : index
    %c1792 = arith.constant 1792 : index
    %103 = vector.load %arg15[%c0_85, %c1792] : memref<8x2816xf32, #tpu.memory_space<vmem>>, vector<8x128xf32>
    tpu.vector_store %arg15[%c0_85, %c1792], %102 {strides = array<i32>} : memref<8x2816xf32, #tpu.memory_space<vmem>>, vector<8x128xf32>,
    %104 = vector.extract_strided_slice %73 {offsets = [120, 0], sizes = [8, 128], strides = [1, 1]} : vector<176x128xf32> to vector<8x128xf32>
    %c0_86 = arith.constant 0 : index
    %c1920 = arith.constant 1920 : index
    %105 = vector.load %arg15[%c0_86, %c1920] : memref<8x2816xf32, #tpu.memory_space<vmem>>, vector<8x128xf32>
    tpu.vector_store %arg15[%c0_86, %c1920], %104 {strides = array<i32>} : memref<8x2816xf32, #tpu.memory_space<vmem>>, vector<8x128xf32>,
    %106 = vector.extract_strided_slice %73 {offsets = [128, 0], sizes = [8, 128], strides = [1, 1]} : vector<176x128xf32> to vector<8x128xf32>
    %c0_87 = arith.constant 0 : index
    %c2048 = arith.constant 2048 : index
    %107 = vector.load %arg15[%c0_87, %c2048] : memref<8x2816xf32, #tpu.memory_space<vmem>>, vector<8x128xf32>
    tpu.vector_store %arg15[%c0_87, %c2048], %106 {strides = array<i32>} : memref<8x2816xf32, #tpu.memory_space<vmem>>, vector<8x128xf32>,
    %108 = vector.extract_strided_slice %73 {offsets = [136, 0], sizes = [8, 128], strides = [1, 1]} : vector<176x128xf32> to vector<8x128xf32>
    %c0_88 = arith.constant 0 : index
    %c2176 = arith.constant 2176 : index
    %109 = vector.load %arg15[%c0_88, %c2176] : memref<8x2816xf32, #tpu.memory_space<vmem>>, vector<8x128xf32>
    tpu.vector_store %arg15[%c0_88, %c2176], %108 {strides = array<i32>} : memref<8x2816xf32, #tpu.memory_space<vmem>>, vector<8x128xf32>,
    %110 = vector.extract_strided_slice %73 {offsets = [144, 0], sizes = [8, 128], strides = [1, 1]} : vector<176x128xf32> to vector<8x128xf32>
    %c0_89 = arith.constant 0 : index
    %c2304 = arith.constant 2304 : index
    %111 = vector.load %arg15[%c0_89, %c2304] : memref<8x2816xf32, #tpu.memory_space<vmem>>, vector<8x128xf32>
    tpu.vector_store %arg15[%c0_89, %c2304], %110 {strides = array<i32>} : memref<8x2816xf32, #tpu.memory_space<vmem>>, vector<8x128xf32>,
    %112 = vector.extract_strided_slice %73 {offsets = [152, 0], sizes = [8, 128], strides = [1, 1]} : vector<176x128xf32> to vector<8x128xf32>
    %c0_90 = arith.constant 0 : index
    %c2432 = arith.constant 2432 : index
    %113 = vector.load %arg15[%c0_90, %c2432] : memref<8x2816xf32, #tpu.memory_space<vmem>>, vector<8x128xf32>
    tpu.vector_store %arg15[%c0_90, %c2432], %112 {strides = array<i32>} : memref<8x2816xf32, #tpu.memory_space<vmem>>, vector<8x128xf32>,
    %114 = vector.extract_strided_slice %73 {offsets = [160, 0], sizes = [8, 128], strides = [1, 1]} : vector<176x128xf32> to vector<8x128xf32>
    %c0_91 = arith.constant 0 : index
    %c2560 = arith.constant 2560 : index
    %115 = vector.load %arg15[%c0_91, %c2560] : memref<8x2816xf32, #tpu.memory_space<vmem>>, vector<8x128xf32>
    tpu.vector_store %arg15[%c0_91, %c2560], %114 {strides = array<i32>} : memref<8x2816xf32, #tpu.memory_space<vmem>>, vector<8x128xf32>,
    %116 = vector.extract_strided_slice %73 {offsets = [168, 0], sizes = [8, 128], strides = [1, 1]} : vector<176x128xf32> to vector<8x128xf32>
    %c0_92 = arith.constant 0 : index
    %c2688 = arith.constant 2688 : index
    %117 = vector.load %arg15[%c0_92, %c2688] : memref<8x2816xf32, #tpu.memory_space<vmem>>, vector<8x128xf32>
    tpu.vector_store %arg15[%c0_92, %c2688], %116 {strides = array<i32>} : memref<8x2816xf32, #tpu.memory_space<vmem>>, vector<8x128xf32>,
    %c0_93 = arith.constant 0 : index
    %c0_94 = arith.constant 0 : index
    %118 = vector.load %arg15[%c0_93, %c0_94] : memref<8x2816xf32, #tpu.memory_space<vmem>>, vector<8x2816xf32>
    %119 = arith.truncf %118 : vector<8x2816xf32> to vector<8x2816xbf16>
    %c0_95 = arith.constant 0 : index
    %c0_96 = arith.constant 0 : index
    %120 = vector.load %arg8[%c0_95, %c0_96] : memref<2816x256xbf16, #tpu.memory_space<vmem>>, vector<2816x256xbf16>
    %cst_97 = arith.constant dense<0.000000e+00> : vector<8x256xf32>
    %121 = tpu.matmul %119, %120, %cst_97 {dimension_numbers = #tpu.dot_dimension_numbers<[1], [0], [0], [1], [0, 0, 1, 1], [], []>} : vector<8x2816xbf16>, vector<2816x256xbf16>, vector<8x256xf32> -> vector<8x256xf32>
    %c0_98 = arith.constant 0 : index
    %c0_99 = arith.constant 0 : index
    %122 = vector.load %arg9[%c0_98, %c0_99] : memref<1x256xf32, #tpu.memory_space<vmem>>, vector<1x256xf32>
    %123 = vector.broadcast %122 : vector<1x256xf32> to vector<8x256xf32>
    %124 = arith.addf %121, %123 : vector<8x256xf32>
    %cst_100 = arith.constant 0.000000e+00 : f32
    %125 = vector.broadcast %cst_100 : f32 to vector<8x256xf32>
    %126 = arith.maximumf %124, %125 : vector<8x256xf32>
    %127 = arith.truncf %126 : vector<8x256xf32> to vector<8x256xbf16>
    %c0_101 = arith.constant 0 : index
    %c0_102 = arith.constant 0 : index
    %128 = vector.load %arg10[%c0_101, %c0_102] : memref<256x128xbf16, #tpu.memory_space<vmem>>, vector<256x128xbf16>
    %cst_103 = arith.constant dense<0.000000e+00> : vector<8x128xf32>
    %129 = tpu.matmul %127, %128, %cst_103 {dimension_numbers = #tpu.dot_dimension_numbers<[1], [0], [0], [1], [0, 0, 1, 1], [], []>} : vector<8x256xbf16>, vector<256x128xbf16>, vector<8x128xf32> -> vector<8x128xf32>
    %c0_104 = arith.constant 0 : index
    %c0_105 = arith.constant 0 : index
    %130 = vector.load %arg11[%c0_104, %c0_105] : memref<1x128xf32, #tpu.memory_space<vmem>>, vector<1x128xf32>
    %131 = vector.broadcast %130 : vector<1x128xf32> to vector<8x128xf32>
    %132 = arith.addf %129, %131 : vector<8x128xf32>
    %c0_106 = arith.constant 0 : index
    %c0_107 = arith.constant 0 : index
    %133 = vector.load %arg12[%c0_106, %c0_107] : memref<8x128xf32, #tpu.memory_space<vmem>>, vector<8x128xf32>
    tpu.vector_store %arg12[%c0_106, %c0_107], %132 {strides = array<i32>} : memref<8x128xf32, #tpu.memory_space<vmem>>, vector<8x128xf32>,
    return
  }
  func.func @transform_0(%arg0: i32) -> (i32, i32) {
    %c0_i32 = arith.constant 0 : i32
    %c0_i32_0 = arith.constant 0 : i32
    %c0_i32_1 = arith.constant 0 : i32
    return %c0_i32, %c0_i32_0 : i32, i32
  }
  func.func @transform_1(%arg0: i32) -> (i32, i32, i32) {
    %c0_i32 = arith.constant 0 : i32
    %c0_i32_0 = arith.constant 0 : i32
    %c0_i32_1 = arith.constant 0 : i32
    %c0_i32_2 = arith.constant 0 : i32
    return %c0_i32, %c0_i32_0, %c0_i32_1 : i32, i32, i32
  }
  func.func @transform_2(%arg0: i32) -> (i32, i32) {
    %c0_i32 = arith.constant 0 : i32
    %c0_i32_0 = arith.constant 0 : i32
    %c0_i32_1 = arith.constant 0 : i32
    return %c0_i32, %c0_i32_0 : i32, i32
  }
  func.func @transform_3(%arg0: i32) -> (i32, i32, i32) {
    %c0_i32 = arith.constant 0 : i32
    %c0_i32_0 = arith.constant 0 : i32
    %c0_i32_1 = arith.constant 0 : i32
    %c0_i32_2 = arith.constant 0 : i32
    return %c0_i32, %c0_i32_0, %c0_i32_1 : i32, i32, i32
  }
  func.func @transform_4(%arg0: i32) -> (i32, i32) {
    %c0_i32 = arith.constant 0 : i32
    %c0_i32_0 = arith.constant 0 : i32
    %c0_i32_1 = arith.constant 0 : i32
    return %c0_i32, %c0_i32_0 : i32, i32
  }
  func.func @transform_5(%arg0: i32) -> (i32, i32, i32) {
    %c0_i32 = arith.constant 0 : i32
    %c0_i32_0 = arith.constant 0 : i32
    %c0_i32_1 = arith.constant 0 : i32
    %c0_i32_2 = arith.constant 0 : i32
    return %c0_i32, %c0_i32_0, %c0_i32_1 : i32, i32, i32
  }
  func.func @transform_6(%arg0: i32) -> (i32, i32) {
    %c0_i32 = arith.constant 0 : i32
    %c0_i32_0 = arith.constant 0 : i32
    %c0_i32_1 = arith.constant 0 : i32
    return %c0_i32, %c0_i32_0 : i32, i32
  }
  func.func @transform_7(%arg0: i32) -> (i32, i32) {
    %c0_i32 = arith.constant 0 : i32
    %c0_i32_0 = arith.constant 0 : i32
    %c0_i32_1 = arith.constant 0 : i32
    return %c0_i32, %c0_i32_0 : i32, i32
  }
  func.func @transform_8(%arg0: i32) -> (i32, i32) {
    %c0_i32 = arith.constant 0 : i32
    %c0_i32_0 = arith.constant 0 : i32
    %c0_i32_1 = arith.constant 0 : i32
    return %c0_i32, %c0_i32_0 : i32, i32
  }
  func.func @transform_9(%arg0: i32) -> (i32, i32) {
    %c0_i32 = arith.constant 0 : i32
    %c0_i32_0 = arith.constant 0 : i32
    %c0_i32_1 = arith.constant 0 : i32
    return %c0_i32, %c0_i32_0 : i32, i32
  }
  func.func @transform_10(%arg0: i32) -> (i32, i32) {
    %c0_i32 = arith.constant 0 : i32
    %c0_i32_0 = arith.constant 0 : i32
    %c0_i32_1 = arith.constant 0 : i32
    return %c0_i32, %c0_i32_0 : i32, i32
  }
  func.func @transform_11(%arg0: i32) -> (i32, i32) {
    %c0_i32 = arith.constant 0 : i32
    %c0_i32_0 = arith.constant 0 : i32
    %c0_i32_1 = arith.constant 0 : i32
    return %c0_i32, %c0_i32_0 : i32, i32
  }
}

</mosaic_0001>

<bundles_post_ra>
// kernel: cnn_encoder_forward.1
= control target key start
LH: loop header
LB: loop body
LE: loop exit
PB: predicated region body
PF: predicated region fallthrough
CT: control target
= control target key end

     0   :  { %16 = vsyncpa [#allocation6], 0  ;;  %s8143_s0 = inlined_call_operand.vmem [shape: f32[192,5], index: 0, kind: input, shape index: {}]   ;;  %s8144_s1 = inlined_call_operand.vmem [shape: bf16[3,5,32], index: 1, kind: input, shape index: {}]   ;;  %s8145_s2 = inlined_call_operand.hbm [shape: f32[1,32], index: 2, kind: input, shape index: {}]   ;;  %s8146_s3 = inlined_call_operand.hbm [shape: bf16[3,32,64], index: 3, kind: input, shape index: {}]   ;;  %s8147_s4 = inlined_call_operand.hbm [shape: f32[1,64], index: 4, kind: input, shape index: {}]   ;;  %s8148_s5 = inlined_call_operand.hbm [shape: bf16[3,64,128], index: 5, kind: input, shape index: {}]   ;;  %s8149_s6 = inlined_call_operand.hbm [shape: f32[1,128], index: 6, kind: input, shape index: {}]   ;;  %s8150_s7 = inlined_call_operand.hbm [shape: bf16[2816,256], index: 7, kind: input, shape index: {}]   ;;  %s8151_s8 = inlined_call_operand.hbm [shape: f32[1,256], index: 8, kind: input, shape index: {}]   ;;  %s8152_s9 = inlined_call_operand.hbm [shape: bf16[256,128], index: 9, kind: input, shape index: {}]   ;;  %s8153_s10 = inlined_call_operand.hbm [shape: f32[1,128], index: 10, kind: input, shape index: {}]   ;;  %s8154_s11 = inlined_call_operand.vmem [shape: f32[8,128], index: 11, kind: output, shape index: {}]  }
   0x1   :  { %17 = vsyncpa [#allocation8], 0 }
   0x2   :  { %18 = vsyncpa [#allocation11], 0 }
   0x3   :  { %19 = vsyncpa [#allocation14], 0 }
   0x4   :  { %20 = vsyncpa [#allocation17], 0  ;;  %s6939_s17 = smov [#allocation7]   ;;  %s6731_s21 = scalar_lea.hbm %s8146_s3, 768 }
   0x5   :  { %s40_s18 = sshll.u32 %s6939_s17, 4  ;;  %p6732_p0 = scmp.ne.s32.totalorder %s8146_s3, %s6731_s21  ;;  %s41_s18 = int_to_ptr.vmem [resolvable:$true] %s40_s18 }
   0x6   :  { %p6735_p1 = scmp.lt.u32.totalorder %s6731_s21, %s8146_s3 }
   0x8   :  { %p6737_p2 = pnand %p6735_p1, %p6732_p0 }
   0xa   :  { %6740 = shalt.err (!%p6737_p2)
}
   0xb   :  { %s6741_s26 = scalar_lea.vmem %s41_s18, 768  ;;  %p6746_p4 = scmp.lt.s32.totalorder %s41_s18, %s41_s18 }
   0xc   :  { %p6742_p3 = scmp.ne.s32.totalorder %s41_s18, %s6741_s26  ;;  %p6747_p5 = scmp.lt.s32.totalorder %s6741_s26, %s6741_s26 }
   0xe   :  { %p6748_p6 = por %p6747_p5, %p6746_p4 }
  0x10   :  { %p6749_p7 = pnand %p6748_p6, %p6742_p3 }
  0x12   :  { %6752 = shalt.err (!%p6749_p7)
}
  0x13   :  { %s6940_s27 = smov 64   ;;  %s6941_s28 = smov 4  }
  0x14   :  { %46 = dma.hbm_to_vmem [thread:$0]  %s8146_s3, 768, %s41_s18, [#allocation8], %s6940_s27, %s6940_s27, %s6941_s28  }
  0x15   :  { %s6942_s12 = smov [#allocation10]   ;;  %s6943_s14 = smov [#allocation13]  }
  0x16   :  { %s62_s13 = sshll.u32 %s6942_s12, 4  ;;  %s84_s15 = sshll.u32 %s6943_s14, 4  ;;  %s63_s13 = int_to_ptr.vmem [resolvable:$true] %s62_s13  ;;  %s85_s15 = int_to_ptr.vmem [resolvable:$true] %s84_s15 }
  0x17   :  { %s6753_s19 = scalar_lea.hbm %s8148_s5, 1536 }
  0x18   :  { %p6754_p8 = scmp.ne.s32.totalorder %s8148_s5, %s6753_s19  ;;  %p6757_p9 = scmp.lt.u32.totalorder %s6753_s19, %s8148_s5 }
  0x1a   :  { %p6759_p10 = pnand %p6757_p9, %p6754_p8 }
  0x1c   :  { %6762 = shalt.err (!%p6759_p10)
}
  0x1d   :  { %s6763_s3 = scalar_lea.vmem %s63_s13, 1536  ;;  %p6768_p12 = scmp.lt.s32.totalorder %s63_s13, %s63_s13 }
  0x1e   :  { %p6764_p11 = scmp.ne.s32.totalorder %s63_s13, %s6763_s3  ;;  %p6769_p13 = scmp.lt.s32.totalorder %s6763_s3, %s6763_s3 }
  0x20   :  { %p6770_p0 = por %p6769_p13, %p6768_p12 }
  0x22   :  { %p6771_p1 = pnand %p6770_p0, %p6764_p11 }
  0x24   :  { %6774 = shalt.err (!%p6771_p1)
}
  0x25   :  { %68 = dma.hbm_to_vmem [thread:$0]  %s8148_s5, 1536, %s63_s13, [#allocation11], %s6940_s27, %s6940_s27, %s6941_s28  }
  0x26   :  { %s6775_s29 = scalar_lea.hbm %s8150_s7, 45056 }
  0x27   :  { %p6776_p2 = scmp.ne.s32.totalorder %s8150_s7, %s6775_s29  ;;  %p6779_p3 = scmp.lt.u32.totalorder %s6775_s29, %s8150_s7 }
  0x29   :  { %p6781_p4 = pnand %p6779_p3, %p6776_p2 }
  0x2b   :  { %6784 = shalt.err (!%p6781_p4)
}
  0x2c   :  { %s6785_s17 = scalar_lea.vmem %s85_s15, 45056  ;;  %p6790_p6 = scmp.lt.s32.totalorder %s85_s15, %s85_s15 }
  0x2d   :  { %p6786_p5 = scmp.ne.s32.totalorder %s85_s15, %s6785_s17  ;;  %p6791_p7 = scmp.lt.s32.totalorder %s6785_s17, %s6785_s17 }
  0x2f   :  { %p6792_p8 = por %p6791_p7, %p6790_p6 }
  0x31   :  { %p6793_p9 = pnand %p6792_p8, %p6786_p5 }
  0x33   :  { %6796 = shalt.err (!%p6793_p9)
}
  0x34   :  { %s6944_s5 = smov 128   ;;  %s6945_s13 = smov 8  }
  0x35   :  { %90 = dma.hbm_to_vmem [thread:$0]  %s8150_s7, 45056, %s85_s15, [#allocation14], %s6944_s5, %s6944_s5, %s6945_s13  }
  0x36   :  { %s6946_s21 = smov [#allocation16]   ;;  %s6947_s23 = smov [#allocation5]  }
  0x37   :  { %s106_s22 = sshll.u32 %s6946_s21, 4  ;;  %s31_s3 = sshll.u32 %s6947_s23, 4  ;;  %s107_s22 = int_to_ptr.vmem [resolvable:$true] %s106_s22  ;;  %s32_s3 = int_to_ptr.vmem [resolvable:$true] %s31_s3 }
  0x38   :  { %s6797_s25 = scalar_lea.hbm %s8152_s9, 2048 }
  0x39   :  { %p6798_p10 = scmp.ne.s32.totalorder %s8152_s9, %s6797_s25  ;;  %p6801_p11 = scmp.lt.u32.totalorder %s6797_s25, %s8152_s9 }
  0x3b   :  { %p6803_p12 = pnand %p6801_p11, %p6798_p10 }
  0x3d   :  { %6806 = shalt.err (!%p6803_p12)
}
  0x3e   :  { %s6807_s7 = scalar_lea.vmem %s107_s22, 2048  ;;  %p6812_p0 = scmp.lt.s32.totalorder %s107_s22, %s107_s22 }
  0x3f   :  { %p6808_p13 = scmp.ne.s32.totalorder %s107_s22, %s6807_s7  ;;  %p6813_p1 = scmp.lt.s32.totalorder %s6807_s7, %s6807_s7 }
  0x41   :  { %p6814_p2 = por %p6813_p1, %p6812_p0 }
  0x43   :  { %p6815_p3 = pnand %p6814_p2, %p6808_p13 }
  0x45   :  { %6818 = shalt.err (!%p6815_p3)
}
  0x46   :  { %112 = dma.hbm_to_vmem [thread:$0]  %s8152_s9, 2048, %s107_s22, [#allocation17], %s6940_s27, %s6940_s27, %s6941_s28  }
  0x47   :  { %s6819_s5 = scalar_lea.hbm %s8145_s2, 16 }
  0x48   :  { %p6820_p4 = scmp.ne.s32.totalorder %s8145_s2, %s6819_s5  ;;  %p6823_p5 = scmp.lt.u32.totalorder %s6819_s5, %s8145_s2 }
  0x4a   :  { %p6825_p6 = pnand %p6823_p5, %p6820_p4 }
  0x4c   :  { %6828 = shalt.err (!%p6825_p6)
}
  0x4d   :  { %s6829_s23 = scalar_lea.vmem %s32_s3, 16  ;;  %s6833_s18 = scalar_lea.vmem %s32_s3, 32 }
  0x4e   :  { %p6830_p7 = scmp.ne.s32.totalorder %s32_s3, %s6829_s23  ;;  %p6834_p8 = scmp.lt.s32.totalorder %s32_s3, %s32_s3 }
  0x4f   :  { %p6835_p9 = scmp.lt.s32.totalorder %s6833_s18, %s6829_s23 }
  0x51   :  { %p6836_p10 = por %p6835_p9, %p6834_p8 }
  0x53   :  { %p6837_p11 = pnand %p6836_p10, %p6830_p7 }
  0x55   :  { %6840 = shalt.err (!%p6837_p11)
}
  0x56   :  { %34 = dma.hbm_to_vmem [thread:$0]  %s8145_s2, 16, %s32_s3, [#allocation6]  }
  0x57   :  { %s6948_s28 = smov [#allocation9]   ;;  %s6949_s24 = smov [#allocation12]  }
  0x58   :  { %s53_s22 = sshll.u32 %s6948_s28, 4  ;;  %s75_s25 = sshll.u32 %s6949_s24, 4  ;;  %s54_s22 = int_to_ptr.vmem [resolvable:$true] %s53_s22  ;;  %s76_s25 = int_to_ptr.vmem [resolvable:$true] %s75_s25 }
  0x59   :  { %s6841_s30 = scalar_lea.hbm %s8147_s4, 16 }
  0x5a   :  { %p6842_p12 = scmp.ne.s32.totalorder %s8147_s4, %s6841_s30  ;;  %p6845_p13 = scmp.lt.u32.totalorder %s6841_s30, %s8147_s4 }
  0x5c   :  { %p6847_p0 = pnand %p6845_p13, %p6842_p12 }
  0x5e   :  { %6850 = shalt.err (!%p6847_p0)
}
  0x5f   :  { %s6851_s2 = scalar_lea.vmem %s54_s22, 16  ;;  %s6855_s3 = scalar_lea.vmem %s54_s22, 32 }
  0x60   :  { %p6852_p1 = scmp.ne.s32.totalorder %s54_s22, %s6851_s2  ;;  %p6856_p2 = scmp.lt.s32.totalorder %s54_s22, %s54_s22 }
  0x61   :  { %p6857_p3 = scmp.lt.s32.totalorder %s6855_s3, %s6851_s2 }
  0x63   :  { %p6858_p4 = por %p6857_p3, %p6856_p2 }
  0x65   :  { %p6859_p5 = pnand %p6858_p4, %p6852_p1 }
  0x67   :  { %6862 = shalt.err (!%p6859_p5)
}
  0x68   :  { %56 = dma.hbm_to_vmem [thread:$0]  %s8147_s4, 16, %s54_s22, [#allocation8]  }
  0x69   :  { %s6863_s19 = scalar_lea.hbm %s8149_s6, 16 }
  0x6a   :  { %p6864_p6 = scmp.ne.s32.totalorder %s8149_s6, %s6863_s19  ;;  %p6867_p7 = scmp.lt.u32.totalorder %s6863_s19, %s8149_s6 }
  0x6c   :  { %p6869_p8 = pnand %p6867_p7, %p6864_p6 }
  0x6e   :  { %6872 = shalt.err (!%p6869_p8)
}
  0x6f   :  { %s6873_s9 = scalar_lea.vmem %s76_s25, 16  ;;  %s6877_s27 = scalar_lea.vmem %s76_s25, 32 }
  0x70   :  { %p6874_p9 = scmp.ne.s32.totalorder %s76_s25, %s6873_s9  ;;  %p6878_p10 = scmp.lt.s32.totalorder %s76_s25, %s76_s25 }
  0x71   :  { %p6879_p11 = scmp.lt.s32.totalorder %s6877_s27, %s6873_s9 }
  0x73   :  { %p6880_p12 = por %p6879_p11, %p6878_p10 }
  0x75   :  { %p6881_p13 = pnand %p6880_p12, %p6874_p9 }
  0x77   :  { %6884 = shalt.err (!%p6881_p13)
}
  0x78   :  { %78 = dma.hbm_to_vmem [thread:$0]  %s8149_s6, 16, %s76_s25, [#allocation11]  }
  0x79   :  { %s6950_s22 = smov [#allocation15]   ;;  %s6951_s26 = smov [#allocation18]  }
  0x7a   :  { %s97_s24 = sshll.u32 %s6950_s22, 4  ;;  %s119_s29 = sshll.u32 %s6951_s26, 4  ;;  %s98_s24 = int_to_ptr.vmem [resolvable:$true] %s97_s24  ;;  %s120_s29 = int_to_ptr.vmem [resolvable:$true] %s119_s29 }
  0x7b   :  { %s6885_s7 = scalar_lea.hbm %s8151_s8, 32 }
  0x7c   :  { %p6886_p0 = scmp.ne.s32.totalorder %s8151_s8, %s6885_s7  ;;  %p6889_p1 = scmp.lt.u32.totalorder %s6885_s7, %s8151_s8 }
  0x7e   :  { %p6891_p2 = pnand %p6889_p1, %p6886_p0 }
  0x80   :  { %6894 = shalt.err (!%p6891_p2)
}
  0x81   :  { %s6895_s6 = scalar_lea.vmem %s98_s24, 32  ;;  %p6900_p4 = scmp.lt.s32.totalorder %s98_s24, %s98_s24 }
  0x82   :  { %p6896_p3 = scmp.ne.s32.totalorder %s98_s24, %s6895_s6  ;;  %p6901_p5 = scmp.lt.s32.totalorder %s6895_s6, %s6895_s6 }
  0x84   :  { %p6902_p6 = por %p6901_p5, %p6900_p4 }
  0x86   :  { %p6903_p7 = pnand %p6902_p6, %p6896_p3 }
  0x88   :  { %6906 = shalt.err (!%p6903_p7)
}
  0x89   :  { %100 = dma.hbm_to_vmem [thread:$0]  %s8151_s8, 32, %s98_s24, [#allocation14]  }
  0x8a   :  { %s6907_s13 = scalar_lea.hbm %s8153_s10, 16 }
  0x8b   :  { %p6908_p8 = scmp.ne.s32.totalorder %s8153_s10, %s6907_s13  ;;  %p6911_p9 = scmp.lt.u32.totalorder %s6907_s13, %s8153_s10 }
  0x8d   :  { %p6913_p10 = pnand %p6911_p9, %p6908_p8 }
  0x8f   :  { %6916 = shalt.err (!%p6913_p10)
}
  0x90   :  { %s6917_s18 = scalar_lea.vmem %s120_s29, 16  ;;  %s6921_s9 = scalar_lea.vmem %s120_s29, 32 }
  0x91   :  { %p6918_p11 = scmp.ne.s32.totalorder %s120_s29, %s6917_s18  ;;  %p6922_p12 = scmp.lt.s32.totalorder %s120_s29, %s120_s29 }
  0x92   :  { %p6923_p13 = scmp.lt.s32.totalorder %s6921_s9, %s6917_s18 }
  0x94   :  { %p6924_p0 = por %p6923_p13, %p6922_p12 }
  0x96   :  { %p6925_p1 = pnand %p6924_p0, %p6918_p11 }
  0x98   :  { %6928 = shalt.err (!%p6925_p1)
}
  0x99   :  { %122 = dma.hbm_to_vmem [thread:$0]  %s8153_s10, 16, %s120_s29, [#allocation17]  }
  0x9a   :  { %6929 = dma.done.wait [#allocation6], 16  }
  0x9b   :  { %6930 = vsyncadd [#allocation6], 4294967280 }
  0x9c   :  { %6931 = dma.done.wait [#allocation8], 784  }
  0x9d   :  { %6932 = vsyncadd [#allocation8], 4294966512 }
  0x9e   :  { %6933 = dma.done.wait [#allocation11], 1552  }
  0x9f   :  { %6934 = vsyncadd [#allocation11], 4294965744 }
  0xa0   :  { %6935 = dma.done.wait [#allocation14], 45088  }
  0xa1   :  { %6936 = vsyncadd [#allocation14], 4294922208 }
  0xa2   :  { %6937 = dma.done.wait [#allocation17], 2064  }
  0xa3   :  { %6938 = vsyncadd [#allocation17], 4294965232  ;;  %vm233_vm0 = vcmask 1041408   ;;  %v6952_v0 = vmov 0.0   ;;  %vm234_vm1 = vcmask 1042432   ;;  %v6953_v1 = vmov 65535  }
  0xa4   :  { %5670 = vmatprep.subr.bf16.mxu0 %v6952_v0  ;;  %6108 = vmatprep.subr.bf16.mxu1 %v6952_v0  ;;  %v235_v2 = vsel %vm233_vm0, 4294967295, %v6953_v1  ;;  %vm6954_vm2 = vmmov 0   ;;  %v184_v4 = vld [vmem:[%s8144_s1] sm:$0x7]  ;;  %v5037_v5 = vld [vmem:[%s8144_s1 + $0x4] sm:$0x7] }
  0xa5   :  { %5672 = vmatprep.mubr.msk.bf16.mxu0 %vm6954_vm2, %v6952_v0  ;;  %5722 = vmatprep.mubr.msk.bf16.mxu1 %vm6954_vm2, %v6952_v0  ;;  %v7138_v3 = vsel %vm234_vm1, %v235_v2, 0  ;;  %v7151_v8 = vld [vmem:[%s8143_s0 + $0x8] sm:$0xff]  ;;  %v153_v9 = vld [vmem:[%s8143_s0 + $0x10] sm:$0xff]  ;;  %v154_v11 = vld [vmem:[%s8143_s0 + $0x18] sm:$0xff]  ;;  %vm199_vm3 = vcmask 39936   ;;  %vm783_vm4 = vcmask 261120  }
  0xa6   :  { %v238_v6 = vand.u32 %v5037_v5, %v7138_v3  ;;  %v395_v7 = vand.u32 %v7138_v3, %v184_v4  ;;  %v186_v10 = vpack.c.bf16 %v153_v9, %v7151_v8  ;;  %v7160_v12 = vpack.c.bf16 %v154_v11, %v153_v9  ;;  %v155_v13 = vld [vmem:[%s8143_s0 + $0x20] sm:$0xff]  ;;  %v156_v14 = vld [vmem:[%s8143_s0 + $0x28] sm:$0xff]  ;;  %v157_v17 = vld [vmem:[%s8143_s0 + $0x30] sm:$0xff]  ;;  %784 = vst.msk [vmem:[#allocation2] sm:$0xff] %vm783_vm4, %v6952_v0 }
  0xa7   :  { %v187_v15 = vpack.c.bf16 %v155_v13, %v154_v11  ;;  %v7177_v16 = vpack.c.bf16 %v156_v14, %v155_v13  ;;  %v158_v18 = vld [vmem:[%s8143_s0 + $0x38] sm:$0xff]  ;;  %v188_v19 = vpack.c.bf16 %v157_v17, %v156_v14  ;;  %v159_v21 = vld [vmem:[%s8143_s0 + $0x40] sm:$0xff]  ;;  %v160_v22 = vld [vmem:[%s8143_s0 + $0x48] sm:$0xff]  ;;  %785 = vst.msk [vmem:[#allocation2 + $0xb8] sm:$0xff] %vm783_vm4, %v6952_v0  ;;  %vm1471_vm5 = vcmask 523264  }
  0xa8   :  { %5671 = vmatpush3.bf16.msra.mxu0 %v238_v6  ;;  %6109 = vmatpush3.bf16.msra.mxu1 %v395_v7  ;;  %v7192_v20 = vpack.c.bf16 %v158_v18, %v157_v17  ;;  %v189_v23 = vpack.c.bf16 %v159_v21, %v158_v18  ;;  %v7207_v24 = vpack.c.bf16 %v160_v22, %v159_v21  ;;  %v161_v25 = vld [vmem:[%s8143_s0 + $0x50] sm:$0xff]  ;;  %v162_v26 = vld [vmem:[%s8143_s0 + $0x58] sm:$0xff]  ;;  %v163_v29 = vld [vmem:[%s8143_s0 + $0x60] sm:$0xff] }
  0xa9   :  { %5716 = vmatprep.subr.bf16.mxu0 %v6952_v0  ;;  %v190_v27 = vpack.c.bf16 %v161_v25, %v160_v22  ;;  %v7222_v28 = vpack.c.bf16 %v162_v26, %v161_v25  ;;  %v164_v30 = vld [vmem:[%s8143_s0 + $0x68] sm:$0xff]  ;;  %v191_v31 = vpack.c.bf16 %v163_v29, %v162_v26  ;;  %v165_v33 = vld [vmem:[%s8143_s0 + $0x70] sm:$0xff]  ;;  %v166_v34 = vld [vmem:[%s8143_s0 + $0x78] sm:$0xff]  ;;  %1472 = vst.msk [vmem:[#allocation3] sm:$0xff] %vm1471_vm5, %v6952_v0 }
  0xaa   :  { %v179_v32 = vpack.c.bf16 %v164_v30, %v163_v29  ;;  %v192_v35 = vpack.c.bf16 %v165_v33, %v164_v30  ;;  %v180_v36 = vpack.c.bf16 %v166_v34, %v165_v33  ;;  %v167_v37 = vld [vmem:[%s8143_s0 + $0x80] sm:$0xff]  ;;  %v168_v38 = vld [vmem:[%s8143_s0 + $0x88] sm:$0xff]  ;;  %v169_v41 = vld [vmem:[%s8143_s0 + $0x90] sm:$0xff]  ;;  %1473 = vst.msk [vmem:[#allocation3 + $0xb8] sm:$0xff] %vm1471_vm5, %v6952_v0 }
  0xab   :  { %5673 = vmatmul.mubr.msk.bf16.vlgmr.msra.gmra.mrb[0].mxu0 %vm199_vm3, %v186_v10  ;;  %5723 = vmatmul.mubr.msk.bf16.vlgmr.msra.gmra.mrb[0].mxu1 %vm199_vm3, %v7160_v12  ;;  %v193_v39 = vpack.c.bf16 %v167_v37, %v166_v34  ;;  %v181_v40 = vpack.c.bf16 %v168_v38, %v167_v37  ;;  %v170_v42 = vld [vmem:[%s8143_s0 + $0x98] sm:$0xff]  ;;  %v194_v43 = vpack.c.bf16 %v169_v41, %v168_v38  ;;  %v171_v45 = vld [vmem:[%s8143_s0 + $0xa0] sm:$0xff]  ;;  %v172_v46 = vld [vmem:[%s8143_s0 + $0xa8] sm:$0xff] }
  0xac   :  { %5717 = vmatpush3.bf16.msra.mxu0 %v395_v7  ;;  %5676 = vmatprep.mubr.msk.bf16.mxu0 %vm6954_vm2, %v6952_v0  ;;  %v182_v44 = vpack.c.bf16 %v170_v42, %v169_v41  ;;  %v195_v47 = vpack.c.bf16 %v171_v45, %v170_v42  ;;  %v183_v48 = vpack.c.bf16 %v172_v46, %v171_v45  ;;  %v185_v49 = vld [vmem:[%s8143_s0 + $0xb0] sm:$0xff]  ;;  %v151_v51 = vld [vmem:[%s8143_s0] sm:$0xff]  ;;  %v5060_v52 = vld [vmem:[%s8144_s1 + $0x8] sm:$0x7] }
  0xad   :  { %5726 = vmatprep.mubr.msk.bf16.mxu1 %vm6954_vm2, %v6952_v0  ;;  %5762 = vmatprep.subr.bf16.mxu0 %v6952_v0  ;;  %v196_v50 = vpack.c.bf16 %v185_v49, %v172_v46  ;;  %v173_v53 = vpack.c.bf16 %v7151_v8, %v151_v51  ;;  %v587_v54 = vand.u32 %v5060_v52, %v7138_v3  ;;  %v6168_v55 = vld [vmem:[#allocation7 + $0x10] sm:$0xff]   ;;  %v6169_v56 = vld [vmem:[#allocation7 + $0x18] sm:$0xff]  }
  0xae   :  { %v539_v57 = vld [vmem:[%s8143_s0 + $0xb8] sm:$0xff] }
  0xaf   :  { %v550_v58 = vpack.c.bf16 %v539_v57, %v185_v49 }
  0xb3   :  { %5677 = vmatmul.mubr.msk.bf16.gmra.mrb[4].mxu0 %vm199_vm3, %v187_v15  ;;  %5727 = vmatmul.mubr.msk.bf16.gmra.mrb[4].mxu1 %vm199_vm3, %v7177_v16 }
  0xb4   :  { %5680 = vmatprep.mubr.msk.bf16.mxu0 %vm6954_vm2, %v6952_v0  ;;  %5730 = vmatprep.mubr.msk.bf16.mxu1 %vm6954_vm2, %v6952_v0 }
  0xbb   :  { %5681 = vmatmul.mubr.msk.bf16.gmra.mrb[8].mxu0 %vm199_vm3, %v188_v19  ;;  %5731 = vmatmul.mubr.msk.bf16.gmra.mrb[8].mxu1 %vm199_vm3, %v7192_v20 }
  0xbc   :  { %5684 = vmatprep.mubr.msk.bf16.mxu0 %vm6954_vm2, %v6952_v0  ;;  %5734 = vmatprep.mubr.msk.bf16.mxu1 %vm6954_vm2, %v6952_v0 }
  0xc3   :  { %5685 = vmatmul.mubr.msk.bf16.gmra.mrb[12].mxu0 %vm199_vm3, %v189_v23  ;;  %5735 = vmatmul.mubr.msk.bf16.gmra.mrb[12].mxu1 %vm199_vm3, %v7207_v24 }
  0xc4   :  { %5688 = vmatprep.mubr.msk.bf16.mxu0 %vm6954_vm2, %v6952_v0  ;;  %5738 = vmatprep.mubr.msk.bf16.mxu1 %vm6954_vm2, %v6952_v0 }
  0xcb   :  { %5689 = vmatmul.mubr.msk.bf16.gmra.mrb[16].mxu0 %vm199_vm3, %v190_v27  ;;  %5739 = vmatmul.mubr.msk.bf16.gmra.mrb[16].mxu1 %vm199_vm3, %v7222_v28 }
  0xcc   :  { %5692 = vmatprep.mubr.msk.bf16.mxu0 %vm6954_vm2, %v6952_v0  ;;  %5742 = vmatprep.mubr.msk.bf16.mxu1 %vm6954_vm2, %v6952_v0 }
  0xd3   :  { %5693 = vmatmul.mubr.msk.bf16.gmra.mrb[20].mxu0 %vm199_vm3, %v191_v31  ;;  %5743 = vmatmul.mubr.msk.bf16.gmra.mrb[20].mxu1 %vm199_vm3, %v179_v32 }
  0xd4   :  { %5696 = vmatprep.mubr.msk.bf16.mxu0 %vm6954_vm2, %v6952_v0  ;;  %5746 = vmatprep.mubr.msk.bf16.mxu1 %vm6954_vm2, %v6952_v0 }
  0xdb   :  { %5697 = vmatmul.mubr.msk.bf16.gmra.mrb[24].mxu0 %vm199_vm3, %v192_v35  ;;  %5747 = vmatmul.mubr.msk.bf16.gmra.mrb[24].mxu1 %vm199_vm3, %v180_v36 }
  0xdc   :  { %5700 = vmatprep.mubr.msk.bf16.mxu0 %vm6954_vm2, %v6952_v0  ;;  %5750 = vmatprep.mubr.msk.bf16.mxu1 %vm6954_vm2, %v6952_v0 }
  0xe3   :  { %5701 = vmatmul.mubr.msk.bf16.gmra.mrb[28].mxu0 %vm199_vm3, %v193_v39  ;;  %5751 = vmatmul.mubr.msk.bf16.gmra.mrb[28].mxu1 %vm199_vm3, %v181_v40 }
  0xe4   :  { %5704 = vmatprep.mubr.msk.bf16.mxu0 %vm6954_vm2, %v6952_v0  ;;  %5754 = vmatprep.mubr.msk.bf16.mxu1 %vm6954_vm2, %v6952_v0 }
  0xeb   :  { %5705 = vmatmul.mubr.msk.bf16.gmra.mrb[32].mxu0 %vm199_vm3, %v194_v43  ;;  %5755 = vmatmul.mubr.msk.bf16.gmra.mrb[32].mxu1 %vm199_vm3, %v182_v44 }
  0xec   :  { %5708 = vmatprep.mubr.msk.bf16.mxu0 %vm6954_vm2, %v6952_v0  ;;  %5758 = vmatprep.mubr.msk.bf16.mxu1 %vm6954_vm2, %v6952_v0 }
  0xf3   :  { %5709 = vmatmul.mubr.msk.bf16.gmra.mrb[36].mxu0 %vm199_vm3, %v195_v47  ;;  %5759 = vmatmul.mubr.msk.bf16.gmra.mrb[36].mxu1 %vm199_vm3, %v183_v48 }
  0xf4   :  { %5712 = vmatprep.mubr.msk.bf16.mxu0 %vm6954_vm2, %v6952_v0 }
  0xfb   :  { %5713 = vmatmul.mubr.msk.bf16.gmra.mrb[40].mxu0 %vm199_vm3, %v196_v50 }
  0xfc   :  { %5718 = vmatprep.mubr.msk.bf16.mxu0 %vm6954_vm2, %v6952_v0 }
 0x103   :  { %5719 = vmatmul.mubr.msk.bf16.vlgmr.msra.gmra.mrb[44].mxu0 %vm199_vm3, %v173_v53 }
 0x104   :  { %5763 = vmatpush3.bf16.msra.mxu0 %v587_v54  ;;  %5764 = vmatprep.mubr.msk.bf16.mxu0 %vm6954_vm2, %v6952_v0 }
 0x105   :  { %5808 = vmatprep.subr.bf16.mxu0 %v6952_v0 }
 0x10b   :  { %5765 = vmatmul.mubr.msk.bf16.vlgmr.msra.gmra.mrb[48].mxu0 %vm199_vm3, %v7160_v12 }
 0x10c   :  { %5768 = vmatprep.mubr.msk.bf16.mxu0 %vm6954_vm2, %v6952_v0  ;;  %5809 = vmatpush3.bf16.msra.mxu0 %v6168_v55 }
 0x10d   :  { %5810 = vmatprep.subr.bf16.mxu0 %v6952_v0 }
 0x110   :  { %5811 = vmatpush3.bf16.msra.mxu0 %v6169_v56 }
 0x111   :  { %5856 = vmatprep.subr.bf16.mxu0 %v6952_v0 }
 0x113   :  { %5769 = vmatmul.mubr.msk.bf16.gmra.mrb[52].mxu0 %vm199_vm3, %v7177_v16 }
 0x114   :  { %5772 = vmatprep.mubr.msk.bf16.mxu0 %vm6954_vm2, %v6952_v0 }
 0x11b   :  { %5773 = vmatmul.mubr.msk.bf16.gmra.mrb[56].mxu0 %vm199_vm3, %v7192_v20 }
 0x11c   :  { %5776 = vmatprep.mubr.msk.bf16.mxu0 %vm6954_vm2, %v6952_v0 }
 0x123   :  { %5777 = vmatmul.mubr.msk.bf16.gmra.mrb[60].mxu0 %vm199_vm3, %v7207_v24 }
 0x124   :  { %5780 = vmatprep.mubr.msk.bf16.mxu0 %vm6954_vm2, %v6952_v0 }
 0x12b   :  { %5781 = vmatmul.mubr.msk.bf16.gmra.mrb[64].mxu0 %vm199_vm3, %v7222_v28 }
 0x12c   :  { %5784 = vmatprep.mubr.msk.bf16.mxu0 %vm6954_vm2, %v6952_v0 }
 0x133   :  { %5785 = vmatmul.mubr.msk.bf16.gmra.mrb[68].mxu0 %vm199_vm3, %v179_v32 }
 0x134   :  { %5788 = vmatprep.mubr.msk.bf16.mxu0 %vm6954_vm2, %v6952_v0 }
 0x13b   :  { %5789 = vmatmul.mubr.msk.bf16.gmra.mrb[72].mxu0 %vm199_vm3, %v180_v36 }
 0x13c   :  { %5792 = vmatprep.mubr.msk.bf16.mxu0 %vm6954_vm2, %v6952_v0 }
 0x143   :  { %5793 = vmatmul.mubr.msk.bf16.gmra.mrb[76].mxu0 %vm199_vm3, %v181_v40 }
 0x144   :  { %5796 = vmatprep.mubr.msk.bf16.mxu0 %vm6954_vm2, %v6952_v0 }
 0x14b   :  { %5797 = vmatmul.mubr.msk.bf16.gmra.mrb[80].mxu0 %vm199_vm3, %v182_v44 }
 0x14c   :  { %5800 = vmatprep.mubr.msk.bf16.mxu0 %vm6954_vm2, %v6952_v0 }
 0x153   :  { %5801 = vmatmul.mubr.msk.bf16.gmra.mrb[84].mxu0 %vm199_vm3, %v183_v48 }
 0x154   :  { %5804 = vmatprep.mubr.msk.bf16.mxu0 %vm6954_vm2, %v6952_v0 }
 0x15b   :  { %5805 = vmatmul.mubr.msk.bf16.gmra.mrb[88].mxu0 %vm199_vm3, %v550_v58 }
 0x15c   :  { %5812 = vmatprep.mubr.msk.bf16.mxu0 %vm6954_vm2, %v6952_v0 }
 0x17e   :  { %v7354_v59 = vpop.f32.mrb[0].mxu0  ;;  %v439_v60 = vpop.f32.mrb[0].mxu1 }
 0x17f   :  { %v5674_v61 = vpop.f32.mrb[1].mxu0  ;;  %v5724_v62 = vpop.f32.mrb[1].mxu1 }
 0x180   :  { %v7356_v63 = vpop.f32.mrb[2].mxu0  ;;  %v442_v1 = vpop.f32.mrb[2].mxu1 }
 0x181   :  { %v5675_v2 = vpop.f32.mrb[3].mxu0  ;;  %v5725_v3 = vpop.f32.mrb[3].mxu1 }
 0x186   :  { %v282_v4 = vpop.f32.mrb[4].mxu0  ;;  %v447_v5 = vpop.f32.mrb[4].mxu1 }
 0x187   :  { %v7358_v6 = vadd.f32 %v439_v60, %v282_v4  ;;  %v5678_v7 = vpop.f32.mrb[5].mxu0  ;;  %v5728_v8 = vpop.f32.mrb[5].mxu1 }
 0x188   :  { %v285_v9 = vpop.f32.mrb[6].mxu0  ;;  %v450_v10 = vpop.f32.mrb[6].mxu1 }
 0x189   :  { %v7360_v11 = vadd.f32 %v442_v1, %v285_v9  ;;  %v5679_v12 = vpop.f32.mrb[7].mxu0  ;;  %v5729_v13 = vpop.f32.mrb[7].mxu1 }
 0x18e   :  { %v290_v14 = vpop.f32.mrb[8].mxu0  ;;  %v455_v15 = vpop.f32.mrb[8].mxu1 }
 0x18f   :  { %v7362_v16 = vadd.f32 %v447_v5, %v290_v14  ;;  %v5682_v17 = vpop.f32.mrb[9].mxu0  ;;  %v5732_v18 = vpop.f32.mrb[9].mxu1 }
 0x190   :  { %v293_v19 = vpop.f32.mrb[10].mxu0  ;;  %v458_v20 = vpop.f32.mrb[10].mxu1 }
 0x191   :  { %v7364_v21 = vadd.f32 %v450_v10, %v293_v19  ;;  %v5683_v22 = vpop.f32.mrb[11].mxu0  ;;  %v5733_v23 = vpop.f32.mrb[11].mxu1 }
 0x196   :  { %v298_v24 = vpop.f32.mrb[12].mxu0  ;;  %v463_v25 = vpop.f32.mrb[12].mxu1 }
 0x197   :  { %v7366_v26 = vadd.f32 %v455_v15, %v298_v24  ;;  %v5686_v27 = vpop.f32.mrb[13].mxu0  ;;  %v5736_v28 = vpop.f32.mrb[13].mxu1 }
 0x198   :  { %v301_v29 = vpop.f32.mrb[14].mxu0  ;;  %v466_v30 = vpop.f32.mrb[14].mxu1 }
 0x199   :  { %v7368_v31 = vadd.f32 %v458_v20, %v301_v29  ;;  %v5687_v32 = vpop.f32.mrb[15].mxu0  ;;  %v5737_v33 = vpop.f32.mrb[15].mxu1 }
 0x19e   :  { %v306_v34 = vpop.f32.mrb[16].mxu0  ;;  %v471_v35 = vpop.f32.mrb[16].mxu1 }
 0x19f   :  { %v7370_v36 = vadd.f32 %v463_v25, %v306_v34  ;;  %v5690_v37 = vpop.f32.mrb[17].mxu0  ;;  %v5740_v38 = vpop.f32.mrb[17].mxu1 }
 0x1a0   :  { %v309_v39 = vpop.f32.mrb[18].mxu0  ;;  %v474_v40 = vpop.f32.mrb[18].mxu1 }
 0x1a1   :  { %v7372_v41 = vadd.f32 %v466_v30, %v309_v39  ;;  %v5691_v42 = vpop.f32.mrb[19].mxu0  ;;  %v5741_v43 = vpop.f32.mrb[19].mxu1 }
 0x1a6   :  { %v314_v44 = vpop.f32.mrb[20].mxu0  ;;  %v479_v45 = vpop.f32.mrb[20].mxu1 }
 0x1a7   :  { %v7374_v46 = vadd.f32 %v471_v35, %v314_v44  ;;  %v5694_v47 = vpop.f32.mrb[21].mxu0  ;;  %v5744_v48 = vpop.f32.mrb[21].mxu1 }
 0x1a8   :  { %v317_v49 = vpop.f32.mrb[22].mxu0  ;;  %v482_v50 = vpop.f32.mrb[22].mxu1 }
 0x1a9   :  { %v7376_v51 = vadd.f32 %v474_v40, %v317_v49  ;;  %v5695_v52 = vpop.f32.mrb[23].mxu0  ;;  %v5745_v53 = vpop.f32.mrb[23].mxu1 }
 0x1ae   :  { %v322_v54 = vpop.f32.mrb[24].mxu0  ;;  %v487_v55 = vpop.f32.mrb[24].mxu1 }
 0x1af   :  { %v7378_v56 = vadd.f32 %v479_v45, %v322_v54  ;;  %v5698_v57 = vpop.f32.mrb[25].mxu0  ;;  %v5748_v58 = vpop.f32.mrb[25].mxu1 }
 0x1b0   :  { %v325_v60 = vpop.f32.mrb[26].mxu0  ;;  %v490_v61 = vpop.f32.mrb[26].mxu1  ;;  %v7400_v57 = vld [vmem:[#allocation5] ss:$0 sm:$0xff] }
 0x1b1   :  { %v7380_v62 = vadd.f32 %v482_v50, %v325_v60  ;;  %v5699_v1 = vpop.f32.mrb[27].mxu0  ;;  %v5749_v2 = vpop.f32.mrb[27].mxu1 }
 0x1b6   :  { %v330_v3 = vpop.f32.mrb[28].mxu0  ;;  %v495_v4 = vpop.f32.mrb[28].mxu1 }
 0x1b7   :  { %v7382_v5 = vadd.f32 %v487_v55, %v330_v3  ;;  %v5702_v7 = vpop.f32.mrb[29].mxu0  ;;  %v5752_v8 = vpop.f32.mrb[29].mxu1 }
 0x1b8   :  { %v333_v9 = vpop.f32.mrb[30].mxu0  ;;  %v498_v10 = vpop.f32.mrb[30].mxu1 }
 0x1b9   :  { %v7384_v12 = vadd.f32 %v490_v61, %v333_v9  ;;  %v5703_v13 = vpop.f32.mrb[31].mxu0  ;;  %v5753_v14 = vpop.f32.mrb[31].mxu1 }
 0x1be   :  { %v338_v15 = vpop.f32.mrb[32].mxu0  ;;  %v503_v17 = vpop.f32.mrb[32].mxu1 }
 0x1bf   :  { %v7386_v18 = vadd.f32 %v495_v4, %v338_v15  ;;  %v5706_v19 = vpop.f32.mrb[33].mxu0  ;;  %v5756_v20 = vpop.f32.mrb[33].mxu1 }
 0x1c0   :  { %v341_v22 = vpop.f32.mrb[34].mxu0  ;;  %v506_v23 = vpop.f32.mrb[34].mxu1 }
 0x1c1   :  { %v7388_v24 = vadd.f32 %v498_v10, %v341_v22  ;;  %v5707_v25 = vpop.f32.mrb[35].mxu0  ;;  %v5757_v27 = vpop.f32.mrb[35].mxu1 }
 0x1c2   :  { %v6170_v27 = vld [vmem:[#allocation7] sm:$0xff]  }
 0x1c6   :  { %v346_v28 = vpop.f32.mrb[36].mxu0  ;;  %v511_v29 = vpop.f32.mrb[36].mxu1 }
 0x1c7   :  { %v7390_v30 = vadd.f32 %v503_v17, %v346_v28  ;;  %v5710_v32 = vpop.f32.mrb[37].mxu0  ;;  %v5760_v33 = vpop.f32.mrb[37].mxu1 }
 0x1c8   :  { %v349_v34 = vpop.f32.mrb[38].mxu0  ;;  %v514_v35 = vpop.f32.mrb[38].mxu1 }
 0x1c9   :  { %v7392_v37 = vadd.f32 %v506_v23, %v349_v34  ;;  %v5711_v38 = vpop.f32.mrb[39].mxu0  ;;  %v5761_v39 = vpop.f32.mrb[39].mxu1 }
 0x1ce   :  { %v354_v40 = vpop.f32.mrb[40].mxu0 }
 0x1cf   :  { %v7394_v42 = vadd.f32 %v511_v29, %v354_v40  ;;  %v5714_v43 = vpop.f32.mrb[41].mxu0 }
 0x1d0   :  { %v357_v44 = vpop.f32.mrb[42].mxu0 }
 0x1d1   :  { %v7396_v45 = vadd.f32 %v514_v35, %v357_v44  ;;  %v5715_v47 = vpop.f32.mrb[43].mxu0  ;;  %v6171_v35 = vld [vmem:[#allocation7 + $0x8] sm:$0xff]  }
 0x1d6   :  { %v431_v48 = vpop.f32.mrb[44].mxu0 }
 0x1d7   :  { %v432_v49 = vadd.f32 %v431_v48, %v7354_v59  ;;  %v5720_v50 = vpop.f32.mrb[45].mxu0 }
 0x1d8   :  { %v434_v52 = vpop.f32.mrb[46].mxu0 }
 0x1d9   :  { %v435_v53 = vadd.f32 %v434_v52, %v7356_v63  ;;  %v5721_v54 = vpop.f32.mrb[47].mxu0 }
 0x1de   :  { %v623_v55 = vpop.f32.mrb[48].mxu0 }
 0x1df   :  { %v710_v58 = vadd.f32 %v623_v55, %v432_v49  ;;  %v5766_v60 = vpop.f32.mrb[49].mxu0 }
 0x1e0   :  { %v626_v61 = vpop.f32.mrb[50].mxu0 }
 0x1e1   :  { %v739_v1 = vadd.f32 %v7400_v57, %v710_v58  ;;  %v711_v2 = vadd.f32 %v626_v61, %v435_v53  ;;  %v5767_v3 = vpop.f32.mrb[51].mxu0 }
 0x1e3   :  { %v761_v4 = vmax.f32 %v739_v1, 0.0  ;;  %v740_v7 = vadd.f32 %v7400_v57, %v711_v2 }
 0x1e5   :  { %786 = vst.msk [vmem:[#allocation2 + $0x8] sm:$0xff] %vm783_vm4, %v761_v4  ;;  %v762_v59 = vmax.f32 %v740_v7, 0.0 }
 0x1e6   :  { %v631_v8 = vpop.f32.mrb[52].mxu0 }
 0x1e7   :  { %787 = vst.msk [vmem:[#allocation2 + $0x10] sm:$0xff] %vm783_vm4, %v762_v59  ;;  %v712_v63 = vadd.f32 %v631_v8, %v7358_v6  ;;  %v5770_v9 = vpop.f32.mrb[53].mxu0 }
 0x1e8   :  { %v634_v10 = vpop.f32.mrb[54].mxu0 }
 0x1e9   :  { %v741_v13 = vadd.f32 %v7400_v57, %v712_v63  ;;  %v713_v14 = vadd.f32 %v634_v10, %v7360_v11  ;;  %v5771_v15 = vpop.f32.mrb[55].mxu0 }
 0x1eb   :  { %v763_v17 = vmax.f32 %v741_v13, 0.0  ;;  %v742_v19 = vadd.f32 %v7400_v57, %v713_v14 }
 0x1ec   :  { %v7411_v23 = vld [vmem:[#allocation2 + $0x8] sm:$0xff] }
 0x1ed   :  { %788 = vst.msk [vmem:[#allocation2 + $0x18] sm:$0xff] %vm783_vm4, %v763_v17  ;;  %v764_v20 = vmax.f32 %v742_v19, 0.0 }
 0x1ee   :  { %v639_v22 = vpop.f32.mrb[56].mxu0  ;;  %v810_v25 = vld [vmem:[#allocation2 + $0x10] sm:$0xff] }
 0x1ef   :  { %789 = vst.msk [vmem:[#allocation2 + $0x20] sm:$0xff] %vm783_vm4, %v764_v20  ;;  %v714_v6 = vadd.f32 %v639_v22, %v7362_v16  ;;  %v5774_v28 = vpop.f32.mrb[57].mxu0  ;;  %v846_v29 = vpack.c.bf16 %v810_v25, %v7411_v23 }
 0x1f0   :  { %v642_v11 = vpop.f32.mrb[58].mxu0 }
 0x1f1   :  { %v743_v32 = vadd.f32 %v7400_v57, %v714_v6  ;;  %v715_v33 = vadd.f32 %v642_v11, %v7364_v21  ;;  %v5775_v34 = vpop.f32.mrb[59].mxu0  ;;  %5813 = vmatmul.mubr.msk.bf16.vlgmr.msra.gmra.mrb[92].mxu0 %vm783_vm4, %v846_v29 }
 0x1f2   :  { %5857 = vmatpush3.bf16.msra.mxu0 %v6170_v27  ;;  %5816 = vmatprep.mubr.msk.bf16.mxu0 %vm6954_vm2, %v6952_v0 }
 0x1f3   :  { %v765_v38 = vmax.f32 %v743_v32, 0.0  ;;  %v744_v39 = vadd.f32 %v7400_v57, %v715_v33  ;;  %5858 = vmatprep.subr.bf16.mxu0 %v6952_v0 }
 0x1f4   :  { %v811_v16 = vld [vmem:[#allocation2 + $0x18] sm:$0xff] }
 0x1f5   :  { %790 = vst.msk [vmem:[#allocation2 + $0x28] sm:$0xff] %vm783_vm4, %v765_v38  ;;  %v766_v40 = vmax.f32 %v744_v39, 0.0  ;;  %v7424_v43 = vpack.c.bf16 %v811_v16, %v810_v25 }
 0x1f6   :  { %v647_v21 = vpop.f32.mrb[60].mxu0  ;;  %v812_v44 = vld [vmem:[#allocation2 + $0x20] sm:$0xff]  ;;  %5859 = vmatpush3.bf16.msra.mxu0 %v6171_v35 }
 0x1f7   :  { %791 = vst.msk [vmem:[#allocation2 + $0x30] sm:$0xff] %vm783_vm4, %v766_v40  ;;  %v716_v47 = vadd.f32 %v647_v21, %v7366_v26  ;;  %v5778_v48 = vpop.f32.mrb[61].mxu0  ;;  %v847_v49 = vpack.c.bf16 %v812_v44, %v811_v16  ;;  %5904 = vmatprep.subr.bf16.mxu0 %v6952_v0 }
 0x1f8   :  { %v650_v50 = vpop.f32.mrb[62].mxu0 }
 0x1f9   :  { %v745_v52 = vadd.f32 %v7400_v57, %v716_v47  ;;  %v717_v53 = vadd.f32 %v650_v50, %v7368_v31  ;;  %v5779_v54 = vpop.f32.mrb[63].mxu0  ;;  %5817 = vmatmul.mubr.msk.bf16.gmra.mrb[96].mxu0 %vm783_vm4, %v847_v49 }
 0x1fa   :  { %5820 = vmatprep.mubr.msk.bf16.mxu0 %vm6954_vm2, %v6952_v0 }
 0x1fb   :  { %v767_v55 = vmax.f32 %v745_v52, 0.0  ;;  %v746_v58 = vadd.f32 %v7400_v57, %v717_v53 }
 0x1fc   :  { %v813_v60 = vld [vmem:[#allocation2 + $0x28] sm:$0xff] }
 0x1fd   :  { %792 = vst.msk [vmem:[#allocation2 + $0x38] sm:$0xff] %vm783_vm4, %v767_v55  ;;  %v768_v26 = vmax.f32 %v746_v58, 0.0  ;;  %v7436_v61 = vpack.c.bf16 %v813_v60, %v812_v44 }
 0x1fe   :  { %v655_v1 = vpop.f32.mrb[64].mxu0  ;;  %v814_v2 = vld [vmem:[#allocation2 + $0x30] sm:$0xff] }
 0x1ff   :  { %793 = vst.msk [vmem:[#allocation2 + $0x40] sm:$0xff] %vm783_vm4, %v768_v26  ;;  %v718_v31 = vadd.f32 %v655_v1, %v7370_v36  ;;  %v5782_v3 = vpop.f32.mrb[65].mxu0  ;;  %v848_v4 = vpack.c.bf16 %v814_v2, %v813_v60 }
 0x200   :  { %v658_v7 = vpop.f32.mrb[66].mxu0 }
 0x201   :  { %v747_v59 = vadd.f32 %v7400_v57, %v718_v31  ;;  %v719_v8 = vadd.f32 %v658_v7, %v7372_v41  ;;  %v5783_v63 = vpop.f32.mrb[67].mxu0  ;;  %5821 = vmatmul.mubr.msk.bf16.gmra.mrb[100].mxu0 %vm783_vm4, %v848_v4 }
 0x202   :  { %5824 = vmatprep.mubr.msk.bf16.mxu0 %vm6954_vm2, %v6952_v0 }
 0x203   :  { %v769_v9 = vmax.f32 %v747_v59, 0.0  ;;  %v748_v10 = vadd.f32 %v7400_v57, %v719_v8 }
 0x204   :  { %v815_v13 = vld [vmem:[#allocation2 + $0x38] sm:$0xff] }
 0x205   :  { %794 = vst.msk [vmem:[#allocation2 + $0x48] sm:$0xff] %vm783_vm4, %v769_v9  ;;  %v770_v36 = vmax.f32 %v748_v10, 0.0  ;;  %v7447_v14 = vpack.c.bf16 %v815_v13, %v814_v2 }
 0x206   :  { %v663_v15 = vpop.f32.mrb[68].mxu0  ;;  %v816_v17 = vld [vmem:[#allocation2 + $0x40] sm:$0xff] }
 0x207   :  { %795 = vst.msk [vmem:[#allocation2 + $0x50] sm:$0xff] %vm783_vm4, %v770_v36  ;;  %v720_v41 = vadd.f32 %v663_v15, %v7374_v46  ;;  %v5786_v19 = vpop.f32.mrb[69].mxu0  ;;  %v849_v20 = vpack.c.bf16 %v816_v17, %v815_v13 }
 0x208   :  { %v666_v22 = vpop.f32.mrb[70].mxu0 }
 0x209   :  { %v749_v25 = vadd.f32 %v7400_v57, %v720_v41  ;;  %v721_v27 = vadd.f32 %v666_v22, %v7376_v51  ;;  %v5787_v6 = vpop.f32.mrb[71].mxu0  ;;  %5825 = vmatmul.mubr.msk.bf16.gmra.mrb[104].mxu0 %vm783_vm4, %v849_v20 }
 0x20a   :  { %5828 = vmatprep.mubr.msk.bf16.mxu0 %vm6954_vm2, %v6952_v0 }
 0x20b   :  { %v771_v28 = vmax.f32 %v749_v25, 0.0  ;;  %v750_v29 = vadd.f32 %v7400_v57, %v721_v27 }
 0x20c   :  { %v817_v11 = vld [vmem:[#allocation2 + $0x48] sm:$0xff] }
 0x20d   :  { %796 = vst.msk [vmem:[#allocation2 + $0x58] sm:$0xff] %vm783_vm4, %v771_v28  ;;  %v772_v46 = vmax.f32 %v750_v29, 0.0  ;;  %v7458_v32 = vpack.c.bf16 %v817_v11, %v816_v17 }
 0x20e   :  { %v671_v33 = vpop.f32.mrb[72].mxu0  ;;  %v818_v34 = vld [vmem:[#allocation2 + $0x50] sm:$0xff] }
 0x20f   :  { %797 = vst.msk [vmem:[#allocation2 + $0x60] sm:$0xff] %vm783_vm4, %v772_v46  ;;  %v722_v51 = vadd.f32 %v671_v33, %v7378_v56  ;;  %v5790_v35 = vpop.f32.mrb[73].mxu0  ;;  %v850_v38 = vpack.c.bf16 %v818_v34, %v817_v11 }
 0x210   :  { %v674_v39 = vpop.f32.mrb[74].mxu0 }
 0x211   :  { %v751_v16 = vadd.f32 %v7400_v57, %v722_v51  ;;  %v723_v40 = vadd.f32 %v674_v39, %v7380_v62  ;;  %v5791_v21 = vpop.f32.mrb[75].mxu0  ;;  %5829 = vmatmul.mubr.msk.bf16.gmra.mrb[108].mxu0 %vm783_vm4, %v850_v38 }
 0x212   :  { %5832 = vmatprep.mubr.msk.bf16.mxu0 %vm6954_vm2, %v6952_v0 }
 0x213   :  { %v773_v44 = vmax.f32 %v751_v16, 0.0  ;;  %v752_v47 = vadd.f32 %v7400_v57, %v723_v40 }
 0x214   :  { %v819_v48 = vld [vmem:[#allocation2 + $0x58] sm:$0xff] }
 0x215   :  { %798 = vst.msk [vmem:[#allocation2 + $0x68] sm:$0xff] %vm783_vm4, %v773_v44  ;;  %v774_v56 = vmax.f32 %v752_v47, 0.0  ;;  %v7469_v49 = vpack.c.bf16 %v819_v48, %v818_v34 }
 0x216   :  { %v679_v50 = vpop.f32.mrb[76].mxu0  ;;  %v820_v52 = vld [vmem:[#allocation2 + $0x60] sm:$0xff] }
 0x217   :  { %799 = vst.msk [vmem:[#allocation2 + $0x70] sm:$0xff] %vm783_vm4, %v774_v56  ;;  %v724_v62 = vadd.f32 %v679_v50, %v7382_v5  ;;  %v5794_v53 = vpop.f32.mrb[77].mxu0  ;;  %v851_v54 = vpack.c.bf16 %v820_v52, %v819_v48 }
 0x218   :  { %v682_v55 = vpop.f32.mrb[78].mxu0 }
 0x219   :  { %v753_v58 = vadd.f32 %v7400_v57, %v724_v62  ;;  %v725_v60 = vadd.f32 %v682_v55, %v7384_v12  ;;  %v5795_v26 = vpop.f32.mrb[79].mxu0  ;;  %5833 = vmatmul.mubr.msk.bf16.gmra.mrb[112].mxu0 %vm783_vm4, %v851_v54  ;;  %v808_v55 = vld [vmem:[#allocation2] sm:$0xff] }
 0x21a   :  { %5836 = vmatprep.mubr.msk.bf16.mxu0 %vm6954_vm2, %v6952_v0  ;;  %v6173_v26 = vld [vmem:[#allocation7 + $0x28] sm:$0xff]  }
 0x21b   :  { %v775_v1 = vmax.f32 %v753_v58, 0.0  ;;  %v754_v2 = vadd.f32 %v7400_v57, %v725_v60  ;;  %v6172_v58 = vld [vmem:[#allocation7 + $0x20] sm:$0xff]   ;;  %v830_v60 = vpack.c.bf16 %v7411_v23, %v808_v55  ;;  %v6174_v23 = vld [vmem:[#allocation10 + $0x20] sm:$0xff]  }
 0x21c   :  { %v821_v31 = vld [vmem:[#allocation2 + $0x68] sm:$0xff] }
 0x21d   :  { %800 = vst.msk [vmem:[#allocation2 + $0x78] sm:$0xff] %vm783_vm4, %v775_v1  ;;  %v776_v5 = vmax.f32 %v754_v2, 0.0  ;;  %v7480_v3 = vpack.c.bf16 %v821_v31, %v820_v52  ;;  %v6175_v2 = vld [vmem:[#allocation10 + $0x28] sm:$0xff]  }
 0x21e   :  { %v687_v4 = vpop.f32.mrb[80].mxu0  ;;  %v822_v7 = vld [vmem:[#allocation2 + $0x70] sm:$0xff] }
 0x21f   :  { %801 = vst.msk [vmem:[#allocation2 + $0x80] sm:$0xff] %vm783_vm4, %v776_v5  ;;  %v726_v12 = vadd.f32 %v687_v4, %v7386_v18  ;;  %v5798_v59 = vpop.f32.mrb[81].mxu0  ;;  %v852_v8 = vpack.c.bf16 %v822_v7, %v821_v31 }
 0x220   :  { %v690_v63 = vpop.f32.mrb[82].mxu0 }
 0x221   :  { %v755_v9 = vadd.f32 %v7400_v57, %v726_v12  ;;  %v727_v10 = vadd.f32 %v690_v63, %v7388_v24  ;;  %v5799_v13 = vpop.f32.mrb[83].mxu0  ;;  %5837 = vmatmul.mubr.msk.bf16.gmra.mrb[116].mxu0 %vm783_vm4, %v852_v8  ;;  %v6176_v63 = vld [vmem:[#allocation10 + $0x30] sm:$0xff]  }
 0x222   :  { %5840 = vmatprep.mubr.msk.bf16.mxu0 %vm6954_vm2, %v6952_v0 }
 0x223   :  { %v777_v36 = vmax.f32 %v755_v9, 0.0  ;;  %v756_v15 = vadd.f32 %v7400_v57, %v727_v10 }
 0x224   :  { %v823_v17 = vld [vmem:[#allocation2 + $0x78] sm:$0xff] }
 0x225   :  { %802 = vst.msk [vmem:[#allocation2 + $0x88] sm:$0xff] %vm783_vm4, %v777_v36  ;;  %v778_v18 = vmax.f32 %v756_v15, 0.0  ;;  %v7491_v41 = vpack.c.bf16 %v823_v17, %v822_v7 }
 0x226   :  { %v695_v19 = vpop.f32.mrb[84].mxu0  ;;  %v824_v20 = vld [vmem:[#allocation2 + $0x80] sm:$0xff] }
 0x227   :  { %803 = vst.msk [vmem:[#allocation2 + $0x90] sm:$0xff] %vm783_vm4, %v778_v18  ;;  %v728_v24 = vadd.f32 %v695_v19, %v7390_v30  ;;  %v5802_v22 = vpop.f32.mrb[85].mxu0  ;;  %v853_v25 = vpack.c.bf16 %v824_v20, %v823_v17 }
 0x228   :  { %v698_v27 = vpop.f32.mrb[86].mxu0 }
 0x229   :  { %v757_v6 = vadd.f32 %v7400_v57, %v728_v24  ;;  %v729_v28 = vadd.f32 %v698_v27, %v7392_v37  ;;  %v5803_v29 = vpop.f32.mrb[87].mxu0  ;;  %5841 = vmatmul.mubr.msk.bf16.gmra.mrb[120].mxu0 %vm783_vm4, %v853_v25  ;;  %v6177_v25 = vld [vmem:[#allocation10 + $0x38] sm:$0xff]  }
 0x22a   :  { %5844 = vmatprep.mubr.msk.bf16.mxu0 %vm6954_vm2, %v6952_v0 }
 0x22b   :  { %v779_v11 = vmax.f32 %v757_v6, 0.0  ;;  %v758_v46 = vadd.f32 %v7400_v57, %v729_v28 }
 0x22c   :  { %v825_v33 = vld [vmem:[#allocation2 + $0x88] sm:$0xff] }
 0x22d   :  { %804 = vst.msk [vmem:[#allocation2 + $0x98] sm:$0xff] %vm783_vm4, %v779_v11  ;;  %v780_v30 = vmax.f32 %v758_v46, 0.0  ;;  %v7502_v34 = vpack.c.bf16 %v825_v33, %v824_v20 }
 0x22e   :  { %v703_v51 = vpop.f32.mrb[88].mxu0  ;;  %v826_v35 = vld [vmem:[#allocation2 + $0x90] sm:$0xff] }
 0x22f   :  { %805 = vst.msk [vmem:[#allocation2 + $0xa0] sm:$0xff] %vm783_vm4, %v780_v30  ;;  %v730_v37 = vadd.f32 %v703_v51, %v7394_v42  ;;  %v5806_v38 = vpop.f32.mrb[89].mxu0  ;;  %v854_v39 = vpack.c.bf16 %v826_v35, %v825_v33 }
 0x230   :  { %v706_v16 = vpop.f32.mrb[90].mxu0 }
 0x231   :  { %v759_v40 = vadd.f32 %v7400_v57, %v730_v37  ;;  %v731_v21 = vadd.f32 %v706_v16, %v7396_v45  ;;  %v5807_v44 = vpop.f32.mrb[91].mxu0  ;;  %5845 = vmatmul.mubr.msk.bf16.gmra.mrb[124].mxu0 %vm783_vm4, %v854_v39 }
 0x232   :  { %5848 = vmatprep.mubr.msk.bf16.mxu0 %vm6954_vm2, %v6952_v0 }
 0x233   :  { %v781_v47 = vmax.f32 %v759_v40, 0.0  ;;  %v760_v48 = vadd.f32 %v7400_v57, %v731_v21 }
 0x234   :  { %v827_v56 = vld [vmem:[#allocation2 + $0x98] sm:$0xff] }
 0x235   :  { %806 = vst.msk [vmem:[#allocation2 + $0xa8] sm:$0xff] %vm783_vm4, %v781_v47  ;;  %v782_v42 = vmax.f32 %v760_v48, 0.0  ;;  %v7513_v50 = vpack.c.bf16 %v827_v56, %v826_v35 }
 0x236   :  { %v828_v52 = vld [vmem:[#allocation2 + $0xa0] sm:$0xff] }
 0x237   :  { %807 = vst.msk [vmem:[#allocation2 + $0xb0] sm:$0xff] %vm783_vm4, %v782_v42  ;;  %v855_v62 = vpack.c.bf16 %v828_v52, %v827_v56 }
 0x239   :  { %5849 = vmatmul.mubr.msk.bf16.gmra.mrb[128].mxu0 %vm783_vm4, %v855_v62 }
 0x23a   :  { %5852 = vmatprep.mubr.msk.bf16.mxu0 %vm6954_vm2, %v6952_v0 }
 0x23c   :  { %v829_v45 = vld [vmem:[#allocation2 + $0xa8] sm:$0xff] }
 0x23d   :  { %v7519_v53 = vpack.c.bf16 %v829_v45, %v828_v52 }
 0x23e   :  { %v7521_v54 = vld [vmem:[#allocation2 + $0xb0] sm:$0xff] }
 0x23f   :  { %v856_v57 = vpack.c.bf16 %v7521_v54, %v829_v45 }
 0x241   :  { %5853 = vmatmul.mubr.msk.bf16.gmra.mrb[132].mxu0 %vm783_vm4, %v856_v57 }
 0x242   :  { %5860 = vmatprep.mubr.msk.bf16.mxu0 %vm6954_vm2, %v6952_v0 }
 0x249   :  { %5861 = vmatmul.mubr.msk.bf16.vlgmr.msra.gmra.mrb[136].mxu0 %vm783_vm4, %v830_v60 }
 0x24a   :  { %5905 = vmatpush3.bf16.msra.mxu0 %v6172_v58  ;;  %5864 = vmatprep.mubr.msk.bf16.mxu0 %vm6954_vm2, %v6952_v0 }
 0x24b   :  { %5906 = vmatprep.subr.bf16.mxu0 %v6952_v0 }
 0x24e   :  { %5907 = vmatpush3.bf16.msra.mxu0 %v6173_v26 }
 0x24f   :  { %5952 = vmatprep.subr.bf16.mxu0 %v6952_v0 }
 0x251   :  { %5865 = vmatmul.mubr.msk.bf16.gmra.mrb[140].mxu0 %vm783_vm4, %v7424_v43 }
 0x252   :  { %5868 = vmatprep.mubr.msk.bf16.mxu0 %vm6954_vm2, %v6952_v0 }
 0x259   :  { %5869 = vmatmul.mubr.msk.bf16.gmra.mrb[144].mxu0 %vm783_vm4, %v7436_v61 }
 0x25a   :  { %5872 = vmatprep.mubr.msk.bf16.mxu0 %vm6954_vm2, %v6952_v0 }
 0x261   :  { %5873 = vmatmul.mubr.msk.bf16.gmra.mrb[148].mxu0 %vm783_vm4, %v7447_v14 }
 0x262   :  { %5876 = vmatprep.mubr.msk.bf16.mxu0 %vm6954_vm2, %v6952_v0 }
 0x269   :  { %5877 = vmatmul.mubr.msk.bf16.gmra.mrb[152].mxu0 %vm783_vm4, %v7458_v32 }
 0x26a   :  { %5880 = vmatprep.mubr.msk.bf16.mxu0 %vm6954_vm2, %v6952_v0 }
 0x271   :  { %5881 = vmatmul.mubr.msk.bf16.gmra.mrb[156].mxu0 %vm783_vm4, %v7469_v49 }
 0x272   :  { %5884 = vmatprep.mubr.msk.bf16.mxu0 %vm6954_vm2, %v6952_v0 }
 0x279   :  { %5885 = vmatmul.mubr.msk.bf16.gmra.mrb[160].mxu0 %vm783_vm4, %v7480_v3 }
 0x27a   :  { %5888 = vmatprep.mubr.msk.bf16.mxu0 %vm6954_vm2, %v6952_v0 }
 0x281   :  { %5889 = vmatmul.mubr.msk.bf16.gmra.mrb[164].mxu0 %vm783_vm4, %v7491_v41 }
 0x282   :  { %5892 = vmatprep.mubr.msk.bf16.mxu0 %vm6954_vm2, %v6952_v0 }
 0x289   :  { %5893 = vmatmul.mubr.msk.bf16.gmra.mrb[168].mxu0 %vm783_vm4, %v7502_v34 }
 0x28a   :  { %5896 = vmatprep.mubr.msk.bf16.mxu0 %vm6954_vm2, %v6952_v0 }
 0x291   :  { %5897 = vmatmul.mubr.msk.bf16.gmra.mrb[172].mxu0 %vm783_vm4, %v7513_v50 }
 0x292   :  { %5900 = vmatprep.mubr.msk.bf16.mxu0 %vm6954_vm2, %v6952_v0 }
 0x299   :  { %5901 = vmatmul.mubr.msk.bf16.gmra.mrb[176].mxu0 %vm783_vm4, %v7519_v53 }
 0x29a   :  { %5908 = vmatprep.mubr.msk.bf16.mxu0 %vm6954_vm2, %v6952_v0 }
 0x2a1   :  { %5909 = vmatmul.mubr.msk.bf16.vlgmr.msra.gmra.mrb[180].mxu0 %vm783_vm4, %v7424_v43 }
 0x2a2   :  { %5912 = vmatprep.mubr.msk.bf16.mxu0 %vm6954_vm2, %v6952_v0  ;;  %5953 = vmatpush3.bf16.msra.mxu0 %v6174_v23 }
 0x2a3   :  { %5954 = vmatprep.subr.bf16.mxu0 %v6952_v0 }
 0x2a6   :  { %5955 = vmatpush3.bf16.msra.mxu0 %v6175_v2 }
 0x2a7   :  { %5956 = vmatprep.subr.bf16.mxu0 %v6952_v0 }
 0x2a9   :  { %5913 = vmatmul.mubr.msk.bf16.gmra.mrb[184].mxu0 %vm783_vm4, %v7436_v61 }
 0x2aa   :  { %5916 = vmatprep.mubr.msk.bf16.mxu0 %vm6954_vm2, %v6952_v0  ;;  %5957 = vmatpush3.bf16.msra.mxu0 %v6176_v63 }
 0x2ab   :  { %5958 = vmatprep.subr.bf16.mxu0 %v6952_v0 }
 0x2ae   :  { %5959 = vmatpush3.bf16.msra.mxu0 %v6177_v25 }
 0x2af   :  { %6004 = vmatprep.subr.bf16.mxu0 %v6952_v0 }
 0x2b1   :  { %5917 = vmatmul.mubr.msk.bf16.gmra.mrb[188].mxu0 %vm783_vm4, %v7447_v14 }
 0x2b2   :  { %5920 = vmatprep.mubr.msk.bf16.mxu0 %vm6954_vm2, %v6952_v0 }
 0x2b9   :  { %5921 = vmatmul.mubr.msk.bf16.gmra.mrb[192].mxu0 %vm783_vm4, %v7458_v32 }
 0x2ba   :  { %5924 = vmatprep.mubr.msk.bf16.mxu0 %vm6954_vm2, %v6952_v0 }
 0x2c1   :  { %5925 = vmatmul.mubr.msk.bf16.gmra.mrb[196].mxu0 %vm783_vm4, %v7469_v49 }
 0x2c2   :  { %5928 = vmatprep.mubr.msk.bf16.mxu0 %vm6954_vm2, %v6952_v0 }
 0x2c4   :  { %v7594_v43 = vpop.f32.mrb[92].mxu0 }
 0x2c5   :  { %v5814_v61 = vpop.f32.mrb[93].mxu0 }
 0x2c6   :  { %v7596_v14 = vpop.f32.mrb[94].mxu0 }
 0x2c7   :  { %v5815_v1 = vpop.f32.mrb[95].mxu0 }
 0x2c9   :  { %5929 = vmatmul.mubr.msk.bf16.gmra.mrb[200].mxu0 %vm783_vm4, %v7480_v3 }
 0x2ca   :  { %5932 = vmatprep.mubr.msk.bf16.mxu0 %vm6954_vm2, %v6952_v0 }
 0x2cc   :  { %v7603_v32 = vpop.f32.mrb[96].mxu0 }
 0x2cd   :  { %v5818_v49 = vpop.f32.mrb[97].mxu0 }
 0x2ce   :  { %v7605_v31 = vpop.f32.mrb[98].mxu0 }
 0x2cf   :  { %v5819_v5 = vpop.f32.mrb[99].mxu0 }
 0x2d1   :  { %5933 = vmatmul.mubr.msk.bf16.gmra.mrb[204].mxu0 %vm783_vm4, %v7491_v41  ;;  %v1215_v41 = vld [vmem:[#allocation2 + $0xb8] sm:$0xff] }
 0x2d2   :  { %5936 = vmatprep.mubr.msk.bf16.mxu0 %vm6954_vm2, %v6952_v0  ;;  %v1226_v22 = vpack.c.bf16 %v1215_v41, %v7521_v54 }
 0x2d4   :  { %v7611_v4 = vpop.f32.mrb[100].mxu0 }
 0x2d5   :  { %v5822_v3 = vpop.f32.mrb[101].mxu0 }
 0x2d6   :  { %v7613_v7 = vpop.f32.mrb[102].mxu0 }
 0x2d7   :  { %v5823_v12 = vpop.f32.mrb[103].mxu0 }
 0x2d9   :  { %5937 = vmatmul.mubr.msk.bf16.gmra.mrb[208].mxu0 %vm783_vm4, %v7502_v34 }
 0x2da   :  { %5940 = vmatprep.mubr.msk.bf16.mxu0 %vm6954_vm2, %v6952_v0 }
 0x2dc   :  { %v7619_v59 = vpop.f32.mrb[104].mxu0 }
 0x2dd   :  { %v5826_v8 = vpop.f32.mrb[105].mxu0 }
 0x2de   :  { %v7621_v9 = vpop.f32.mrb[106].mxu0 }
 0x2df   :  { %v5827_v10 = vpop.f32.mrb[107].mxu0 }
 0x2e1   :  { %5941 = vmatmul.mubr.msk.bf16.gmra.mrb[212].mxu0 %vm783_vm4, %v7513_v50 }
 0x2e2   :  { %5944 = vmatprep.mubr.msk.bf16.mxu0 %vm6954_vm2, %v6952_v0 }
 0x2e4   :  { %v7628_v13 = vpop.f32.mrb[108].mxu0 }
 0x2e5   :  { %v5830_v36 = vpop.f32.mrb[109].mxu0 }
 0x2e6   :  { %v7630_v15 = vpop.f32.mrb[110].mxu0 }
 0x2e7   :  { %v5831_v17 = vpop.f32.mrb[111].mxu0 }
 0x2e9   :  { %5945 = vmatmul.mubr.msk.bf16.gmra.mrb[216].mxu0 %vm783_vm4, %v7519_v53 }
 0x2ea   :  { %5948 = vmatprep.mubr.msk.bf16.mxu0 %vm6954_vm2, %v6952_v0 }
 0x2ec   :  { %v7636_v18 = vpop.f32.mrb[112].mxu0 }
 0x2ed   :  { %v5834_v19 = vpop.f32.mrb[113].mxu0 }
 0x2ee   :  { %v7638_v20 = vpop.f32.mrb[114].mxu0 }
 0x2ef   :  { %v5835_v24 = vpop.f32.mrb[115].mxu0 }
 0x2f1   :  { %5949 = vmatmul.mubr.msk.bf16.gmra.mrb[220].mxu0 %vm783_vm4, %v1226_v22 }
 0x2f2   :  { %5960 = vmatprep.mubr.msk.bf16.mxu0 %vm6954_vm2, %v6952_v0 }
 0x2f4   :  { %v989_v27 = vpop.f32.mrb[116].mxu0 }
 0x2f5   :  { %v5838_v6 = vpop.f32.mrb[117].mxu0 }
 0x2f6   :  { %v992_v28 = vpop.f32.mrb[118].mxu0 }
 0x2f7   :  { %v5839_v29 = vpop.f32.mrb[119].mxu0 }
 0x2fc   :  { %v997_v11 = vpop.f32.mrb[120].mxu0 }
 0x2fd   :  { %v5842_v46 = vpop.f32.mrb[121].mxu0 }
 0x2fe   :  { %v1000_v33 = vpop.f32.mrb[122].mxu0 }
 0x2ff   :  { %v5843_v30 = vpop.f32.mrb[123].mxu0 }
 0x304   :  { %v1005_v34 = vpop.f32.mrb[124].mxu0 }
 0x305   :  { %v5846_v51 = vpop.f32.mrb[125].mxu0 }
 0x306   :  { %v1008_v35 = vpop.f32.mrb[126].mxu0 }
 0x307   :  { %v5847_v37 = vpop.f32.mrb[127].mxu0 }
 0x30c   :  { %v7649_v38 = vpop.f32.mrb[128].mxu0 }
 0x30d   :  { %v5850_v39 = vpop.f32.mrb[129].mxu0 }
 0x30e   :  { %v7651_v16 = vpop.f32.mrb[130].mxu0 }
 0x30f   :  { %v5851_v40 = vpop.f32.mrb[131].mxu0 }
 0x314   :  { %v7653_v21 = vpop.f32.mrb[132].mxu0 }
 0x315   :  { %v5854_v44 = vpop.f32.mrb[133].mxu0 }
 0x316   :  { %v7655_v47 = vpop.f32.mrb[134].mxu0 }
 0x317   :  { %v5855_v48 = vpop.f32.mrb[135].mxu0 }
 0x31c   :  { %v1107_v56 = vpop.f32.mrb[136].mxu0 }
 0x31d   :  { %v7658_v42 = vadd.f32 %v1107_v56, %v7594_v43  ;;  %v5862_v50 = vpop.f32.mrb[137].mxu0 }
 0x31e   :  { %v1110_v52 = vpop.f32.mrb[138].mxu0 }
 0x31f   :  { %v7661_v62 = vadd.f32 %v1110_v52, %v7596_v14  ;;  %v5863_v45 = vpop.f32.mrb[139].mxu0 }
 0x324   :  { %v1115_v53 = vpop.f32.mrb[140].mxu0 }
 0x325   :  { %v7664_v54 = vadd.f32 %v1115_v53, %v7603_v32  ;;  %v5866_v57 = vpop.f32.mrb[141].mxu0 }
 0x326   :  { %v1118_v55 = vpop.f32.mrb[142].mxu0 }
 0x327   :  { %v7667_v58 = vadd.f32 %v1118_v55, %v7605_v31  ;;  %v5867_v60 = vpop.f32.mrb[143].mxu0 }
 0x32c   :  { %v1123_v26 = vpop.f32.mrb[144].mxu0 }
 0x32d   :  { %v7670_v23 = vadd.f32 %v1123_v26, %v7611_v4  ;;  %v5870_v43 = vpop.f32.mrb[145].mxu0  ;;  %v7717_v26 = vld [vmem:[#allocation9] ss:$0 sm:$0xff] }
 0x32e   :  { %v1126_v61 = vpop.f32.mrb[146].mxu0 }
 0x32f   :  { %v7673_v14 = vadd.f32 %v1126_v61, %v7613_v7  ;;  %v5871_v1 = vpop.f32.mrb[147].mxu0 }
 0x334   :  { %v1131_v2 = vpop.f32.mrb[148].mxu0 }
 0x335   :  { %v7676_v32 = vadd.f32 %v1131_v2, %v7619_v59  ;;  %v5874_v49 = vpop.f32.mrb[149].mxu0 }
 0x336   :  { %v1134_v5 = vpop.f32.mrb[150].mxu0 }
 0x337   :  { %v7679_v31 = vadd.f32 %v1134_v5, %v7621_v9  ;;  %v5875_v3 = vpop.f32.mrb[151].mxu0 }
 0x33c   :  { %v1139_v12 = vpop.f32.mrb[152].mxu0 }
 0x33d   :  { %v7682_v4 = vadd.f32 %v1139_v12, %v7628_v13  ;;  %v5878_v8 = vpop.f32.mrb[153].mxu0 }
 0x33e   :  { %v1142_v63 = vpop.f32.mrb[154].mxu0 }
 0x33f   :  { %v7685_v7 = vadd.f32 %v1142_v63, %v7630_v15  ;;  %v5879_v10 = vpop.f32.mrb[155].mxu0 }
 0x344   :  { %v1147_v36 = vpop.f32.mrb[156].mxu0 }
 0x345   :  { %v7688_v59 = vadd.f32 %v1147_v36, %v7636_v18  ;;  %v5882_v17 = vpop.f32.mrb[157].mxu0 }
 0x346   :  { %v1150_v41 = vpop.f32.mrb[158].mxu0 }
 0x347   :  { %v7691_v9 = vadd.f32 %v1150_v41, %v7638_v20  ;;  %v5883_v19 = vpop.f32.mrb[159].mxu0 }
 0x34c   :  { %v1155_v24 = vpop.f32.mrb[160].mxu0 }
 0x34d   :  { %v7693_v22 = vadd.f32 %v1155_v24, %v989_v27  ;;  %v5886_v13 = vpop.f32.mrb[161].mxu0 }
 0x34e   :  { %v1158_v25 = vpop.f32.mrb[162].mxu0  ;;  %v6178_v13 = vld [vmem:[#allocation10] sm:$0xff]  }
 0x34f   :  { %v7695_v6 = vadd.f32 %v1158_v25, %v992_v28  ;;  %v5887_v15 = vpop.f32.mrb[163].mxu0 }
 0x354   :  { %v1163_v29 = vpop.f32.mrb[164].mxu0 }
 0x355   :  { %v7697_v46 = vadd.f32 %v1163_v29, %v997_v11  ;;  %v5890_v30 = vpop.f32.mrb[165].mxu0 }
 0x356   :  { %v1166_v18 = vpop.f32.mrb[166].mxu0 }
 0x357   :  { %v7699_v51 = vadd.f32 %v1166_v18, %v1000_v33  ;;  %v5891_v37 = vpop.f32.mrb[167].mxu0 }
 0x358   :  { %v6179_v37 = vld [vmem:[#allocation10 + $0x8] sm:$0xff]  }
 0x35c   :  { %v1171_v39 = vpop.f32.mrb[168].mxu0 }
 0x35d   :  { %v7701_v20 = vadd.f32 %v1171_v39, %v1005_v34  ;;  %v5894_v40 = vpop.f32.mrb[169].mxu0 }
 0x35e   :  { %v1174_v44 = vpop.f32.mrb[170].mxu0 }
 0x35f   :  { %v7703_v27 = vadd.f32 %v1174_v44, %v1008_v35  ;;  %v5895_v48 = vpop.f32.mrb[171].mxu0 }
 0x364   :  { %v1179_v56 = vpop.f32.mrb[172].mxu0 }
 0x365   :  { %v7706_v28 = vadd.f32 %v1179_v56, %v7649_v38  ;;  %v5898_v50 = vpop.f32.mrb[173].mxu0 }
 0x366   :  { %v1182_v11 = vpop.f32.mrb[174].mxu0  ;;  %v6180_v50 = vld [vmem:[#allocation10 + $0x10] sm:$0xff]  }
 0x367   :  { %v7709_v52 = vadd.f32 %v1182_v11, %v7651_v16  ;;  %v5899_v33 = vpop.f32.mrb[175].mxu0 }
 0x36c   :  { %v1187_v45 = vpop.f32.mrb[176].mxu0 }
 0x36d   :  { %v7712_v53 = vadd.f32 %v1187_v45, %v7653_v21  ;;  %v5902_v34 = vpop.f32.mrb[177].mxu0 }
 0x36e   :  { %v1190_v57 = vpop.f32.mrb[178].mxu0 }
 0x36f   :  { %v7715_v35 = vadd.f32 %v1190_v57, %v7655_v47  ;;  %v5903_v55 = vpop.f32.mrb[179].mxu0 }
 0x374   :  { %v1311_v60 = vpop.f32.mrb[180].mxu0 }
 0x375   :  { %v1398_v38 = vadd.f32 %v1311_v60, %v7658_v42  ;;  %v5910_v43 = vpop.f32.mrb[181].mxu0 }
 0x376   :  { %v1314_v61 = vpop.f32.mrb[182].mxu0 }
 0x377   :  { %v1427_v16 = vadd.f32 %v7717_v26, %v1398_v38  ;;  %v1399_v1 = vadd.f32 %v1314_v61, %v7661_v62  ;;  %v5911_v2 = vpop.f32.mrb[183].mxu0  ;;  %v6181_v38 = vld [vmem:[#allocation10 + $0x18] sm:$0xff]  }
 0x379   :  { %v1449_v21 = vmax.f32 %v1427_v16, 0.0  ;;  %v1428_v49 = vadd.f32 %v7717_v26, %v1399_v1 }
 0x37b   :  { %1474 = vst.msk [vmem:[#allocation3 + $0x8] sm:$0xff] %vm1471_vm5, %v1449_v21  ;;  %v1450_v47 = vmax.f32 %v1428_v49, 0.0 }
 0x37c   :  { %v1319_v5 = vpop.f32.mrb[184].mxu0 }
 0x37d   :  { %1475 = vst.msk [vmem:[#allocation3 + $0x10] sm:$0xff] %vm1471_vm5, %v1450_v47  ;;  %v1400_v3 = vadd.f32 %v1319_v5, %v7664_v54  ;;  %v5914_v12 = vpop.f32.mrb[185].mxu0 }
 0x37e   :  { %v1322_v42 = vpop.f32.mrb[186].mxu0 }
 0x37f   :  { %v1429_v8 = vadd.f32 %v7717_v26, %v1400_v3  ;;  %v1401_v63 = vadd.f32 %v1322_v42, %v7667_v58  ;;  %v5915_v10 = vpop.f32.mrb[187].mxu0 }
 0x381   :  { %v1451_v62 = vmax.f32 %v1429_v8, 0.0  ;;  %v1430_v36 = vadd.f32 %v7717_v26, %v1401_v63 }
 0x382   :  { %v7730_v24 = vld [vmem:[#allocation3 + $0x8] sm:$0xff] }
 0x383   :  { %1476 = vst.msk [vmem:[#allocation3 + $0x18] sm:$0xff] %vm1471_vm5, %v1451_v62  ;;  %v1452_v17 = vmax.f32 %v1430_v36, 0.0 }
 0x384   :  { %v1914_v41 = vld [vmem:[#allocation3 + $0x10] sm:$0xff]  ;;  %v1327_v19 = vpop.f32.mrb[188].mxu0 }
 0x385   :  { %1477 = vst.msk [vmem:[#allocation3 + $0x20] sm:$0xff] %vm1471_vm5, %v1452_v17  ;;  %v1402_v54 = vadd.f32 %v1327_v19, %v7670_v23  ;;  %v5918_v25 = vpop.f32.mrb[189].mxu0  ;;  %v1538_v15 = vpack.c.bf16 %v1914_v41, %v7730_v24 }
 0x386   :  { %v1330_v58 = vpop.f32.mrb[190].mxu0 }
 0x387   :  { %v1431_v29 = vadd.f32 %v7717_v26, %v1402_v54  ;;  %v1403_v30 = vadd.f32 %v1330_v58, %v7673_v14  ;;  %v5919_v18 = vpop.f32.mrb[191].mxu0  ;;  %5961 = vmatmul.mubr.msk.bf16.vlgmr.msra.gmra.mrb[224].mxu0 %vm1471_vm5, %v1538_v15 }
 0x388   :  { %6005 = vmatpush3.bf16.msra.mxu0 %v6178_v13  ;;  %5964 = vmatprep.mubr.msk.bf16.mxu0 %vm6954_vm2, %v6952_v0 }
 0x389   :  { %v1453_v39 = vmax.f32 %v1431_v29, 0.0  ;;  %v1432_v40 = vadd.f32 %v7717_v26, %v1403_v30  ;;  %6006 = vmatprep.subr.bf16.mxu0 %v6952_v0 }
 0x38a   :  { %v1915_v23 = vld [vmem:[#allocation3 + $0x18] sm:$0xff] }
 0x38b   :  { %v7742_v44 = vpack.c.bf16 %v1915_v23, %v1914_v41  ;;  %1478 = vst.msk [vmem:[#allocation3 + $0x28] sm:$0xff] %vm1471_vm5, %v1453_v39  ;;  %v1454_v48 = vmax.f32 %v1432_v40, 0.0 }
 0x38c   :  { %v1335_v14 = vpop.f32.mrb[192].mxu0  ;;  %v1500_v56 = vld [vmem:[#allocation3 + $0x20] sm:$0xff]  ;;  %6007 = vmatpush3.bf16.msra.mxu0 %v6179_v37 }
 0x38d   :  { %1479 = vst.msk [vmem:[#allocation3 + $0x30] sm:$0xff] %vm1471_vm5, %v1454_v48  ;;  %v1404_v11 = vadd.f32 %v1335_v14, %v7676_v32  ;;  %v5922_v33 = vpop.f32.mrb[193].mxu0  ;;  %v1539_v45 = vpack.c.bf16 %v1500_v56, %v1915_v23  ;;  %6008 = vmatprep.subr.bf16.mxu0 %v6952_v0 }
 0x38e   :  { %v1338_v34 = vpop.f32.mrb[194].mxu0 }
 0x38f   :  { %v1433_v57 = vadd.f32 %v7717_v26, %v1404_v11  ;;  %v1405_v55 = vadd.f32 %v1338_v34, %v7679_v31  ;;  %v5923_v60 = vpop.f32.mrb[195].mxu0  ;;  %5965 = vmatmul.mubr.msk.bf16.gmra.mrb[228].mxu0 %vm1471_vm5, %v1539_v45 }
 0x390   :  { %5968 = vmatprep.mubr.msk.bf16.mxu0 %vm6954_vm2, %v6952_v0  ;;  %6009 = vmatpush3.bf16.msra.mxu0 %v6180_v50 }
 0x391   :  { %v1455_v43 = vmax.f32 %v1433_v57, 0.0  ;;  %v1434_v32 = vadd.f32 %v7717_v26, %v1405_v55  ;;  %6010 = vmatprep.subr.bf16.mxu0 %v6952_v0 }
 0x392   :  { %v1501_v61 = vld [vmem:[#allocation3 + $0x28] sm:$0xff] }
 0x393   :  { %1480 = vst.msk [vmem:[#allocation3 + $0x38] sm:$0xff] %vm1471_vm5, %v1455_v43  ;;  %v1456_v16 = vmax.f32 %v1434_v32, 0.0  ;;  %v7756_v1 = vpack.c.bf16 %v1501_v61, %v1500_v56 }
 0x394   :  { %v1343_v31 = vpop.f32.mrb[196].mxu0  ;;  %v1502_v2 = vld [vmem:[#allocation3 + $0x30] sm:$0xff]  ;;  %6011 = vmatpush3.bf16.msra.mxu0 %v6181_v38 }
 0x395   :  { %1481 = vst.msk [vmem:[#allocation3 + $0x40] sm:$0xff] %vm1471_vm5, %v1456_v16  ;;  %v1406_v21 = vadd.f32 %v1343_v31, %v7682_v4  ;;  %v5926_v49 = vpop.f32.mrb[197].mxu0  ;;  %v1540_v47 = vpack.c.bf16 %v1502_v2, %v1501_v61  ;;  %6056 = vmatprep.subr.bf16.mxu0 %v6952_v0 }
 0x396   :  { %v1346_v5 = vpop.f32.mrb[198].mxu0 }
 0x397   :  { %v1435_v3 = vadd.f32 %v7717_v26, %v1406_v21  ;;  %v1407_v12 = vadd.f32 %v1346_v5, %v7685_v7  ;;  %v5927_v42 = vpop.f32.mrb[199].mxu0  ;;  %5969 = vmatmul.mubr.msk.bf16.gmra.mrb[232].mxu0 %vm1471_vm5, %v1540_v47 }
 0x398   :  { %5972 = vmatprep.mubr.msk.bf16.mxu0 %vm6954_vm2, %v6952_v0 }
 0x399   :  { %v1457_v8 = vmax.f32 %v1435_v3, 0.0  ;;  %v1436_v63 = vadd.f32 %v7717_v26, %v1407_v12 }
 0x39a   :  { %v1503_v10 = vld [vmem:[#allocation3 + $0x38] sm:$0xff] }
 0x39b   :  { %1482 = vst.msk [vmem:[#allocation3 + $0x48] sm:$0xff] %vm1471_vm5, %v1457_v8  ;;  %v1458_v4 = vmax.f32 %v1436_v63, 0.0  ;;  %v7768_v62 = vpack.c.bf16 %v1503_v10, %v1502_v2 }
 0x39c   :  { %v1351_v36 = vpop.f32.mrb[200].mxu0  ;;  %v1504_v17 = vld [vmem:[#allocation3 + $0x40] sm:$0xff] }
 0x39d   :  { %1483 = vst.msk [vmem:[#allocation3 + $0x50] sm:$0xff] %vm1471_vm5, %v1458_v4  ;;  %v1408_v7 = vadd.f32 %v1351_v36, %v7688_v59  ;;  %v5930_v41 = vpop.f32.mrb[201].mxu0  ;;  %v1541_v19 = vpack.c.bf16 %v1504_v17, %v1503_v10 }
 0x39e   :  { %v1354_v13 = vpop.f32.mrb[202].mxu0 }
 0x39f   :  { %v1437_v54 = vadd.f32 %v7717_v26, %v1408_v7  ;;  %v1409_v25 = vadd.f32 %v1354_v13, %v7691_v9  ;;  %v5931_v15 = vpop.f32.mrb[203].mxu0  ;;  %5973 = vmatmul.mubr.msk.bf16.gmra.mrb[236].mxu0 %vm1471_vm5, %v1541_v19 }
 0x3a0   :  { %5976 = vmatprep.mubr.msk.bf16.mxu0 %vm6954_vm2, %v6952_v0 }
 0x3a1   :  { %v1459_v58 = vmax.f32 %v1437_v54, 0.0  ;;  %v1438_v29 = vadd.f32 %v7717_v26, %v1409_v25 }
 0x3a2   :  { %v1505_v30 = vld [vmem:[#allocation3 + $0x48] sm:$0xff] }
 0x3a3   :  { %1484 = vst.msk [vmem:[#allocation3 + $0x58] sm:$0xff] %vm1471_vm5, %v1459_v58  ;;  %v1460_v59 = vmax.f32 %v1438_v29, 0.0  ;;  %v7779_v18 = vpack.c.bf16 %v1505_v30, %v1504_v17 }
 0x3a4   :  { %v1359_v37 = vpop.f32.mrb[204].mxu0  ;;  %v1506_v39 = vld [vmem:[#allocation3 + $0x50] sm:$0xff] }
 0x3a5   :  { %1485 = vst.msk [vmem:[#allocation3 + $0x60] sm:$0xff] %vm1471_vm5, %v1460_v59  ;;  %v1410_v9 = vadd.f32 %v1359_v37, %v7693_v22  ;;  %v5934_v40 = vpop.f32.mrb[205].mxu0  ;;  %v1542_v23 = vpack.c.bf16 %v1506_v39, %v1505_v30 }
 0x3a6   :  { %v1362_v48 = vpop.f32.mrb[206].mxu0 }
 0x3a7   :  { %v1439_v14 = vadd.f32 %v7717_v26, %v1410_v9  ;;  %v1411_v56 = vadd.f32 %v1362_v48, %v7695_v6  ;;  %v5935_v50 = vpop.f32.mrb[207].mxu0  ;;  %5977 = vmatmul.mubr.msk.bf16.gmra.mrb[240].mxu0 %vm1471_vm5, %v1542_v23 }
 0x3a8   :  { %5980 = vmatprep.mubr.msk.bf16.mxu0 %vm6954_vm2, %v6952_v0 }
 0x3a9   :  { %v1461_v11 = vmax.f32 %v1439_v14, 0.0  ;;  %v1440_v33 = vadd.f32 %v7717_v26, %v1411_v56 }
 0x3aa   :  { %v1507_v45 = vld [vmem:[#allocation3 + $0x58] sm:$0xff] }
 0x3ab   :  { %1486 = vst.msk [vmem:[#allocation3 + $0x68] sm:$0xff] %vm1471_vm5, %v1461_v11  ;;  %v1462_v22 = vmax.f32 %v1440_v33, 0.0  ;;  %v7790_v34 = vpack.c.bf16 %v1507_v45, %v1506_v39 }
 0x3ac   :  { %v1367_v57 = vpop.f32.mrb[208].mxu0  ;;  %v1508_v55 = vld [vmem:[#allocation3 + $0x60] sm:$0xff] }
 0x3ad   :  { %1487 = vst.msk [vmem:[#allocation3 + $0x70] sm:$0xff] %vm1471_vm5, %v1462_v22  ;;  %v1412_v6 = vadd.f32 %v1367_v57, %v7697_v46  ;;  %v5938_v60 = vpop.f32.mrb[209].mxu0  ;;  %v1543_v38 = vpack.c.bf16 %v1508_v55, %v1507_v45 }
 0x3ae   :  { %v1370_v43 = vpop.f32.mrb[210].mxu0 }
 0x3af   :  { %v1441_v32 = vadd.f32 %v7717_v26, %v1412_v6  ;;  %v1413_v61 = vadd.f32 %v1370_v43, %v7699_v51  ;;  %v5939_v16 = vpop.f32.mrb[211].mxu0  ;;  %5981 = vmatmul.mubr.msk.bf16.gmra.mrb[244].mxu0 %vm1471_vm5, %v1543_v38  ;;  %v1496_v43 = vld [vmem:[#allocation3] sm:$0xff] }
 0x3b0   :  { %5984 = vmatprep.mubr.msk.bf16.mxu0 %vm6954_vm2, %v6952_v0  ;;  %v6183_v16 = vld [vmem:[#allocation10 + $0x48] sm:$0xff]  }
 0x3b1   :  { %v1463_v31 = vmax.f32 %v1441_v32, 0.0  ;;  %v1442_v2 = vadd.f32 %v7717_v26, %v1413_v61  ;;  %v6182_v32 = vld [vmem:[#allocation10 + $0x40] sm:$0xff]   ;;  %v1518_v61 = vpack.c.bf16 %v7730_v24, %v1496_v43  ;;  %v6185_v24 = vld [vmem:[#allocation10 + $0x58] sm:$0xff]  }
 0x3b2   :  { %v1509_v21 = vld [vmem:[#allocation3 + $0x68] sm:$0xff] }
 0x3b3   :  { %1488 = vst.msk [vmem:[#allocation3 + $0x78] sm:$0xff] %vm1471_vm5, %v1463_v31  ;;  %v1464_v46 = vmax.f32 %v1442_v2, 0.0  ;;  %v7801_v49 = vpack.c.bf16 %v1509_v21, %v1508_v55  ;;  %v6184_v31 = vld [vmem:[#allocation10 + $0x50] sm:$0xff]   ;;  %v6186_v2 = vld [vmem:[#allocation13] ss:$8 sps:$4 sm:$0xff]  }
 0x3b4   :  { %v1375_v47 = vpop.f32.mrb[212].mxu0  ;;  %v1510_v5 = vld [vmem:[#allocation3 + $0x70] sm:$0xff] }
 0x3b5   :  { %1489 = vst.msk [vmem:[#allocation3 + $0x80] sm:$0xff] %vm1471_vm5, %v1464_v46  ;;  %v1414_v51 = vadd.f32 %v1375_v47, %v7701_v20  ;;  %v5942_v3 = vpop.f32.mrb[213].mxu0  ;;  %v1544_v12 = vpack.c.bf16 %v1510_v5, %v1509_v21  ;;  %v6188_v21 = vld [vmem:[#allocation13 + $0x4] ss:$8 sps:$4 sm:$0xff]   ;;  %v6191_v46 = vld [vmem:[#allocation13 + $0x14] ss:$8 sps:$4 sm:$0xff]  }
 0x3b6   :  { %v1378_v42 = vpop.f32.mrb[214].mxu0  ;;  %4397 = vmatprep.subr.bf16.mxu1 %v6188_v21  ;;  %v6194_v47 = vld [vmem:[#allocation13 + $0x24] ss:$8 sps:$4 sm:$0xff]  }
 0x3b7   :  { %v1443_v8 = vadd.f32 %v7717_v26, %v1414_v51  ;;  %v1415_v63 = vadd.f32 %v1378_v42, %v7703_v27  ;;  %v5943_v10 = vpop.f32.mrb[215].mxu0  ;;  %5985 = vmatmul.mubr.msk.bf16.gmra.mrb[248].mxu0 %vm1471_vm5, %v1544_v12  ;;  %4398 = vmatpush1.bf16.msra.mxu1 %v6186_v2  ;;  %v6198_v12 = vld [vmem:[#allocation13 + $0x40] ss:$8 sps:$4 sm:$0xff]   ;;  %v6236_v2 = vld [vmem:[#allocation13 + $0x104] ss:$8 sps:$4 sm:$0xff]  }
 0x3b8   :  { %5988 = vmatprep.mubr.msk.bf16.mxu0 %vm6954_vm2, %v6952_v0  ;;  %4399 = vmatprep.subr.bf16.mxu1 %v6191_v46  ;;  %v6201_v10 = vld [vmem:[#allocation13 + $0x50] ss:$8 sps:$4 sm:$0xff]  }
 0x3b9   :  { %v1465_v4 = vmax.f32 %v1443_v8, 0.0  ;;  %v1444_v36 = vadd.f32 %v7717_v26, %v1415_v63  ;;  %v6203_v63 = vld [vmem:[#allocation13 + $0x54] ss:$8 sps:$4 sm:$0xff]  }
 0x3ba   :  { %v1511_v17 = vld [vmem:[#allocation3 + $0x78] sm:$0xff] }
 0x3bb   :  { %1490 = vst.msk [vmem:[#allocation3 + $0x88] sm:$0xff] %vm1471_vm5, %v1465_v4  ;;  %v1466_v20 = vmax.f32 %v1444_v36, 0.0  ;;  %v7812_v7 = vpack.c.bf16 %v1511_v17, %v1510_v5  ;;  %v6192_v5 = vld [vmem:[#allocation13 + $0x20] ss:$8 sps:$4 sm:$0xff]  }
 0x3bc   :  { %v1383_v41 = vpop.f32.mrb[216].mxu0  ;;  %v1512_v19 = vld [vmem:[#allocation3 + $0x80] sm:$0xff] }
 0x3bd   :  { %1491 = vst.msk [vmem:[#allocation3 + $0x90] sm:$0xff] %vm1471_vm5, %v1466_v20  ;;  %v1416_v27 = vadd.f32 %v1383_v41, %v7706_v28  ;;  %v5946_v13 = vpop.f32.mrb[217].mxu0  ;;  %v1545_v54 = vpack.c.bf16 %v1512_v19, %v1511_v17  ;;  %v6204_v20 = vld [vmem:[#allocation13 + $0x60] ss:$8 sps:$4 sm:$0xff]   ;;  %v6206_v41 = vld [vmem:[#allocation13 + $0x64] ss:$8 sps:$4 sm:$0xff]  }
 0x3be   :  { %v1386_v25 = vpop.f32.mrb[218].mxu0 }
 0x3bf   :  { %v1445_v15 = vadd.f32 %v7717_v26, %v1416_v27  ;;  %v1417_v58 = vadd.f32 %v1386_v25, %v7709_v52  ;;  %v5947_v29 = vpop.f32.mrb[219].mxu0  ;;  %5989 = vmatmul.mubr.msk.bf16.gmra.mrb[252].mxu0 %vm1471_vm5, %v1545_v54 }
 0x3c0   :  { %5992 = vmatprep.mubr.msk.bf16.mxu0 %vm6954_vm2, %v6952_v0 }
 0x3c1   :  { %v1467_v30 = vmax.f32 %v1445_v15, 0.0  ;;  %v1446_v59 = vadd.f32 %v7717_v26, %v1417_v58  ;;  %v6210_v15 = vld [vmem:[#allocation13 + $0x80] ss:$8 sps:$4 sm:$0xff]   ;;  %v6212_v58 = vld [vmem:[#allocation13 + $0x84] ss:$8 sps:$4 sm:$0xff]  }
 0x3c2   :  { %v1513_v37 = vld [vmem:[#allocation3 + $0x88] sm:$0xff] }
 0x3c3   :  { %1492 = vst.msk [vmem:[#allocation3 + $0x98] sm:$0xff] %vm1471_vm5, %v1467_v30  ;;  %v1468_v28 = vmax.f32 %v1446_v59, 0.0  ;;  %v7823_v39 = vpack.c.bf16 %v1513_v37, %v1512_v19  ;;  %v6209_v19 = vld [vmem:[#allocation13 + $0x74] ss:$8 sps:$4 sm:$0xff]   ;;  %v6213_v30 = vld [vmem:[#allocation13 + $0x90] ss:$8 sps:$4 sm:$0xff]  }
 0x3c4   :  { %v1514_v9 = vld [vmem:[#allocation3 + $0x90] sm:$0xff]  ;;  %v1391_v40 = vpop.f32.mrb[220].mxu0 }
 0x3c5   :  { %1493 = vst.msk [vmem:[#allocation3 + $0xa0] sm:$0xff] %vm1471_vm5, %v1468_v28  ;;  %v1546_v52 = vpack.c.bf16 %v1514_v9, %v1513_v37  ;;  %v1418_v23 = vadd.f32 %v1391_v40, %v7712_v53  ;;  %v5950_v48 = vpop.f32.mrb[221].mxu0  ;;  %v6215_v59 = vld [vmem:[#allocation13 + $0x94] ss:$8 sps:$4 sm:$0xff]   ;;  %v6216_v40 = vld [vmem:[#allocation13 + $0xa0] ss:$8 sps:$4 sm:$0xff]  }
 0x3c6   :  { %v1394_v14 = vpop.f32.mrb[222].mxu0 }
 0x3c7   :  { %v1447_v56 = vadd.f32 %v7717_v26, %v1418_v23  ;;  %v1419_v50 = vadd.f32 %v1394_v14, %v7715_v35  ;;  %v5951_v11 = vpop.f32.mrb[223].mxu0  ;;  %5993 = vmatmul.mubr.msk.bf16.gmra.mrb[0].mxu0 %vm1471_vm5, %v1546_v52  ;;  %v6219_v14 = vld [vmem:[#allocation13 + $0xb0] ss:$8 sps:$4 sm:$0xff]  }
 0x3c8   :  { %5996 = vmatprep.mubr.msk.bf16.mxu0 %vm6954_vm2, %v6952_v0  ;;  %v1935_v11 = vld [vmem:[#allocation3 + $0xb8] sm:$0xff] }
 0x3c9   :  { %v1469_v33 = vmax.f32 %v1447_v56, 0.0  ;;  %v1448_v45 = vadd.f32 %v7717_v26, %v1419_v50  ;;  %v6221_v56 = vld [vmem:[#allocation13 + $0xb4] ss:$8 sps:$4 sm:$0xff]  }
 0x3ca   :  { %v1515_v22 = vld [vmem:[#allocation3 + $0x98] sm:$0xff] }
 0x3cb   :  { %v7833_v57 = vpack.c.bf16 %v1515_v22, %v1514_v9  ;;  %1494 = vst.msk [vmem:[#allocation3 + $0xa8] sm:$0xff] %vm1471_vm5, %v1469_v33  ;;  %v1470_v53 = vmax.f32 %v1448_v45, 0.0  ;;  %v6218_v9 = vld [vmem:[#allocation13 + $0xa4] ss:$8 sps:$4 sm:$0xff]   ;;  %v6222_v45 = vld [vmem:[#allocation13 + $0xc0] ss:$8 sps:$4 sm:$0xff]  }
 0x3cc   :  { %v1516_v55 = vld [vmem:[#allocation3 + $0xa0] sm:$0xff] }
 0x3cd   :  { %v1547_v6 = vpack.c.bf16 %v1516_v55, %v1515_v22  ;;  %1495 = vst.msk [vmem:[#allocation3 + $0xb0] sm:$0xff] %vm1471_vm5, %v1470_v53  ;;  %v6224_v22 = vld [vmem:[#allocation13 + $0xc4] ss:$8 sps:$4 sm:$0xff]  }
 0x3cf   :  { %5997 = vmatmul.mubr.msk.bf16.gmra.mrb[4].mxu0 %vm1471_vm5, %v1547_v6  ;;  %v6227_v6 = vld [vmem:[#allocation13 + $0xd4] ss:$8 sps:$4 sm:$0xff]  }
 0x3d0   :  { %6000 = vmatprep.mubr.msk.bf16.mxu0 %vm6954_vm2, %v6952_v0 }
 0x3d2   :  { %v1517_v35 = vld [vmem:[#allocation3 + $0xa8] sm:$0xff] }
 0x3d3   :  { %v7840_v60 = vpack.c.bf16 %v1517_v35, %v1516_v55 }
 0x3d4   :  { %v7842_v38 = vld [vmem:[#allocation3 + $0xb0] sm:$0xff] }
 0x3d5   :  { %v1548_v26 = vpack.c.bf16 %v7842_v38, %v1517_v35  ;;  %v1946_v55 = vpack.c.bf16 %v1935_v11, %v7842_v38  ;;  %v6225_v35 = vld [vmem:[#allocation13 + $0xd0] ss:$8 sps:$4 sm:$0xff]  }
 0x3d6   :  { %v6231_v38 = vld [vmem:[#allocation13 + $0xf0] ss:$8 sps:$4 sm:$0xff]  }
 0x3d7   :  { %6001 = vmatmul.mubr.msk.bf16.gmra.mrb[8].mxu0 %vm1471_vm5, %v1548_v26  ;;  %v6230_v26 = vld [vmem:[#allocation13 + $0xe4] ss:$8 sps:$4 sm:$0xff]  }
 0x3d8   :  { %6012 = vmatprep.mubr.msk.bf16.mxu0 %vm6954_vm2, %v6952_v0 }
 0x3df   :  { %6013 = vmatmul.mubr.msk.bf16.vlgmr.msra.gmra.mrb[12].mxu0 %vm1471_vm5, %v1518_v61 }
 0x3e0   :  { %6057 = vmatpush3.bf16.msra.mxu0 %v6182_v32  ;;  %6016 = vmatprep.mubr.msk.bf16.mxu0 %vm6954_vm2, %v6952_v0  ;;  %v6228_v32 = vld [vmem:[#allocation13 + $0xe0] ss:$8 sps:$4 sm:$0xff]  }
 0x3e1   :  { %6058 = vmatprep.subr.bf16.mxu0 %v6952_v0 }
 0x3e4   :  { %6059 = vmatpush3.bf16.msra.mxu0 %v6183_v16  ;;  %v6233_v16 = vld [vmem:[#allocation13 + $0xf4] ss:$8 sps:$4 sm:$0xff]  }
 0x3e5   :  { %6060 = vmatprep.subr.bf16.mxu0 %v6952_v0 }
 0x3e7   :  { %6017 = vmatmul.mubr.msk.bf16.gmra.mrb[16].mxu0 %vm1471_vm5, %v7742_v44 }
 0x3e8   :  { %6020 = vmatprep.mubr.msk.bf16.mxu0 %vm6954_vm2, %v6952_v0  ;;  %6061 = vmatpush3.bf16.msra.mxu0 %v6184_v31 }
 0x3e9   :  { %6062 = vmatprep.subr.bf16.mxu0 %v6952_v0 }
 0x3ec   :  { %6063 = vmatpush3.bf16.msra.mxu0 %v6185_v24 }
 0x3ef   :  { %6021 = vmatmul.mubr.msk.bf16.gmra.mrb[20].mxu0 %vm1471_vm5, %v7756_v1 }
 0x3f0   :  { %6024 = vmatprep.mubr.msk.bf16.mxu0 %vm6954_vm2, %v6952_v0 }
 0x3f7   :  { %6025 = vmatmul.mubr.msk.bf16.gmra.mrb[24].mxu0 %vm1471_vm5, %v7768_v62 }
 0x3f8   :  { %6028 = vmatprep.mubr.msk.bf16.mxu0 %vm6954_vm2, %v6952_v0 }
 0x3ff   :  { %6029 = vmatmul.mubr.msk.bf16.gmra.mrb[28].mxu0 %vm1471_vm5, %v7779_v18 }
 0x400   :  { %6032 = vmatprep.mubr.msk.bf16.mxu0 %vm6954_vm2, %v6952_v0 }
 0x407   :  { %6033 = vmatmul.mubr.msk.bf16.gmra.mrb[32].mxu0 %vm1471_vm5, %v7790_v34 }
 0x408   :  { %6036 = vmatprep.mubr.msk.bf16.mxu0 %vm6954_vm2, %v6952_v0 }
 0x40f   :  { %6037 = vmatmul.mubr.msk.bf16.gmra.mrb[36].mxu0 %vm1471_vm5, %v7801_v49 }
 0x410   :  { %6040 = vmatprep.mubr.msk.bf16.mxu0 %vm6954_vm2, %v6952_v0 }
 0x417   :  { %6041 = vmatmul.mubr.msk.bf16.gmra.mrb[40].mxu0 %vm1471_vm5, %v7812_v7 }
 0x418   :  { %6044 = vmatprep.mubr.msk.bf16.mxu0 %vm6954_vm2, %v6952_v0 }
 0x41f   :  { %6045 = vmatmul.mubr.msk.bf16.gmra.mrb[44].mxu0 %vm1471_vm5, %v7823_v39 }
 0x420   :  { %6048 = vmatprep.mubr.msk.bf16.mxu0 %vm6954_vm2, %v6952_v0 }
 0x427   :  { %6049 = vmatmul.mubr.msk.bf16.gmra.mrb[48].mxu0 %vm1471_vm5, %v7833_v57 }
 0x428   :  { %6052 = vmatprep.mubr.msk.bf16.mxu0 %vm6954_vm2, %v6952_v0 }
 0x42f   :  { %6053 = vmatmul.mubr.msk.bf16.gmra.mrb[52].mxu0 %vm1471_vm5, %v7840_v60 }
 0x430   :  { %6064 = vmatprep.mubr.msk.bf16.mxu0 %vm6954_vm2, %v6952_v0 }
 0x437   :  { %6065 = vmatmul.mubr.msk.bf16.vlgmr.msra.gmra.mrb[56].mxu0 %vm1471_vm5, %v7742_v44  ;;  %v6189_v44 = vld [vmem:[#allocation13 + $0x10] ss:$8 sps:$4 sm:$0xff]  }
 0x438   :  { %6068 = vmatprep.mubr.msk.bf16.mxu0 %vm6954_vm2, %v6952_v0  ;;  %4400 = vmatpush1.bf16.msra.mxu1 %v6189_v44 }
 0x439   :  { %4401 = vmatprep.subr.bf16.mxu1 %v6194_v47 }
 0x43c   :  { %4402 = vmatpush1.bf16.msra.mxu1 %v6192_v5 }
 0x43f   :  { %6069 = vmatmul.mubr.msk.bf16.gmra.mrb[60].mxu0 %vm1471_vm5, %v7756_v1  ;;  %v6195_v1 = vld [vmem:[#allocation13 + $0x30] ss:$8 sps:$4 sm:$0xff]  }
 0x440   :  { %6072 = vmatprep.mubr.msk.bf16.mxu0 %vm6954_vm2, %v6952_v0 }
 0x447   :  { %6073 = vmatmul.mubr.msk.bf16.gmra.mrb[64].mxu0 %vm1471_vm5, %v7768_v62  ;;  %v6197_v62 = vld [vmem:[#allocation13 + $0x34] ss:$8 sps:$4 sm:$0xff]  }
 0x448   :  { %6076 = vmatprep.mubr.msk.bf16.mxu0 %vm6954_vm2, %v6952_v0  ;;  %4403 = vmatprep.subr.bf16.mxu1 %v6197_v62 }
 0x449   :  { %4404 = vmatpush1.bf16.msra.mxu1 %v6195_v1 }
 0x44f   :  { %6077 = vmatmul.mubr.msk.bf16.gmra.mrb[68].mxu0 %vm1471_vm5, %v7779_v18  ;;  %v6200_v18 = vld [vmem:[#allocation13 + $0x44] ss:$8 sps:$4 sm:$0xff]  }
 0x450   :  { %6080 = vmatprep.mubr.msk.bf16.mxu0 %vm6954_vm2, %v6952_v0  ;;  %4405 = vmatprep.subr.bf16.mxu1 %v6200_v18 }
 0x451   :  { %4406 = vmatpush1.bf16.msra.mxu1 %v6198_v12 }
 0x452   :  { %4407 = vmatprep.subr.bf16.mxu1 %v6203_v63 }
 0x455   :  { %4408 = vmatpush1.bf16.msra.mxu1 %v6201_v10 }
 0x456   :  { %4409 = vmatprep.subr.bf16.mxu1 %v6206_v41 }
 0x457   :  { %6081 = vmatmul.mubr.msk.bf16.gmra.mrb[72].mxu0 %vm1471_vm5, %v7790_v34 }
 0x458   :  { %6084 = vmatprep.mubr.msk.bf16.mxu0 %vm6954_vm2, %v6952_v0 }
 0x459   :  { %4410 = vmatpush1.bf16.msra.mxu1 %v6204_v20 }
 0x45a   :  { %v7915_v51 = vpop.f32.mrb[224].mxu0  ;;  %4411 = vmatprep.subr.bf16.mxu1 %v6209_v19 }
 0x45b   :  { %v5962_v3 = vpop.f32.mrb[225].mxu0 }
 0x45c   :  { %v7917_v42 = vpop.f32.mrb[226].mxu0 }
 0x45d   :  { %v5963_v8 = vpop.f32.mrb[227].mxu0 }
 0x45f   :  { %6085 = vmatmul.mubr.msk.bf16.gmra.mrb[76].mxu0 %vm1471_vm5, %v7801_v49  ;;  %v6207_v49 = vld [vmem:[#allocation13 + $0x70] ss:$8 sps:$4 sm:$0xff]  }
 0x460   :  { %6088 = vmatprep.mubr.msk.bf16.mxu0 %vm6954_vm2, %v6952_v0  ;;  %4412 = vmatpush1.bf16.msra.mxu1 %v6207_v49 }
 0x461   :  { %4413 = vmatprep.subr.bf16.mxu1 %v6212_v58 }
 0x462   :  { %v7923_v34 = vpop.f32.mrb[228].mxu0 }
 0x463   :  { %v5966_v4 = vpop.f32.mrb[229].mxu0 }
 0x464   :  { %v7925_v36 = vpop.f32.mrb[230].mxu0  ;;  %4414 = vmatpush1.bf16.msra.mxu1 %v6210_v15 }
 0x465   :  { %v5967_v17 = vpop.f32.mrb[231].mxu0  ;;  %4415 = vmatprep.subr.bf16.mxu1 %v6215_v59 }
 0x467   :  { %6089 = vmatmul.mubr.msk.bf16.gmra.mrb[80].mxu0 %vm1471_vm5, %v7812_v7 }
 0x468   :  { %6092 = vmatprep.mubr.msk.bf16.mxu0 %vm6954_vm2, %v6952_v0  ;;  %4416 = vmatpush1.bf16.msra.mxu1 %v6213_v30 }
 0x469   :  { %4417 = vmatprep.subr.bf16.mxu1 %v6218_v9 }
 0x46a   :  { %v7931_v27 = vpop.f32.mrb[232].mxu0 }
 0x46b   :  { %v5970_v13 = vpop.f32.mrb[233].mxu0 }
 0x46c   :  { %v7933_v54 = vpop.f32.mrb[234].mxu0  ;;  %4418 = vmatpush1.bf16.msra.mxu1 %v6216_v40 }
 0x46d   :  { %v5971_v25 = vpop.f32.mrb[235].mxu0  ;;  %4419 = vmatprep.subr.bf16.mxu1 %v6221_v56 }
 0x46f   :  { %6093 = vmatmul.mubr.msk.bf16.gmra.mrb[84].mxu0 %vm1471_vm5, %v7823_v39 }
 0x470   :  { %6096 = vmatprep.mubr.msk.bf16.mxu0 %vm6954_vm2, %v6952_v0  ;;  %4420 = vmatpush1.bf16.msra.mxu1 %v6219_v14 }
 0x471   :  { %4421 = vmatprep.subr.bf16.mxu1 %v6224_v22 }
 0x472   :  { %v7939_v7 = vpop.f32.mrb[236].mxu0 }
 0x473   :  { %v5974_v29 = vpop.f32.mrb[237].mxu0 }
 0x474   :  { %v7941_v37 = vpop.f32.mrb[238].mxu0  ;;  %4422 = vmatpush1.bf16.msra.mxu1 %v6222_v45 }
 0x475   :  { %v5975_v28 = vpop.f32.mrb[239].mxu0  ;;  %4423 = vmatprep.subr.bf16.mxu1 %v6227_v6 }
 0x477   :  { %6097 = vmatmul.mubr.msk.bf16.gmra.mrb[88].mxu0 %vm1471_vm5, %v7833_v57 }
 0x478   :  { %6100 = vmatprep.mubr.msk.bf16.mxu0 %vm6954_vm2, %v6952_v0  ;;  %4424 = vmatpush1.bf16.msra.mxu1 %v6225_v35 }
 0x479   :  { %4425 = vmatprep.subr.bf16.mxu1 %v6230_v26 }
 0x47a   :  { %v7947_v39 = vpop.f32.mrb[240].mxu0 }
 0x47b   :  { %v5978_v52 = vpop.f32.mrb[241].mxu0 }
 0x47c   :  { %v7949_v23 = vpop.f32.mrb[242].mxu0  ;;  %4426 = vmatpush1.bf16.msra.mxu1 %v6228_v32 }
 0x47d   :  { %v5979_v48 = vpop.f32.mrb[243].mxu0  ;;  %4427 = vmatprep.subr.bf16.mxu1 %v6233_v16 }
 0x47f   :  { %6101 = vmatmul.mubr.msk.bf16.gmra.mrb[92].mxu0 %vm1471_vm5, %v7840_v60 }
 0x480   :  { %6104 = vmatprep.mubr.msk.bf16.mxu0 %vm6954_vm2, %v6952_v0  ;;  %4428 = vmatpush1.bf16.msra.mxu1 %v6231_v38 }
 0x481   :  { %4438 = vmatprep.subr.bf16.mxu1 %v6236_v2 }
 0x482   :  { %v7955_v50 = vpop.f32.mrb[244].mxu0 }
 0x483   :  { %v5982_v33 = vpop.f32.mrb[245].mxu0 }
 0x484   :  { %v7957_v57 = vpop.f32.mrb[246].mxu0 }
 0x485   :  { %v5983_v53 = vpop.f32.mrb[247].mxu0 }
 0x487   :  { %6105 = vmatmul.mubr.msk.bf16.gmra.mrb[96].mxu0 %vm1471_vm5, %v1946_v55 }
 0x48a   :  { %v7961_v0 = vpop.f32.mrb[248].mxu0 }
 0x48b   :  { %v5986_v60 = vpop.f32.mrb[249].mxu0 }
 0x48c   :  { %v7963_v43 = vpop.f32.mrb[250].mxu0 }
 0x48d   :  { %v5987_v61 = vpop.f32.mrb[251].mxu0 }
 0x492   :  { %v1705_v31 = vpop.f32.mrb[252].mxu0 }
 0x493   :  { %v5990_v24 = vpop.f32.mrb[253].mxu0 }
 0x494   :  { %v1708_v21 = vpop.f32.mrb[254].mxu0 }
 0x495   :  { %v5991_v44 = vpop.f32.mrb[255].mxu0 }
 0x49a   :  { %v1713_v46 = vpop.f32.mrb[0].mxu0 }
 0x49b   :  { %v5994_v47 = vpop.f32.mrb[1].mxu0 }
 0x49c   :  { %v1716_v5 = vpop.f32.mrb[2].mxu0 }
 0x49d   :  { %v5995_v1 = vpop.f32.mrb[3].mxu0 }
 0x4a2   :  { %v7965_v62 = vpop.f32.mrb[4].mxu0 }
 0x4a3   :  { %v5998_v3 = vpop.f32.mrb[5].mxu0 }
 0x4a4   :  { %v7967_v12 = vpop.f32.mrb[6].mxu0 }
 0x4a5   :  { %v5999_v18 = vpop.f32.mrb[7].mxu0 }
 0x4aa   :  { %v7969_v8 = vpop.f32.mrb[8].mxu0 }
 0x4ab   :  { %v6002_v63 = vpop.f32.mrb[9].mxu0 }
 0x4ac   :  { %v7971_v10 = vpop.f32.mrb[10].mxu0 }
 0x4ad   :  { %v6003_v4 = vpop.f32.mrb[11].mxu0 }
 0x4b2   :  { %v1827_v17 = vpop.f32.mrb[12].mxu0 }
 0x4b3   :  { %v7974_v20 = vadd.f32 %v1827_v17, %v7915_v51  ;;  %v6014_v41 = vpop.f32.mrb[13].mxu0 }
 0x4b4   :  { %v1830_v19 = vpop.f32.mrb[14].mxu0 }
 0x4b5   :  { %v7977_v49 = vadd.f32 %v1830_v19, %v7917_v42  ;;  %v6015_v13 = vpop.f32.mrb[15].mxu0 }
 0x4ba   :  { %v1835_v25 = vpop.f32.mrb[16].mxu0 }
 0x4bb   :  { %v7980_v15 = vadd.f32 %v1835_v25, %v7923_v34  ;;  %v6018_v58 = vpop.f32.mrb[17].mxu0 }
 0x4bc   :  { %v1838_v29 = vpop.f32.mrb[18].mxu0 }
 0x4bd   :  { %v7983_v30 = vadd.f32 %v1838_v29, %v7925_v36  ;;  %v6019_v59 = vpop.f32.mrb[19].mxu0 }
 0x4be   :  { %v8035_v59 = vld [vmem:[#allocation12] ss:$0 sm:$0xff] }
 0x4c2   :  { %v1843_v28 = vpop.f32.mrb[20].mxu0 }
 0x4c3   :  { %v7986_v51 = vadd.f32 %v1843_v28, %v7931_v27  ;;  %v6022_v9 = vpop.f32.mrb[21].mxu0 }
 0x4c4   :  { %v1846_v40 = vpop.f32.mrb[22].mxu0 }
 0x4c5   :  { %v7989_v42 = vadd.f32 %v1846_v40, %v7933_v54  ;;  %v6023_v52 = vpop.f32.mrb[23].mxu0 }
 0x4ca   :  { %v1851_v48 = vpop.f32.mrb[24].mxu0 }
 0x4cb   :  { %v7992_v34 = vadd.f32 %v1851_v48, %v7939_v7  ;;  %v6026_v14 = vpop.f32.mrb[25].mxu0 }
 0x4cc   :  { %v1854_v56 = vpop.f32.mrb[26].mxu0 }
 0x4cd   :  { %v7995_v36 = vadd.f32 %v1854_v56, %v7941_v37  ;;  %v6027_v11 = vpop.f32.mrb[27].mxu0 }
 0x4d2   :  { %v1859_v33 = vpop.f32.mrb[28].mxu0 }
 0x4d3   :  { %v7998_v27 = vadd.f32 %v1859_v33, %v7947_v39  ;;  %v6030_v45 = vpop.f32.mrb[29].mxu0 }
 0x4d4   :  { %v1862_v22 = vpop.f32.mrb[30].mxu0  ;;  %v6234_v45 = vld [vmem:[#allocation13 + $0x100] ss:$8 sps:$4 sm:$0xff]  }
 0x4d5   :  { %v8001_v54 = vadd.f32 %v1862_v22, %v7949_v23  ;;  %v6031_v53 = vpop.f32.mrb[31].mxu0 }
 0x4d6   :  { %v6239_v53 = vld [vmem:[#allocation13 + $0x114] ss:$8 sps:$4 sm:$0xff]  }
 0x4da   :  { %v1867_v55 = vpop.f32.mrb[32].mxu0 }
 0x4db   :  { %v8004_v7 = vadd.f32 %v1867_v55, %v7955_v50  ;;  %v6034_v6 = vpop.f32.mrb[33].mxu0 }
 0x4dc   :  { %v1870_v35 = vpop.f32.mrb[34].mxu0 }
 0x4dd   :  { %v8007_v37 = vadd.f32 %v1870_v35, %v7957_v57  ;;  %v6035_v60 = vpop.f32.mrb[35].mxu0  ;;  %v6237_v35 = vld [vmem:[#allocation13 + $0x110] ss:$8 sps:$4 sm:$0xff]  }
 0x4de   :  { %v6242_v60 = vld [vmem:[#allocation13 + $0x124] ss:$8 sps:$4 sm:$0xff]  }
 0x4e2   :  { %v1875_v26 = vpop.f32.mrb[36].mxu0 }
 0x4e3   :  { %v8010_v39 = vadd.f32 %v1875_v26, %v7961_v0  ;;  %v6038_v32 = vpop.f32.mrb[37].mxu0 }
 0x4e4   :  { %v1878_v61 = vpop.f32.mrb[38].mxu0 }
 0x4e5   :  { %v8013_v23 = vadd.f32 %v1878_v61, %v7963_v43  ;;  %v6039_v16 = vpop.f32.mrb[39].mxu0 }
 0x4ea   :  { %v1883_v38 = vpop.f32.mrb[40].mxu0 }
 0x4eb   :  { %v8015_v24 = vadd.f32 %v1883_v38, %v1705_v31  ;;  %v6042_v50 = vpop.f32.mrb[41].mxu0  ;;  %v6240_v38 = vld [vmem:[#allocation13 + $0x120] ss:$8 sps:$4 sm:$0xff]  }
 0x4ec   :  { %v1886_v2 = vpop.f32.mrb[42].mxu0 }
 0x4ed   :  { %v8017_v44 = vadd.f32 %v1886_v2, %v1708_v21  ;;  %v6043_v57 = vpop.f32.mrb[43].mxu0 }
 0x4f2   :  { %v1891_v47 = vpop.f32.mrb[44].mxu0 }
 0x4f3   :  { %v8019_v1 = vadd.f32 %v1891_v47, %v1713_v46  ;;  %v6046_v3 = vpop.f32.mrb[45].mxu0  ;;  %v6243_v47 = vld [vmem:[#allocation13 + $0x130] ss:$8 sps:$4 sm:$0xff]  }
 0x4f4   :  { %v1894_v0 = vpop.f32.mrb[46].mxu0  ;;  %v6248_v3 = vld [vmem:[#allocation13 + $0x144] ss:$8 sps:$4 sm:$0xff]  }
 0x4f5   :  { %v8021_v18 = vadd.f32 %v1894_v0, %v1716_v5  ;;  %v6047_v63 = vpop.f32.mrb[47].mxu0 }
 0x4fa   :  { %v1899_v4 = vpop.f32.mrb[48].mxu0 }
 0x4fb   :  { %v8024_v43 = vadd.f32 %v1899_v4, %v7965_v62  ;;  %v6050_v17 = vpop.f32.mrb[49].mxu0  ;;  %v6246_v4 = vld [vmem:[#allocation13 + $0x140] ss:$8 sps:$4 sm:$0xff]  }
 0x4fc   :  { %v1902_v31 = vpop.f32.mrb[50].mxu0 }
 0x4fd   :  { %v8027_v41 = vadd.f32 %v1902_v31, %v7967_v12  ;;  %v6051_v21 = vpop.f32.mrb[51].mxu0  ;;  %v6251_v31 = vld [vmem:[#allocation13 + $0x154] ss:$8 sps:$4 sm:$0xff]  }
 0x502   :  { %v1907_v19 = vpop.f32.mrb[52].mxu0 }
 0x503   :  { %v8030_v13 = vadd.f32 %v1907_v19, %v7969_v8  ;;  %v6054_v46 = vpop.f32.mrb[53].mxu0  ;;  %v6249_v19 = vld [vmem:[#allocation13 + $0x150] ss:$8 sps:$4 sm:$0xff]  }
 0x504   :  { %v1910_v25 = vpop.f32.mrb[54].mxu0  ;;  %v6254_v46 = vld [vmem:[#allocation13 + $0x164] ss:$8 sps:$4 sm:$0xff]  }
 0x505   :  { %v8033_v5 = vadd.f32 %v1910_v25, %v7971_v10  ;;  %v6055_v58 = vpop.f32.mrb[55].mxu0 }
 0x50a   :  { %v2047_v29 = vpop.f32.mrb[56].mxu0 }
 0x50b   :  { %v2134_v62 = vadd.f32 %v2047_v29, %v7974_v20  ;;  %v6066_v28 = vpop.f32.mrb[57].mxu0  ;;  %v6252_v29 = vld [vmem:[#allocation13 + $0x160] ss:$8 sps:$4 sm:$0xff]  }
 0x50c   :  { %v2050_v9 = vpop.f32.mrb[58].mxu0  ;;  %v6257_v28 = vld [vmem:[#allocation13 + $0x174] ss:$8 sps:$4 sm:$0xff]  }
 0x50d   :  { %v2163_v12 = vadd.f32 %v8035_v59, %v2134_v62  ;;  %v2135_v40 = vadd.f32 %v2050_v9, %v7977_v49  ;;  %v6067_v52 = vpop.f32.mrb[59].mxu0 }
 0x50f   :  { %v2164_v8 = vadd.f32 %v8035_v59, %v2135_v40  ;;  %v2185_v48 = vmax.f32 %v2163_v12, 0.0  ;;  %v6255_v12 = vld [vmem:[#allocation13 + $0x170] ss:$8 sps:$4 sm:$0xff]   ;;  %v6260_v40 = vld [vmem:[#allocation13 + $0x184] ss:$8 sps:$4 sm:$0xff]  }
 0x511   :  { %v2186_v14 = vmax.f32 %v2164_v8, 0.0  ;;  %v2251_v22 = vpack.c.bf16 %v2185_v48, %v2185_v48  ;;  %v6258_v48 = vld [vmem:[#allocation13 + $0x180] ss:$8 sps:$4 sm:$0xff]  }
 0x512   :  { %v2055_v56 = vpop.f32.mrb[60].mxu0 }
 0x513   :  { %v2252_v10 = vpack.c.bf16 %v2186_v14, %v2186_v14  ;;  %v8042_v11 = vadd.f32 %v2055_v56, %v7980_v15  ;;  %v6070_v33 = vpop.f32.mrb[61].mxu0  ;;  %v6263_v56 = vld [vmem:[#allocation13 + $0x194] ss:$8 sps:$4 sm:$0xff]  }
 0x514   :  { %v2058_v20 = vpop.f32.mrb[62].mxu0  ;;  %v6261_v33 = vld [vmem:[#allocation13 + $0x190] ss:$8 sps:$4 sm:$0xff]  }
 0x515   :  { %v2137_v55 = vadd.f32 %v2058_v20, %v7983_v30  ;;  %v6071_v6 = vpop.f32.mrb[63].mxu0  ;;  %4429 = vmatprep.mubr.bf16.mxu1 %v2252_v10  ;;  %v6245_v30 = vld [vmem:[#allocation13 + $0x134] ss:$8 sps:$4 sm:$0xff]  }
 0x516   :  { %4430 = vmatmul.mubr.bf16.vlgmr.msra.gmra.mrb[40].mxu1 %v2251_v22  ;;  %v6269_v6 = vld [vmem:[#allocation13 + $0x1b4] ss:$8 sps:$4 sm:$0xff]  }
 0x517   :  { %v2166_v49 = vadd.f32 %v8035_v59, %v2137_v55  ;;  %4439 = vmatpush1.bf16.msra.mxu1 %v6234_v45  ;;  %v6266_v45 = vld [vmem:[#allocation13 + $0x1a4] ss:$8 sps:$4 sm:$0xff]  }
 0x518   :  { %4440 = vmatprep.subr.bf16.mxu1 %v6239_v53  ;;  %v6264_v53 = vld [vmem:[#allocation13 + $0x1a0] ss:$8 sps:$4 sm:$0xff]  }
 0x519   :  { %v2188_v26 = vmax.f32 %v2166_v49, 0.0 }
 0x51a   :  { %v2063_v32 = vpop.f32.mrb[64].mxu0 }
 0x51b   :  { %v2254_v15 = vpack.c.bf16 %v2188_v26, %v2188_v26  ;;  %v8047_v61 = vadd.f32 %v2063_v32, %v7986_v51  ;;  %4441 = vmatpush1.bf16.msra.mxu1 %v6237_v35  ;;  %v6074_v16 = vpop.f32.mrb[65].mxu0  ;;  %v6267_v35 = vld [vmem:[#allocation13 + $0x1b0] ss:$8 sps:$4 sm:$0xff]  }
 0x51c   :  { %v2066_v50 = vpop.f32.mrb[66].mxu0  ;;  %4442 = vmatprep.subr.bf16.mxu1 %v6242_v60  ;;  %v6272_v60 = vld [vmem:[#allocation13 + $0x1c4] ss:$8 sps:$4 sm:$0xff]  }
 0x51d   :  { %v8050_v2 = vadd.f32 %v2066_v50, %v7989_v42  ;;  %v6075_v57 = vpop.f32.mrb[67].mxu0  ;;  %4470 = vmatprep.mubr.bf16.mxu1 %v2254_v15  ;;  %v6270_v15 = vld [vmem:[#allocation13 + $0x1c0] ss:$8 sps:$4 sm:$0xff]  }
 0x51e   :  { %v6278_v57 = vld [vmem:[#allocation13 + $0x1e4] ss:$8 sps:$4 sm:$0xff]  }
 0x51f   :  { %4443 = vmatpush1.bf16.msra.mxu1 %v6240_v38  ;;  %v6275_v38 = vld [vmem:[#allocation13 + $0x1d4] ss:$8 sps:$4 sm:$0xff]  }
 0x520   :  { %4444 = vmatprep.subr.bf16.mxu1 %v6245_v30  ;;  %v6273_v30 = vld [vmem:[#allocation13 + $0x1d0] ss:$8 sps:$4 sm:$0xff]  }
 0x522   :  { %v2071_v0 = vpop.f32.mrb[68].mxu0 }
 0x523   :  { %v8053_v63 = vadd.f32 %v2071_v0, %v7992_v34  ;;  %4445 = vmatpush1.bf16.msra.mxu1 %v6243_v47  ;;  %v6078_v51 = vpop.f32.mrb[69].mxu0  ;;  %v6276_v0 = vld [vmem:[#allocation13 + $0x1e0] ss:$8 sps:$4 sm:$0xff]  }
 0x524   :  { %v2074_v17 = vpop.f32.mrb[70].mxu0  ;;  %4446 = vmatprep.subr.bf16.mxu1 %v6248_v3  ;;  %v2165_v51 = vadd.f32 %v8035_v59, %v8042_v11 }
 0x525   :  { %v8056_v21 = vadd.f32 %v2074_v17, %v7995_v36  ;;  %v6079_v42 = vpop.f32.mrb[71].mxu0  ;;  %v6281_v17 = vld [vmem:[#allocation13 + $0x1f4] ss:$8 sps:$4 sm:$0xff]  }
 0x527   :  { %4447 = vmatpush1.bf16.msra.mxu1 %v6246_v4 }
 0x528   :  { %4448 = vmatprep.subr.bf16.mxu1 %v6251_v31 }
 0x52a   :  { %v2079_v25 = vpop.f32.mrb[72].mxu0 }
 0x52b   :  { %v8059_v58 = vadd.f32 %v2079_v25, %v7998_v27  ;;  %4449 = vmatpush1.bf16.msra.mxu1 %v6249_v19  ;;  %v6082_v34 = vpop.f32.mrb[73].mxu0  ;;  %v6279_v19 = vld [vmem:[#allocation13 + $0x1f0] ss:$8 sps:$4 sm:$0xff]  }
 0x52c   :  { %v2082_v62 = vpop.f32.mrb[74].mxu0  ;;  %4450 = vmatprep.subr.bf16.mxu1 %v6254_v46  ;;  %v6284_v46 = vld [vmem:[#allocation13 + $0x204] ss:$8 sps:$4 sm:$0xff]  }
 0x52d   :  { %v8062_v9 = vadd.f32 %v2082_v62, %v8001_v54  ;;  %v6083_v36 = vpop.f32.mrb[75].mxu0  ;;  %v6282_v62 = vld [vmem:[#allocation13 + $0x200] ss:$8 sps:$4 sm:$0xff]  }
 0x52f   :  { %4451 = vmatpush1.bf16.msra.mxu1 %v6252_v29 }
 0x530   :  { %4452 = vmatprep.subr.bf16.mxu1 %v6257_v28 }
 0x532   :  { %v2087_v52 = vpop.f32.mrb[76].mxu0 }
 0x533   :  { %v8065_v8 = vadd.f32 %v2087_v52, %v8004_v7  ;;  %4453 = vmatpush1.bf16.msra.mxu1 %v6255_v12  ;;  %v6086_v27 = vpop.f32.mrb[77].mxu0  ;;  %v6285_v52 = vld [vmem:[#allocation13 + $0x210] ss:$8 sps:$4 sm:$0xff]  }
 0x534   :  { %v2090_v14 = vpop.f32.mrb[78].mxu0  ;;  %4454 = vmatprep.subr.bf16.mxu1 %v6260_v40  ;;  %v6290_v27 = vld [vmem:[#allocation13 + $0x224] ss:$8 sps:$4 sm:$0xff]  }
 0x535   :  { %v8068_v10 = vadd.f32 %v2090_v14, %v8007_v37  ;;  %v6087_v54 = vpop.f32.mrb[79].mxu0 }
 0x537   :  { %4455 = vmatpush1.bf16.msra.mxu1 %v6258_v48 }
 0x538   :  { %4456 = vmatprep.subr.bf16.mxu1 %v6263_v56  ;;  %v6288_v56 = vld [vmem:[#allocation13 + $0x220] ss:$8 sps:$4 sm:$0xff]  }
 0x53a   :  { %v2095_v22 = vpop.f32.mrb[80].mxu0 }
 0x53b   :  { %v8071_v20 = vadd.f32 %v2095_v22, %v8010_v39  ;;  %4457 = vmatpush1.bf16.msra.mxu1 %v6261_v33  ;;  %v6090_v7 = vpop.f32.mrb[81].mxu0  ;;  %v6293_v33 = vld [vmem:[#allocation13 + $0x234] ss:$8 sps:$4 sm:$0xff]   ;;  %v6291_v22 = vld [vmem:[#allocation13 + $0x230] ss:$8 sps:$4 sm:$0xff]  }
 0x53c   :  { %v2098_v55 = vpop.f32.mrb[82].mxu0  ;;  %4458 = vmatprep.subr.bf16.mxu1 %v6266_v45  ;;  %v6296_v7 = vld [vmem:[#allocation13 + $0x244] ss:$8 sps:$4 sm:$0xff]  }
 0x53d   :  { %v8074_v49 = vadd.f32 %v2098_v55, %v8013_v23  ;;  %v6091_v37 = vpop.f32.mrb[83].mxu0  ;;  %v6299_v55 = vld [vmem:[#allocation13 + $0x254] ss:$8 sps:$4 sm:$0xff]  }
 0x53e   :  { %v6300_v37 = vld [vmem:[#allocation13 + $0x260] ss:$8 sps:$4 sm:$0xff]  }
 0x53f   :  { %4459 = vmatpush1.bf16.msra.mxu1 %v6264_v53  ;;  %v6294_v53 = vld [vmem:[#allocation13 + $0x240] ss:$8 sps:$4 sm:$0xff]  }
 0x540   :  { %4460 = vmatprep.subr.bf16.mxu1 %v6269_v6  ;;  %v6302_v6 = vld [vmem:[#allocation13 + $0x264] ss:$8 sps:$4 sm:$0xff]  }
 0x542   :  { %v2103_v26 = vpop.f32.mrb[84].mxu0 }
 0x543   :  { %v8077_v32 = vadd.f32 %v2103_v26, %v8015_v24  ;;  %4461 = vmatpush1.bf16.msra.mxu1 %v6267_v35  ;;  %v6094_v39 = vpop.f32.mrb[85].mxu0  ;;  %v6305_v35 = vld [vmem:[#allocation13 + $0x274] ss:$8 sps:$4 sm:$0xff]   ;;  %v6306_v26 = vld [vmem:[#allocation13 + $0x280] ss:$8 sps:$4 sm:$0xff]  }
 0x544   :  { %v2106_v16 = vpop.f32.mrb[86].mxu0  ;;  %4462 = vmatprep.subr.bf16.mxu1 %v6272_v60  ;;  %v6308_v60 = vld [vmem:[#allocation13 + $0x284] ss:$8 sps:$4 sm:$0xff]   ;;  %v6311_v39 = vld [vmem:[#allocation13 + $0x294] ss:$8 sps:$4 sm:$0xff]  }
 0x545   :  { %v8080_v50 = vadd.f32 %v2106_v16, %v8017_v44  ;;  %v6095_v23 = vpop.f32.mrb[87].mxu0  ;;  %v2168_v44 = vadd.f32 %v8035_v59, %v8050_v2  ;;  %v6287_v2 = vld [vmem:[#allocation13 + $0x214] ss:$8 sps:$4 sm:$0xff]   ;;  %v6314_v16 = vld [vmem:[#allocation13 + $0x2a4] ss:$8 sps:$4 sm:$0xff]  }
 0x546   :  { %v6317_v23 = vld [vmem:[#allocation13 + $0x2b4] ss:$8 sps:$4 sm:$0xff]  }
 0x547   :  { %4463 = vmatpush1.bf16.msra.mxu1 %v6270_v15  ;;  %v2190_v25 = vmax.f32 %v2168_v44, 0.0  ;;  %v6309_v15 = vld [vmem:[#allocation13 + $0x290] ss:$8 sps:$4 sm:$0xff]   ;;  %v6329_v44 = vld [vmem:[#allocation13 + $0x2f4] ss:$8 sps:$4 sm:$0xff]  }
 0x548   :  { %4464 = vmatprep.subr.bf16.mxu1 %v6275_v38  ;;  %v6312_v38 = vld [vmem:[#allocation13 + $0x2a0] ss:$8 sps:$4 sm:$0xff]  }
 0x54a   :  { %v2111_v47 = vpop.f32.mrb[88].mxu0 }
 0x54b   :  { %v8083_v3 = vadd.f32 %v2111_v47, %v8019_v1  ;;  %4465 = vmatpush1.bf16.msra.mxu1 %v6273_v30  ;;  %v6098_v24 = vpop.f32.mrb[89].mxu0  ;;  %v2187_v1 = vmax.f32 %v2165_v51, 0.0  ;;  %v6315_v30 = vld [vmem:[#allocation13 + $0x2b0] ss:$8 sps:$4 sm:$0xff]   ;;  %v6318_v47 = vld [vmem:[#allocation13 + $0x2c0] ss:$8 sps:$4 sm:$0xff]  }
 0x54c   :  { %v2114_v4 = vpop.f32.mrb[90].mxu0  ;;  %4466 = vmatprep.subr.bf16.mxu1 %v6278_v57  ;;  %v6320_v57 = vld [vmem:[#allocation13 + $0x2c4] ss:$8 sps:$4 sm:$0xff]   ;;  %v6323_v24 = vld [vmem:[#allocation13 + $0x2d4] ss:$8 sps:$4 sm:$0xff]  }
 0x54d   :  { %v8090_v31 = vadd.f32 %v2114_v4, %v8021_v18  ;;  %v6099_v42 = vpop.f32.mrb[91].mxu0  ;;  %v2253_v28 = vpack.c.bf16 %v2187_v1, %v2187_v1  ;;  %v2256_v18 = vpack.c.bf16 %v2190_v25, %v2190_v25  ;;  %v6326_v51 = vld [vmem:[#allocation13 + $0x2e4] ss:$8 sps:$4 sm:$0xff]   ;;  %v6324_v4 = vld [vmem:[#allocation13 + $0x2e0] ss:$8 sps:$4 sm:$0xff]  }
 0x54e   :  { %v2170_v42 = vadd.f32 %v8035_v59, %v8056_v21  ;;  %v6336_v21 = vld [vmem:[#allocation13 + $0x320] ss:$8 sps:$4 sm:$0xff]  }
 0x54f   :  { %4467 = vmatpush1.bf16.msra.mxu1 %v6276_v0  ;;  %v6321_v0 = vld [vmem:[#allocation13 + $0x2d0] ss:$8 sps:$4 sm:$0xff]  }
 0x550   :  { %4468 = vmatprep.subr.bf16.mxu1 %v6281_v17  ;;  %v2167_v17 = vadd.f32 %v8035_v59, %v8047_v61  ;;  %v2192_v25 = vmax.f32 %v2170_v42, 0.0  ;;  %v6333_v61 = vld [vmem:[#allocation13 + $0x310] ss:$8 sps:$4 sm:$0xff]   ;;  %v6389_v42 = vld [vmem:[#allocation13 + $0x434] ss:$8 sps:$4 sm:$0xff]  }
 0x552   :  { %v2119_v34 = vpop.f32.mrb[92].mxu0  ;;  %v2189_v1 = vmax.f32 %v2167_v17, 0.0 }
 0x553   :  { %v8093_v29 = vadd.f32 %v2119_v34, %v8024_v43  ;;  %4469 = vmatpush1.bf16.msra.mxu1 %v6279_v19  ;;  %v6102_v11 = vpop.f32.mrb[93].mxu0  ;;  %v6327_v19 = vld [vmem:[#allocation13 + $0x2f0] ss:$8 sps:$4 sm:$0xff]   ;;  %v6330_v34 = vld [vmem:[#allocation13 + $0x300] ss:$8 sps:$4 sm:$0xff]  }
 0x554   :  { %v2122_v36 = vpop.f32.mrb[94].mxu0  ;;  %4479 = vmatprep.subr.bf16.mxu1 %v6284_v46  ;;  %v6332_v46 = vld [vmem:[#allocation13 + $0x304] ss:$8 sps:$4 sm:$0xff]   ;;  %v2255_v11 = vpack.c.bf16 %v2189_v1, %v2189_v1 }
 0x555   :  { %v8096_v12 = vadd.f32 %v2122_v36, %v8027_v41  ;;  %v6103_v40 = vpop.f32.mrb[95].mxu0  ;;  %v6338_v36 = vld [vmem:[#allocation13 + $0x324] ss:$8 sps:$4 sm:$0xff]  }
 0x556   :  { %4471 = vmatmul.mubr.bf16.vlgmr.msra.gmra.mrb[40].mxu1 %v2253_v28  ;;  %v2258_v28 = vpack.c.bf16 %v2192_v25, %v2192_v25  ;;  %v6344_v40 = vld [vmem:[#allocation13 + $0x344] ss:$8 sps:$4 sm:$0xff]   ;;  %v6395_v25 = vld [vmem:[#allocation13 + $0x454] ss:$8 sps:$4 sm:$0xff]  }
 0x557   :  { %4480 = vmatpush1.bf16.msra.mxu1 %v6282_v62  ;;  %4511 = vmatprep.mubr.bf16.mxu1 %v2256_v18  ;;  %v6335_v62 = vld [vmem:[#allocation13 + $0x314] ss:$8 sps:$4 sm:$0xff]   ;;  %v6339_v18 = vld [vmem:[#allocation13 + $0x330] ss:$8 sps:$4 sm:$0xff]   ;;  %v6392_v1 = vld [vmem:[#allocation13 + $0x444] ss:$8 sps:$4 sm:$0xff]  }
 0x558   :  { %4481 = vmatprep.subr.bf16.mxu1 %v6287_v2  ;;  %v6341_v2 = vld [vmem:[#allocation13 + $0x334] ss:$8 sps:$4 sm:$0xff]  }
 0x55a   :  { %v2127_v43 = vpop.f32.mrb[96].mxu0 }
 0x55b   :  { %v8099_v48 = vadd.f32 %v2127_v43, %v8030_v13  ;;  %4482 = vmatpush1.bf16.msra.mxu1 %v6285_v52  ;;  %v6106_v14 = vpop.f32.mrb[97].mxu0  ;;  %v6297_v13 = vld [vmem:[#allocation13 + $0x250] ss:$8 sps:$4 sm:$0xff]   ;;  %v6342_v52 = vld [vmem:[#allocation13 + $0x340] ss:$8 sps:$4 sm:$0xff]  }
 0x55c   :  { %v2130_v54 = vpop.f32.mrb[98].mxu0  ;;  %4483 = vmatprep.subr.bf16.mxu1 %v6290_v27  ;;  %v6347_v27 = vld [vmem:[#allocation13 + $0x354] ss:$8 sps:$4 sm:$0xff]   ;;  %v6345_v43 = vld [vmem:[#allocation13 + $0x350] ss:$8 sps:$4 sm:$0xff]  }
 0x55d   :  { %v8102_v41 = vadd.f32 %v2130_v54, %v8033_v5  ;;  %v6107_v45 = vpop.f32.mrb[99].mxu0  ;;  %v6303_v5 = vld [vmem:[#allocation13 + $0x270] ss:$8 sps:$4 sm:$0xff]   ;;  %v6350_v14 = vld [vmem:[#allocation13 + $0x364] ss:$8 sps:$4 sm:$0xff]  }
 0x55e   :  { %v6353_v54 = vld [vmem:[#allocation13 + $0x374] ss:$8 sps:$4 sm:$0xff]   ;;  %v6356_v45 = vld [vmem:[#allocation13 + $0x384] ss:$8 sps:$4 sm:$0xff]  }
 0x55f   :  { %4484 = vmatpush1.bf16.msra.mxu1 %v6288_v56  ;;  %v6348_v56 = vld [vmem:[#allocation13 + $0x360] ss:$8 sps:$4 sm:$0xff]  }
 0x560   :  { %4485 = vmatprep.subr.bf16.mxu1 %v6293_v33  ;;  %v6351_v33 = vld [vmem:[#allocation13 + $0x370] ss:$8 sps:$4 sm:$0xff]  }
 0x563   :  { %4486 = vmatpush1.bf16.msra.mxu1 %v6291_v22  ;;  %v6354_v22 = vld [vmem:[#allocation13 + $0x380] ss:$8 sps:$4 sm:$0xff]  }
 0x564   :  { %4487 = vmatprep.subr.bf16.mxu1 %v6296_v7  ;;  %v6359_v7 = vld [vmem:[#allocation13 + $0x394] ss:$8 sps:$4 sm:$0xff]  }
 0x567   :  { %4488 = vmatpush1.bf16.msra.mxu1 %v6294_v53  ;;  %v6357_v53 = vld [vmem:[#allocation13 + $0x390] ss:$8 sps:$4 sm:$0xff]  }
 0x568   :  { %4489 = vmatprep.subr.bf16.mxu1 %v6299_v55  ;;  %v6362_v55 = vld [vmem:[#allocation13 + $0x3a4] ss:$8 sps:$4 sm:$0xff]  }
 0x56b   :  { %4490 = vmatpush1.bf16.msra.mxu1 %v6297_v13  ;;  %v6360_v13 = vld [vmem:[#allocation13 + $0x3a0] ss:$8 sps:$4 sm:$0xff]  }
 0x56c   :  { %4491 = vmatprep.subr.bf16.mxu1 %v6302_v6  ;;  %v6365_v6 = vld [vmem:[#allocation13 + $0x3b4] ss:$8 sps:$4 sm:$0xff]  }
 0x56f   :  { %4492 = vmatpush1.bf16.msra.mxu1 %v6300_v37  ;;  %v6363_v37 = vld [vmem:[#allocation13 + $0x3b0] ss:$8 sps:$4 sm:$0xff]  }
 0x570   :  { %4493 = vmatprep.subr.bf16.mxu1 %v6305_v35  ;;  %v6368_v35 = vld [vmem:[#allocation13 + $0x3c4] ss:$8 sps:$4 sm:$0xff]  }
 0x573   :  { %4494 = vmatpush1.bf16.msra.mxu1 %v6303_v5  ;;  %v6366_v5 = vld [vmem:[#allocation13 + $0x3c0] ss:$8 sps:$4 sm:$0xff]  }
 0x574   :  { %4495 = vmatprep.subr.bf16.mxu1 %v6308_v60  ;;  %v6371_v60 = vld [vmem:[#allocation13 + $0x3d4] ss:$8 sps:$4 sm:$0xff]  }
 0x577   :  { %4496 = vmatpush1.bf16.msra.mxu1 %v6306_v26  ;;  %v6369_v26 = vld [vmem:[#allocation13 + $0x3d0] ss:$8 sps:$4 sm:$0xff]  }
 0x578   :  { %4497 = vmatprep.subr.bf16.mxu1 %v6311_v39  ;;  %v6374_v39 = vld [vmem:[#allocation13 + $0x3e4] ss:$8 sps:$4 sm:$0xff]  }
 0x57b   :  { %4498 = vmatpush1.bf16.msra.mxu1 %v6309_v15  ;;  %v6372_v15 = vld [vmem:[#allocation13 + $0x3e0] ss:$8 sps:$4 sm:$0xff]  }
 0x57c   :  { %4499 = vmatprep.subr.bf16.mxu1 %v6314_v16  ;;  %v2169_v16 = vadd.f32 %v8035_v59, %v8053_v63  ;;  %v6381_v63 = vld [vmem:[#allocation13 + $0x410] ss:$8 sps:$4 sm:$0xff]  }
 0x57f   :  { %4500 = vmatpush1.bf16.msra.mxu1 %v6312_v38  ;;  %v6377_v38 = vld [vmem:[#allocation13 + $0x3f4] ss:$8 sps:$4 sm:$0xff]  }
 0x580   :  { %4501 = vmatprep.subr.bf16.mxu1 %v6317_v23  ;;  %v2172_v23 = vadd.f32 %v8035_v59, %v8062_v9  ;;  %v6384_v9 = vld [vmem:[#allocation13 + $0x420] ss:$8 sps:$4 sm:$0xff]  }
 0x583   :  { %4502 = vmatpush1.bf16.msra.mxu1 %v6315_v30  ;;  %v6375_v30 = vld [vmem:[#allocation13 + $0x3f0] ss:$8 sps:$4 sm:$0xff]  }
 0x584   :  { %4503 = vmatprep.subr.bf16.mxu1 %v6320_v57  ;;  %v2191_v57 = vmax.f32 %v2169_v16, 0.0  ;;  %v6437_v16 = vld [vmem:[#allocation13 + $0x534] ss:$8 sps:$4 sm:$0xff]  }
 0x587   :  { %4504 = vmatpush1.bf16.msra.mxu1 %v6318_v47  ;;  %v6380_v47 = vld [vmem:[#allocation13 + $0x404] ss:$8 sps:$4 sm:$0xff]  }
 0x588   :  { %4505 = vmatprep.subr.bf16.mxu1 %v6323_v24  ;;  %v2194_v24 = vmax.f32 %v2172_v23, 0.0  ;;  %v6440_v23 = vld [vmem:[#allocation13 + $0x544] ss:$8 sps:$4 sm:$0xff]  }
 0x58a   :  { %v2260_v17 = vpack.c.bf16 %v2194_v24, %v2194_v24  ;;  %v6446_v24 = vld [vmem:[#allocation13 + $0x564] ss:$8 sps:$4 sm:$0xff]  }
 0x58b   :  { %4506 = vmatpush1.bf16.msra.mxu1 %v6321_v0  ;;  %v6378_v0 = vld [vmem:[#allocation13 + $0x400] ss:$8 sps:$4 sm:$0xff]  }
 0x58c   :  { %4507 = vmatprep.subr.bf16.mxu1 %v6326_v51  ;;  %v2257_v51 = vpack.c.bf16 %v2191_v57, %v2191_v57  ;;  %v6443_v57 = vld [vmem:[#allocation13 + $0x554] ss:$8 sps:$4 sm:$0xff]  }
 0x58f   :  { %4508 = vmatpush1.bf16.msra.mxu1 %v6324_v4  ;;  %v6383_v4 = vld [vmem:[#allocation13 + $0x414] ss:$8 sps:$4 sm:$0xff]  }
 0x590   :  { %4509 = vmatprep.subr.bf16.mxu1 %v6329_v44  ;;  %v6386_v44 = vld [vmem:[#allocation13 + $0x424] ss:$8 sps:$4 sm:$0xff]  }
 0x593   :  { %4510 = vmatpush1.bf16.msra.mxu1 %v6327_v19  ;;  %v6387_v19 = vld [vmem:[#allocation13 + $0x430] ss:$8 sps:$4 sm:$0xff]  }
 0x594   :  { %4520 = vmatprep.subr.bf16.mxu1 %v6332_v46  ;;  %v6390_v46 = vld [vmem:[#allocation13 + $0x440] ss:$8 sps:$4 sm:$0xff]  }
 0x596   :  { %4512 = vmatmul.mubr.bf16.vlgmr.msra.gmra.mrb[40].mxu1 %v2255_v11  ;;  %v6398_v11 = vld [vmem:[#allocation13 + $0x464] ss:$8 sps:$4 sm:$0xff]  }
 0x597   :  { %4521 = vmatpush1.bf16.msra.mxu1 %v6330_v34  ;;  %4552 = vmatprep.mubr.bf16.mxu1 %v2258_v28  ;;  %v6393_v34 = vld [vmem:[#allocation13 + $0x450] ss:$8 sps:$4 sm:$0xff]   ;;  %v6401_v28 = vld [vmem:[#allocation13 + $0x474] ss:$8 sps:$4 sm:$0xff]  }
 0x598   :  { %4522 = vmatprep.subr.bf16.mxu1 %v6335_v62  ;;  %v6396_v62 = vld [vmem:[#allocation13 + $0x460] ss:$8 sps:$4 sm:$0xff]  }
 0x59b   :  { %4523 = vmatpush1.bf16.msra.mxu1 %v6333_v61  ;;  %v6399_v61 = vld [vmem:[#allocation13 + $0x470] ss:$8 sps:$4 sm:$0xff]  }
 0x59c   :  { %4524 = vmatprep.subr.bf16.mxu1 %v6338_v36  ;;  %v6404_v36 = vld [vmem:[#allocation13 + $0x484] ss:$8 sps:$4 sm:$0xff]  }
 0x59f   :  { %4525 = vmatpush1.bf16.msra.mxu1 %v6336_v21  ;;  %v6402_v21 = vld [vmem:[#allocation13 + $0x480] ss:$8 sps:$4 sm:$0xff]  }
 0x5a0   :  { %4526 = vmatprep.subr.bf16.mxu1 %v6341_v2  ;;  %v6407_v2 = vld [vmem:[#allocation13 + $0x494] ss:$8 sps:$4 sm:$0xff]  }
 0x5a3   :  { %4527 = vmatpush1.bf16.msra.mxu1 %v6339_v18  ;;  %v6405_v18 = vld [vmem:[#allocation13 + $0x490] ss:$8 sps:$4 sm:$0xff]  }
 0x5a4   :  { %4528 = vmatprep.subr.bf16.mxu1 %v6344_v40  ;;  %v6410_v40 = vld [vmem:[#allocation13 + $0x4a4] ss:$8 sps:$4 sm:$0xff]  }
 0x5a7   :  { %4529 = vmatpush1.bf16.msra.mxu1 %v6342_v52  ;;  %v6408_v52 = vld [vmem:[#allocation13 + $0x4a0] ss:$8 sps:$4 sm:$0xff]  }
 0x5a8   :  { %4530 = vmatprep.subr.bf16.mxu1 %v6347_v27  ;;  %v6413_v27 = vld [vmem:[#allocation13 + $0x4b4] ss:$8 sps:$4 sm:$0xff]  }
 0x5ab   :  { %4531 = vmatpush1.bf16.msra.mxu1 %v6345_v43  ;;  %v6411_v43 = vld [vmem:[#allocation13 + $0x4b0] ss:$8 sps:$4 sm:$0xff]  }
 0x5ac   :  { %4532 = vmatprep.subr.bf16.mxu1 %v6350_v14  ;;  %v6416_v14 = vld [vmem:[#allocation13 + $0x4c4] ss:$8 sps:$4 sm:$0xff]  }
 0x5af   :  { %4533 = vmatpush1.bf16.msra.mxu1 %v6348_v56  ;;  %v6414_v56 = vld [vmem:[#allocation13 + $0x4c0] ss:$8 sps:$4 sm:$0xff]  }
 0x5b0   :  { %4534 = vmatprep.subr.bf16.mxu1 %v6353_v54  ;;  %v6419_v54 = vld [vmem:[#allocation13 + $0x4d4] ss:$8 sps:$4 sm:$0xff]  }
 0x5b3   :  { %4535 = vmatpush1.bf16.msra.mxu1 %v6351_v33  ;;  %v6417_v33 = vld [vmem:[#allocation13 + $0x4d0] ss:$8 sps:$4 sm:$0xff]  }
 0x5b4   :  { %4536 = vmatprep.subr.bf16.mxu1 %v6356_v45  ;;  %v6422_v45 = vld [vmem:[#allocation13 + $0x4e4] ss:$8 sps:$4 sm:$0xff]  }
 0x5b7   :  { %4537 = vmatpush1.bf16.msra.mxu1 %v6354_v22  ;;  %v6420_v22 = vld [vmem:[#allocation13 + $0x4e0] ss:$8 sps:$4 sm:$0xff]  }
 0x5b8   :  { %4538 = vmatprep.subr.bf16.mxu1 %v6359_v7  ;;  %v2171_v7 = vadd.f32 %v8035_v59, %v8059_v58  ;;  %v6429_v58 = vld [vmem:[#allocation13 + $0x510] ss:$8 sps:$4 sm:$0xff]  }
 0x5bb   :  { %4539 = vmatpush1.bf16.msra.mxu1 %v6357_v53  ;;  %v6425_v53 = vld [vmem:[#allocation13 + $0x4f4] ss:$8 sps:$4 sm:$0xff]  }
 0x5bc   :  { %4540 = vmatprep.subr.bf16.mxu1 %v6362_v55  ;;  %v2174_v55 = vadd.f32 %v8035_v59, %v8068_v10  ;;  %v6432_v10 = vld [vmem:[#allocation13 + $0x520] ss:$8 sps:$4 sm:$0xff]  }
 0x5bf   :  { %4541 = vmatpush1.bf16.msra.mxu1 %v6360_v13  ;;  %v6423_v13 = vld [vmem:[#allocation13 + $0x4f0] ss:$8 sps:$4 sm:$0xff]  }
 0x5c0   :  { %4542 = vmatprep.subr.bf16.mxu1 %v6365_v6  ;;  %v2193_v6 = vmax.f32 %v2171_v7, 0.0  ;;  %v6488_v7 = vld [vmem:[#allocation13 + $0x644] ss:$8 sps:$4 sm:$0xff]  }
 0x5c3   :  { %4543 = vmatpush1.bf16.msra.mxu1 %v6363_v37  ;;  %v6428_v37 = vld [vmem:[#allocation13 + $0x504] ss:$8 sps:$4 sm:$0xff]  }
 0x5c4   :  { %4544 = vmatprep.subr.bf16.mxu1 %v6368_v35  ;;  %v2196_v35 = vmax.f32 %v2174_v55, 0.0  ;;  %v6491_v55 = vld [vmem:[#allocation13 + $0x654] ss:$8 sps:$4 sm:$0xff]  }
 0x5c7   :  { %4545 = vmatpush1.bf16.msra.mxu1 %v6366_v5  ;;  %v6426_v5 = vld [vmem:[#allocation13 + $0x500] ss:$8 sps:$4 sm:$0xff]  }
 0x5c8   :  { %4546 = vmatprep.subr.bf16.mxu1 %v6371_v60  ;;  %v2259_v60 = vpack.c.bf16 %v2193_v6, %v2193_v6  ;;  %v6494_v6 = vld [vmem:[#allocation13 + $0x664] ss:$8 sps:$4 sm:$0xff]  }
 0x5cb   :  { %4547 = vmatpush1.bf16.msra.mxu1 %v6369_v26  ;;  %v6431_v26 = vld [vmem:[#allocation13 + $0x514] ss:$8 sps:$4 sm:$0xff]  }
 0x5cc   :  { %4548 = vmatprep.subr.bf16.mxu1 %v6374_v39  ;;  %v2262_v39 = vpack.c.bf16 %v2196_v35, %v2196_v35  ;;  %v6497_v35 = vld [vmem:[#allocation13 + $0x674] ss:$8 sps:$4 sm:$0xff]  }
 0x5cf   :  { %4549 = vmatpush1.bf16.msra.mxu1 %v6372_v15  ;;  %v6434_v15 = vld [vmem:[#allocation13 + $0x524] ss:$8 sps:$4 sm:$0xff]  }
 0x5d0   :  { %4550 = vmatprep.subr.bf16.mxu1 %v6377_v38  ;;  %v6435_v38 = vld [vmem:[#allocation13 + $0x530] ss:$8 sps:$4 sm:$0xff]  }
 0x5d3   :  { %4551 = vmatpush1.bf16.msra.mxu1 %v6375_v30  ;;  %v6438_v30 = vld [vmem:[#allocation13 + $0x540] ss:$8 sps:$4 sm:$0xff]  }
 0x5d4   :  { %4561 = vmatprep.subr.bf16.mxu1 %v6380_v47  ;;  %v6441_v47 = vld [vmem:[#allocation13 + $0x550] ss:$8 sps:$4 sm:$0xff]  }
 0x5d6   :  { %4553 = vmatmul.mubr.bf16.vlgmr.msra.gmra.mrb[40].mxu1 %v2257_v51  ;;  %v6449_v51 = vld [vmem:[#allocation13 + $0x574] ss:$8 sps:$4 sm:$0xff]  }
 0x5d7   :  { %4562 = vmatpush1.bf16.msra.mxu1 %v6378_v0  ;;  %4593 = vmatprep.mubr.bf16.mxu1 %v2260_v17  ;;  %v6444_v0 = vld [vmem:[#allocation13 + $0x560] ss:$8 sps:$4 sm:$0xff]   ;;  %v6452_v17 = vld [vmem:[#allocation13 + $0x584] ss:$8 sps:$4 sm:$0xff]  }
 0x5d8   :  { %4563 = vmatprep.subr.bf16.mxu1 %v6383_v4  ;;  %v6447_v4 = vld [vmem:[#allocation13 + $0x570] ss:$8 sps:$4 sm:$0xff]  }
 0x5db   :  { %4564 = vmatpush1.bf16.msra.mxu1 %v6381_v63  ;;  %v6450_v63 = vld [vmem:[#allocation13 + $0x580] ss:$8 sps:$4 sm:$0xff]  }
 0x5dc   :  { %4565 = vmatprep.subr.bf16.mxu1 %v6386_v44  ;;  %v6455_v44 = vld [vmem:[#allocation13 + $0x594] ss:$8 sps:$4 sm:$0xff]  }
 0x5df   :  { %4566 = vmatpush1.bf16.msra.mxu1 %v6384_v9  ;;  %v6453_v9 = vld [vmem:[#allocation13 + $0x590] ss:$8 sps:$4 sm:$0xff]  }
 0x5e0   :  { %4567 = vmatprep.subr.bf16.mxu1 %v6389_v42  ;;  %v6458_v42 = vld [vmem:[#allocation13 + $0x5a4] ss:$8 sps:$4 sm:$0xff]  }
 0x5e3   :  { %4568 = vmatpush1.bf16.msra.mxu1 %v6387_v19  ;;  %v6456_v19 = vld [vmem:[#allocation13 + $0x5a0] ss:$8 sps:$4 sm:$0xff]  }
 0x5e4   :  { %4569 = vmatprep.subr.bf16.mxu1 %v6392_v1  ;;  %v6461_v1 = vld [vmem:[#allocation13 + $0x5b4] ss:$8 sps:$4 sm:$0xff]  }
 0x5e7   :  { %4570 = vmatpush1.bf16.msra.mxu1 %v6390_v46  ;;  %v6459_v46 = vld [vmem:[#allocation13 + $0x5b0] ss:$8 sps:$4 sm:$0xff]  }
 0x5e8   :  { %4571 = vmatprep.subr.bf16.mxu1 %v6395_v25  ;;  %v6464_v25 = vld [vmem:[#allocation13 + $0x5c4] ss:$8 sps:$4 sm:$0xff]  }
 0x5eb   :  { %4572 = vmatpush1.bf16.msra.mxu1 %v6393_v34  ;;  %v6462_v34 = vld [vmem:[#allocation13 + $0x5c0] ss:$8 sps:$4 sm:$0xff]  }
 0x5ec   :  { %4573 = vmatprep.subr.bf16.mxu1 %v6398_v11  ;;  %v6467_v11 = vld [vmem:[#allocation13 + $0x5d4] ss:$8 sps:$4 sm:$0xff]  }
 0x5ef   :  { %4574 = vmatpush1.bf16.msra.mxu1 %v6396_v62  ;;  %v6465_v62 = vld [vmem:[#allocation13 + $0x5d0] ss:$8 sps:$4 sm:$0xff]  }
 0x5f0   :  { %4575 = vmatprep.subr.bf16.mxu1 %v6401_v28  ;;  %v6470_v28 = vld [vmem:[#allocation13 + $0x5e4] ss:$8 sps:$4 sm:$0xff]  }
 0x5f3   :  { %4576 = vmatpush1.bf16.msra.mxu1 %v6399_v61  ;;  %v6468_v61 = vld [vmem:[#allocation13 + $0x5e0] ss:$8 sps:$4 sm:$0xff]  }
 0x5f4   :  { %4577 = vmatprep.subr.bf16.mxu1 %v6404_v36  ;;  %v2173_v36 = vadd.f32 %v8035_v59, %v8065_v8  ;;  %v6477_v8 = vld [vmem:[#allocation13 + $0x610] ss:$8 sps:$4 sm:$0xff]  }
 0x5f7   :  { %4578 = vmatpush1.bf16.msra.mxu1 %v6402_v21  ;;  %v6473_v21 = vld [vmem:[#allocation13 + $0x5f4] ss:$8 sps:$4 sm:$0xff]  }
 0x5f8   :  { %4579 = vmatprep.subr.bf16.mxu1 %v6407_v2  ;;  %v2176_v2 = vadd.f32 %v8035_v59, %v8074_v49  ;;  %v6480_v49 = vld [vmem:[#allocation13 + $0x620] ss:$8 sps:$4 sm:$0xff]  }
 0x5fb   :  { %4580 = vmatpush1.bf16.msra.mxu1 %v6405_v18  ;;  %v6471_v18 = vld [vmem:[#allocation13 + $0x5f0] ss:$8 sps:$4 sm:$0xff]  }
 0x5fc   :  { %4581 = vmatprep.subr.bf16.mxu1 %v6410_v40  ;;  %v2195_v40 = vmax.f32 %v2173_v36, 0.0  ;;  %v6537_v36 = vld [vmem:[#allocation13 + $0x750] ss:$8 sps:$4 sm:$0xff]  }
 0x5ff   :  { %4582 = vmatpush1.bf16.msra.mxu1 %v6408_v52  ;;  %v6476_v52 = vld [vmem:[#allocation13 + $0x604] ss:$8 sps:$4 sm:$0xff]  }
 0x600   :  { %4583 = vmatprep.subr.bf16.mxu1 %v6413_v27  ;;  %v2198_v27 = vmax.f32 %v2176_v2, 0.0  ;;  %v6540_v2 = vld [vmem:[#allocation13 + $0x760] ss:$8 sps:$4 sm:$0xff]  }
 0x603   :  { %4584 = vmatpush1.bf16.msra.mxu1 %v6411_v43  ;;  %v6474_v43 = vld [vmem:[#allocation13 + $0x600] ss:$8 sps:$4 sm:$0xff]  }
 0x604   :  { %4585 = vmatprep.subr.bf16.mxu1 %v6416_v14  ;;  %v2261_v14 = vpack.c.bf16 %v2195_v40, %v2195_v40  ;;  %v6543_v40 = vld [vmem:[#allocation13 + $0x770] ss:$8 sps:$4 sm:$0xff]  }
 0x607   :  { %4586 = vmatpush1.bf16.msra.mxu1 %v6414_v56  ;;  %v6479_v56 = vld [vmem:[#allocation13 + $0x614] ss:$8 sps:$4 sm:$0xff]  }
 0x608   :  { %4587 = vmatprep.subr.bf16.mxu1 %v6419_v54  ;;  %v2264_v54 = vpack.c.bf16 %v2198_v27, %v2198_v27  ;;  %v6546_v27 = vld [vmem:[#allocation13 + $0x780] ss:$8 sps:$4 sm:$0xff]  }
 0x60b   :  { %4588 = vmatpush1.bf16.msra.mxu1 %v6417_v33  ;;  %v6482_v33 = vld [vmem:[#allocation13 + $0x624] ss:$8 sps:$4 sm:$0xff]  }
 0x60c   :  { %4589 = vmatprep.subr.bf16.mxu1 %v6422_v45  ;;  %v6485_v45 = vld [vmem:[#allocation13 + $0x634] ss:$8 sps:$4 sm:$0xff]  }
 0x60f   :  { %4590 = vmatpush1.bf16.msra.mxu1 %v6420_v22  ;;  %v6483_v22 = vld [vmem:[#allocation13 + $0x630] ss:$8 sps:$4 sm:$0xff]  }
 0x610   :  { %4591 = vmatprep.subr.bf16.mxu1 %v6425_v53  ;;  %v6486_v53 = vld [vmem:[#allocation13 + $0x640] ss:$8 sps:$4 sm:$0xff]  }
 0x613   :  { %4592 = vmatpush1.bf16.msra.mxu1 %v6423_v13  ;;  %v6489_v13 = vld [vmem:[#allocation13 + $0x650] ss:$8 sps:$4 sm:$0xff]  }
 0x614   :  { %4602 = vmatprep.subr.bf16.mxu1 %v6428_v37  ;;  %v6492_v37 = vld [vmem:[#allocation13 + $0x660] ss:$8 sps:$4 sm:$0xff]  }
 0x616   :  { %4594 = vmatmul.mubr.bf16.vlgmr.msra.gmra.mrb[40].mxu1 %v2259_v60  ;;  %v6500_v60 = vld [vmem:[#allocation13 + $0x684] ss:$8 sps:$4 sm:$0xff]  }
 0x617   :  { %4603 = vmatpush1.bf16.msra.mxu1 %v6426_v5  ;;  %4634 = vmatprep.mubr.bf16.mxu1 %v2262_v39  ;;  %v6495_v5 = vld [vmem:[#allocation13 + $0x670] ss:$8 sps:$4 sm:$0xff]   ;;  %v6503_v39 = vld [vmem:[#allocation13 + $0x694] ss:$8 sps:$4 sm:$0xff]  }
 0x618   :  { %4604 = vmatprep.subr.bf16.mxu1 %v6431_v26  ;;  %v6498_v26 = vld [vmem:[#allocation13 + $0x680] ss:$8 sps:$4 sm:$0xff]  }
 0x61b   :  { %4605 = vmatpush1.bf16.msra.mxu1 %v6429_v58  ;;  %v6501_v58 = vld [vmem:[#allocation13 + $0x690] ss:$8 sps:$4 sm:$0xff]  }
 0x61c   :  { %4606 = vmatprep.subr.bf16.mxu1 %v6434_v15  ;;  %v6506_v15 = vld [vmem:[#allocation13 + $0x6a4] ss:$8 sps:$4 sm:$0xff]  }
 0x61f   :  { %4607 = vmatpush1.bf16.msra.mxu1 %v6432_v10  ;;  %v6504_v10 = vld [vmem:[#allocation13 + $0x6a0] ss:$8 sps:$4 sm:$0xff]  }
 0x620   :  { %4608 = vmatprep.subr.bf16.mxu1 %v6437_v16  ;;  %v6509_v16 = vld [vmem:[#allocation13 + $0x6b4] ss:$8 sps:$4 sm:$0xff]  }
 0x623   :  { %4609 = vmatpush1.bf16.msra.mxu1 %v6435_v38  ;;  %v6507_v38 = vld [vmem:[#allocation13 + $0x6b0] ss:$8 sps:$4 sm:$0xff]  }
 0x624   :  { %4610 = vmatprep.subr.bf16.mxu1 %v6440_v23  ;;  %v6512_v23 = vld [vmem:[#allocation13 + $0x6c4] ss:$8 sps:$4 sm:$0xff]  }
 0x627   :  { %4611 = vmatpush1.bf16.msra.mxu1 %v6438_v30  ;;  %v6510_v30 = vld [vmem:[#allocation13 + $0x6c0] ss:$8 sps:$4 sm:$0xff]  }
 0x628   :  { %4612 = vmatprep.subr.bf16.mxu1 %v6443_v57  ;;  %v6515_v57 = vld [vmem:[#allocation13 + $0x6d4] ss:$8 sps:$4 sm:$0xff]  }
 0x62b   :  { %4613 = vmatpush1.bf16.msra.mxu1 %v6441_v47  ;;  %v6513_v47 = vld [vmem:[#allocation13 + $0x6d0] ss:$8 sps:$4 sm:$0xff]  }
 0x62c   :  { %4614 = vmatprep.subr.bf16.mxu1 %v6446_v24  ;;  %v6518_v24 = vld [vmem:[#allocation13 + $0x6e4] ss:$8 sps:$4 sm:$0xff]  }
 0x62f   :  { %4615 = vmatpush1.bf16.msra.mxu1 %v6444_v0  ;;  %v6516_v0 = vld [vmem:[#allocation13 + $0x6e0] ss:$8 sps:$4 sm:$0xff]  }
 0x630   :  { %4616 = vmatprep.subr.bf16.mxu1 %v6449_v51  ;;  %v2175_v51 = vadd.f32 %v8035_v59, %v8071_v20  ;;  %v6525_v20 = vld [vmem:[#allocation13 + $0x710] ss:$8 sps:$4 sm:$0xff]  }
 0x633   :  { %4617 = vmatpush1.bf16.msra.mxu1 %v6447_v4  ;;  %v6521_v4 = vld [vmem:[#allocation13 + $0x6f4] ss:$8 sps:$4 sm:$0xff]  }
 0x634   :  { %4618 = vmatprep.subr.bf16.mxu1 %v6452_v17  ;;  %v2178_v17 = vadd.f32 %v8035_v59, %v8080_v50  ;;  %v6528_v59 = vld [vmem:[#allocation13 + $0x720] ss:$8 sps:$4 sm:$0xff]   ;;  %v6533_v50 = vld [vmem:[#allocation13 + $0x734] ss:$8 sps:$4 sm:$0xff]  }
 0x637   :  { %4619 = vmatpush1.bf16.msra.mxu1 %v6450_v63  ;;  %v6519_v63 = vld [vmem:[#allocation13 + $0x6f0] ss:$8 sps:$4 sm:$0xff]  }
 0x638   :  { %4620 = vmatprep.subr.bf16.mxu1 %v6455_v44  ;;  %v2197_v44 = vmax.f32 %v2175_v51, 0.0  ;;  %v6590_v51 = vld [vmem:[#allocation13 + $0x864] ss:$8 sps:$4 sm:$0xff]  }
 0x63b   :  { %4621 = vmatpush1.bf16.msra.mxu1 %v6453_v9  ;;  %v6524_v9 = vld [vmem:[#allocation13 + $0x704] ss:$8 sps:$4 sm:$0xff]  }
 0x63c   :  { %4622 = vmatprep.subr.bf16.mxu1 %v6458_v42  ;;  %v2200_v42 = vmax.f32 %v2178_v17, 0.0  ;;  %v6593_v17 = vld [vmem:[#allocation13 + $0x874] ss:$8 sps:$4 sm:$0xff]  }
 0x63f   :  { %4623 = vmatpush1.bf16.msra.mxu1 %v6456_v19  ;;  %v6522_v19 = vld [vmem:[#allocation13 + $0x700] ss:$8 sps:$4 sm:$0xff]  }
 0x640   :  { %4624 = vmatprep.subr.bf16.mxu1 %v6461_v1  ;;  %v2263_v1 = vpack.c.bf16 %v2197_v44, %v2197_v44  ;;  %v6596_v44 = vld [vmem:[#allocation13 + $0x884] ss:$8 sps:$4 sm:$0xff]  }
 0x643   :  { %4625 = vmatpush1.bf16.msra.mxu1 %v6459_v46  ;;  %v6527_v46 = vld [vmem:[#allocation13 + $0x714] ss:$8 sps:$4 sm:$0xff]  }
 0x644   :  { %4626 = vmatprep.subr.bf16.mxu1 %v6464_v25  ;;  %v2266_v25 = vpack.c.bf16 %v2200_v42, %v2200_v42  ;;  %v6599_v42 = vld [vmem:[#allocation13 + $0x894] ss:$8 sps:$4 sm:$0xff]  }
 0x647   :  { %4627 = vmatpush1.bf16.msra.mxu1 %v6462_v34  ;;  %v6530_v34 = vld [vmem:[#allocation13 + $0x724] ss:$8 sps:$4 sm:$0xff]  }
 0x648   :  { %4628 = vmatprep.subr.bf16.mxu1 %v6467_v11  ;;  %v6531_v11 = vld [vmem:[#allocation13 + $0x730] ss:$8 sps:$4 sm:$0xff]  }
 0x64b   :  { %4629 = vmatpush1.bf16.msra.mxu1 %v6465_v62  ;;  %v6536_v62 = vld [vmem:[#allocation13 + $0x744] ss:$8 sps:$4 sm:$0xff]  }
 0x64c   :  { %4630 = vmatprep.subr.bf16.mxu1 %v6470_v28  ;;  %v6534_v28 = vld [vmem:[#allocation13 + $0x740] ss:$8 sps:$4 sm:$0xff]  }
 0x64f   :  { %4631 = vmatpush1.bf16.msra.mxu1 %v6468_v61  ;;  %v6539_v61 = vld [vmem:[#allocation13 + $0x754] ss:$8 sps:$4 sm:$0xff]  }
 0x650   :  { %4632 = vmatprep.subr.bf16.mxu1 %v6473_v21  ;;  %v6542_v21 = vld [vmem:[#allocation13 + $0x764] ss:$8 sps:$4 sm:$0xff]  }
 0x653   :  { %4633 = vmatpush1.bf16.msra.mxu1 %v6471_v18  ;;  %v6545_v18 = vld [vmem:[#allocation13 + $0x774] ss:$8 sps:$4 sm:$0xff]  }
 0x654   :  { %4643 = vmatprep.subr.bf16.mxu1 %v6476_v52  ;;  %v6548_v52 = vld [vmem:[#allocation13 + $0x784] ss:$8 sps:$4 sm:$0xff]  }
 0x656   :  { %4635 = vmatmul.mubr.bf16.vlgmr.msra.gmra.mrb[40].mxu1 %v2261_v14  ;;  %v6549_v14 = vld [vmem:[#allocation13 + $0x790] ss:$8 sps:$4 sm:$0xff]  }
 0x657   :  { %4644 = vmatpush1.bf16.msra.mxu1 %v6474_v43  ;;  %4675 = vmatprep.mubr.bf16.mxu1 %v2264_v54  ;;  %v6551_v43 = vld [vmem:[#allocation13 + $0x794] ss:$8 sps:$4 sm:$0xff]   ;;  %v6552_v54 = vld [vmem:[#allocation13 + $0x7a0] ss:$8 sps:$4 sm:$0xff]  }
 0x658   :  { %4645 = vmatprep.subr.bf16.mxu1 %v6479_v56  ;;  %v6554_v56 = vld [vmem:[#allocation13 + $0x7a4] ss:$8 sps:$4 sm:$0xff]  }
 0x65b   :  { %4646 = vmatpush1.bf16.msra.mxu1 %v6477_v8  ;;  %v6557_v8 = vld [vmem:[#allocation13 + $0x7b4] ss:$8 sps:$4 sm:$0xff]  }
 0x65c   :  { %4647 = vmatprep.subr.bf16.mxu1 %v6482_v33  ;;  %v6555_v33 = vld [vmem:[#allocation13 + $0x7b0] ss:$8 sps:$4 sm:$0xff]  }
 0x65f   :  { %4648 = vmatpush1.bf16.msra.mxu1 %v6480_v49  ;;  %v6560_v49 = vld [vmem:[#allocation13 + $0x7c4] ss:$8 sps:$4 sm:$0xff]  }
 0x660   :  { %4649 = vmatprep.subr.bf16.mxu1 %v6485_v45  ;;  %v6558_v45 = vld [vmem:[#allocation13 + $0x7c0] ss:$8 sps:$4 sm:$0xff]  }
 0x663   :  { %4650 = vmatpush1.bf16.msra.mxu1 %v6483_v22  ;;  %v6563_v22 = vld [vmem:[#allocation13 + $0x7d4] ss:$8 sps:$4 sm:$0xff]  }
 0x664   :  { %4651 = vmatprep.subr.bf16.mxu1 %v6488_v7  ;;  %v6561_v7 = vld [vmem:[#allocation13 + $0x7d0] ss:$8 sps:$4 sm:$0xff]  }
 0x667   :  { %4652 = vmatpush1.bf16.msra.mxu1 %v6486_v53  ;;  %v6566_v53 = vld [vmem:[#allocation13 + $0x7e4] ss:$8 sps:$4 sm:$0xff]  }
 0x668   :  { %4653 = vmatprep.subr.bf16.mxu1 %v6491_v55  ;;  %v6564_v55 = vld [vmem:[#allocation13 + $0x7e0] ss:$8 sps:$4 sm:$0xff]  }
 0x66b   :  { %4654 = vmatpush1.bf16.msra.mxu1 %v6489_v13  ;;  %v8124_v13 = vld [vmem:[#allocation12] ss:$0 sm:$0xff] }
 0x66c   :  { %4655 = vmatprep.subr.bf16.mxu1 %v6494_v6  ;;  %v2177_v6 = vadd.f32 %v8124_v13, %v8077_v32  ;;  %v6573_v32 = vld [vmem:[#allocation13 + $0x810] ss:$8 sps:$4 sm:$0xff]  }
 0x66f   :  { %4656 = vmatpush1.bf16.msra.mxu1 %v6492_v37  ;;  %v6569_v37 = vld [vmem:[#allocation13 + $0x7f4] ss:$8 sps:$4 sm:$0xff]  }
 0x670   :  { %4657 = vmatprep.subr.bf16.mxu1 %v6497_v35  ;;  %v2180_v35 = vadd.f32 %v8124_v13, %v8090_v31  ;;  %v6576_v31 = vld [vmem:[#allocation13 + $0x820] ss:$8 sps:$4 sm:$0xff]  }
 0x673   :  { %4658 = vmatpush1.bf16.msra.mxu1 %v6495_v5  ;;  %v6567_v5 = vld [vmem:[#allocation13 + $0x7f0] ss:$8 sps:$4 sm:$0xff]  }
 0x674   :  { %4659 = vmatprep.subr.bf16.mxu1 %v6500_v60  ;;  %v2199_v60 = vmax.f32 %v2177_v6, 0.0  ;;  %v6627_v6 = vld [vmem:[#allocation13 + $0x930] ss:$8 sps:$4 sm:$0xff]  }
 0x677   :  { %4660 = vmatpush1.bf16.msra.mxu1 %v6498_v26  ;;  %v6572_v26 = vld [vmem:[#allocation13 + $0x804] ss:$8 sps:$4 sm:$0xff]  }
 0x678   :  { %4661 = vmatprep.subr.bf16.mxu1 %v6503_v39  ;;  %v2202_v39 = vmax.f32 %v2180_v35, 0.0  ;;  %v6721_v35 = vld [vmem:[#allocation16 + $0x18] sm:$0xff]  }
 0x67b   :  { %4662 = vmatpush1.bf16.msra.mxu1 %v6501_v58  ;;  %v6570_v58 = vld [vmem:[#allocation13 + $0x800] ss:$8 sps:$4 sm:$0xff]  }
 0x67c   :  { %4663 = vmatprep.subr.bf16.mxu1 %v6506_v15  ;;  %v2265_v15 = vpack.c.bf16 %v2199_v60, %v2199_v60  ;;  %v6630_v60 = vld [vmem:[#allocation13 + $0x940] ss:$8 sps:$4 sm:$0xff]  }
 0x67f   :  { %4664 = vmatpush1.bf16.msra.mxu1 %v6504_v10  ;;  %v6575_v10 = vld [vmem:[#allocation13 + $0x814] ss:$8 sps:$4 sm:$0xff]  }
 0x680   :  { %4665 = vmatprep.subr.bf16.mxu1 %v6509_v16  ;;  %v2268_v16 = vpack.c.bf16 %v2202_v39, %v2202_v39  ;;  %v6723_v39 = vld [vmem:[#allocation16 + $0x20] sm:$0xff]  }
 0x683   :  { %4666 = vmatpush1.bf16.msra.mxu1 %v6507_v38  ;;  %v6578_v38 = vld [vmem:[#allocation13 + $0x824] ss:$8 sps:$4 sm:$0xff]  }
 0x684   :  { %4667 = vmatprep.subr.bf16.mxu1 %v6512_v23  ;;  %v6581_v23 = vld [vmem:[#allocation13 + $0x834] ss:$8 sps:$4 sm:$0xff]  }
 0x687   :  { %4668 = vmatpush1.bf16.msra.mxu1 %v6510_v30  ;;  %v6579_v30 = vld [vmem:[#allocation13 + $0x830] ss:$8 sps:$4 sm:$0xff]  }
 0x688   :  { %4669 = vmatprep.subr.bf16.mxu1 %v6515_v57  ;;  %v6584_v57 = vld [vmem:[#allocation13 + $0x844] ss:$8 sps:$4 sm:$0xff]  }
 0x68b   :  { %4670 = vmatpush1.bf16.msra.mxu1 %v6513_v47  ;;  %v6582_v47 = vld [vmem:[#allocation13 + $0x840] ss:$8 sps:$4 sm:$0xff]  }
 0x68c   :  { %4671 = vmatprep.subr.bf16.mxu1 %v6518_v24  ;;  %v6587_v24 = vld [vmem:[#allocation13 + $0x854] ss:$8 sps:$4 sm:$0xff]  }
 0x68f   :  { %4672 = vmatpush1.bf16.msra.mxu1 %v6516_v0  ;;  %v6585_v0 = vld [vmem:[#allocation13 + $0x850] ss:$8 sps:$4 sm:$0xff]  }
 0x690   :  { %4673 = vmatprep.subr.bf16.mxu1 %v6521_v4  ;;  %v6588_v4 = vld [vmem:[#allocation13 + $0x860] ss:$8 sps:$4 sm:$0xff]  }
 0x693   :  { %4674 = vmatpush1.bf16.msra.mxu1 %v6519_v63  ;;  %v6591_v63 = vld [vmem:[#allocation13 + $0x870] ss:$8 sps:$4 sm:$0xff]  }
 0x694   :  { %4684 = vmatprep.subr.bf16.mxu1 %v6524_v9  ;;  %v6594_v9 = vld [vmem:[#allocation13 + $0x880] ss:$8 sps:$4 sm:$0xff]  }
 0x696   :  { %4676 = vmatmul.mubr.bf16.vlgmr.msra.gmra.mrb[40].mxu1 %v2263_v1  ;;  %v6602_v1 = vld [vmem:[#allocation13 + $0x8a4] ss:$8 sps:$4 sm:$0xff]  }
 0x697   :  { %4685 = vmatpush1.bf16.msra.mxu1 %v6522_v19  ;;  %4716 = vmatprep.mubr.bf16.mxu1 %v2266_v25  ;;  %v6597_v19 = vld [vmem:[#allocation13 + $0x890] ss:$8 sps:$4 sm:$0xff]   ;;  %v6605_v25 = vld [vmem:[#allocation13 + $0x8b4] ss:$8 sps:$4 sm:$0xff]  }
 0x698   :  { %4686 = vmatprep.subr.bf16.mxu1 %v6527_v46  ;;  %v6600_v46 = vld [vmem:[#allocation13 + $0x8a0] ss:$8 sps:$4 sm:$0xff]  }
 0x69b   :  { %4687 = vmatpush1.bf16.msra.mxu1 %v6525_v20  ;;  %v6603_v20 = vld [vmem:[#allocation13 + $0x8b0] ss:$8 sps:$4 sm:$0xff]  }
 0x69c   :  { %4688 = vmatprep.subr.bf16.mxu1 %v6530_v34  ;;  %v6608_v34 = vld [vmem:[#allocation13 + $0x8c4] ss:$8 sps:$4 sm:$0xff]  }
 0x69f   :  { %4689 = vmatpush1.bf16.msra.mxu1 %v6528_v59  ;;  %v6606_v59 = vld [vmem:[#allocation13 + $0x8c0] ss:$8 sps:$4 sm:$0xff]  }
 0x6a0   :  { %4690 = vmatprep.subr.bf16.mxu1 %v6533_v50  ;;  %v6611_v50 = vld [vmem:[#allocation13 + $0x8d4] ss:$8 sps:$4 sm:$0xff]  }
 0x6a3   :  { %4691 = vmatpush1.bf16.msra.mxu1 %v6531_v11  ;;  %v6609_v11 = vld [vmem:[#allocation13 + $0x8d0] ss:$8 sps:$4 sm:$0xff]  }
 0x6a4   :  { %4692 = vmatprep.subr.bf16.mxu1 %v6536_v62  ;;  %v6614_v62 = vld [vmem:[#allocation13 + $0x8e4] ss:$8 sps:$4 sm:$0xff]  }
 0x6a7   :  { %4693 = vmatpush1.bf16.msra.mxu1 %v6534_v28  ;;  %v6612_v28 = vld [vmem:[#allocation13 + $0x8e0] ss:$8 sps:$4 sm:$0xff]  }
 0x6a8   :  { %4694 = vmatprep.subr.bf16.mxu1 %v6539_v61  ;;  %v2179_v61 = vadd.f32 %v8124_v13, %v8083_v3  ;;  %v6715_v3 = vld [vmem:[#allocation16] sm:$0xff]  }
 0x6ab   :  { %4695 = vmatpush1.bf16.msra.mxu1 %v6537_v36  ;;  %v6617_v36 = vld [vmem:[#allocation13 + $0x8f4] ss:$8 sps:$4 sm:$0xff]  }
 0x6ac   :  { %4696 = vmatprep.subr.bf16.mxu1 %v6542_v21  ;;  %v2182_v21 = vadd.f32 %v8124_v13, %v8096_v12  ;;  %v6626_v12 = vld [vmem:[#allocation13 + $0x924] ss:$8 sps:$4 sm:$0xff]  }
 0x6af   :  { %4697 = vmatpush1.bf16.msra.mxu1 %v6540_v2  ;;  %v6615_v2 = vld [vmem:[#allocation13 + $0x8f0] ss:$8 sps:$4 sm:$0xff]  }
 0x6b0   :  { %4698 = vmatprep.subr.bf16.mxu1 %v6545_v18  ;;  %v2201_v18 = vmax.f32 %v2179_v61, 0.0 }
 0x6b3   :  { %4699 = vmatpush1.bf16.msra.mxu1 %v6543_v40  ;;  %v6620_v40 = vld [vmem:[#allocation13 + $0x904] ss:$8 sps:$4 sm:$0xff]  }
 0x6b4   :  { %4700 = vmatprep.subr.bf16.mxu1 %v6548_v52  ;;  %v2204_v52 = vmax.f32 %v2182_v21, 0.0 }
 0x6b7   :  { %4701 = vmatpush1.bf16.msra.mxu1 %v6546_v27  ;;  %v6618_v27 = vld [vmem:[#allocation13 + $0x900] ss:$8 sps:$4 sm:$0xff]  }
 0x6b8   :  { %4702 = vmatprep.subr.bf16.mxu1 %v6551_v43  ;;  %v2267_v43 = vpack.c.bf16 %v2201_v18, %v2201_v18 }
 0x6bb   :  { %4703 = vmatpush1.bf16.msra.mxu1 %v6549_v14  ;;  %v6623_v14 = vld [vmem:[#allocation13 + $0x914] ss:$8 sps:$4 sm:$0xff]  }
 0x6bc   :  { %4704 = vmatprep.subr.bf16.mxu1 %v6554_v56  ;;  %v2270_v56 = vpack.c.bf16 %v2204_v52, %v2204_v52  ;;  %v6677_v52 = vld [vmem:[#allocation13 + $0xa34] ss:$8 sps:$4 sm:$0xff]  }
 0x6bf   :  { %4705 = vmatpush1.bf16.msra.mxu1 %v6552_v54  ;;  %v6714_v54 = vld [vmem:[#allocation16 + $0x40] sm:$0xff]  }
 0x6c0   :  { %4706 = vmatprep.subr.bf16.mxu1 %v6557_v8  ;;  %v6716_v8 = vld [vmem:[#allocation16 + $0x48] sm:$0xff]   ;;  %5648 = vmatprep.subr.bf16.mxu0 %v6714_v54 }
 0x6c1   :  { %5649 = vmatpush3.bf16.msra.mxu0 %v6715_v3  ;;  %v6681_v54 = vld [vmem:[#allocation13 + $0xa50] ss:$8 sps:$4 sm:$0xff]   ;;  %v6686_v3 = vld [vmem:[#allocation13 + $0xa64] ss:$8 sps:$4 sm:$0xff]  }
 0x6c2   :  { %5650 = vmatprep.subr.bf16.mxu0 %v6716_v8  ;;  %v6684_v8 = vld [vmem:[#allocation13 + $0xa60] ss:$8 sps:$4 sm:$0xff]  }
 0x6c3   :  { %4707 = vmatpush1.bf16.msra.mxu1 %v6555_v33  ;;  %v6621_v33 = vld [vmem:[#allocation13 + $0x910] ss:$8 sps:$4 sm:$0xff]  }
 0x6c4   :  { %4708 = vmatprep.subr.bf16.mxu1 %v6560_v49  ;;  %v6717_v49 = vld [vmem:[#allocation16 + $0x8] sm:$0xff]  }
 0x6c5   :  { %5651 = vmatpush3.bf16.msra.mxu0 %v6717_v49  ;;  %v6692_v49 = vld [vmem:[#allocation13 + $0xa84] ss:$8 sps:$4 sm:$0xff]  }
 0x6c7   :  { %4709 = vmatpush1.bf16.msra.mxu1 %v6558_v45  ;;  %v6718_v45 = vld [vmem:[#allocation16 + $0x50] sm:$0xff]  }
 0x6c8   :  { %4710 = vmatprep.subr.bf16.mxu1 %v6563_v22  ;;  %v6624_v22 = vld [vmem:[#allocation13 + $0x920] ss:$8 sps:$4 sm:$0xff]   ;;  %5652 = vmatprep.subr.bf16.mxu0 %v6718_v45 }
 0x6c9   :  { %v6690_v45 = vld [vmem:[#allocation13 + $0xa80] ss:$8 sps:$4 sm:$0xff]  }
 0x6cb   :  { %4711 = vmatpush1.bf16.msra.mxu1 %v6561_v7  ;;  %v6629_v7 = vld [vmem:[#allocation13 + $0x934] ss:$8 sps:$4 sm:$0xff]  }
 0x6cc   :  { %4712 = vmatprep.subr.bf16.mxu1 %v6566_v53  ;;  %v6719_v53 = vld [vmem:[#allocation16 + $0x10] sm:$0xff]  }
 0x6cd   :  { %5653 = vmatpush3.bf16.msra.mxu0 %v6719_v53  ;;  %v6698_v53 = vld [vmem:[#allocation13 + $0xaa4] ss:$8 sps:$4 sm:$0xff]  }
 0x6cf   :  { %4713 = vmatpush1.bf16.msra.mxu1 %v6564_v55  ;;  %v6720_v55 = vld [vmem:[#allocation16 + $0x58] sm:$0xff]  }
 0x6d0   :  { %4714 = vmatprep.subr.bf16.mxu1 %v6569_v37  ;;  %v6632_v37 = vld [vmem:[#allocation13 + $0x944] ss:$8 sps:$4 sm:$0xff]   ;;  %5654 = vmatprep.subr.bf16.mxu0 %v6720_v55  ;;  %v6696_v55 = vld [vmem:[#allocation13 + $0xaa0] ss:$8 sps:$4 sm:$0xff]  }
 0x6d1   :  { %5655 = vmatpush3.bf16.msra.mxu0 %v6721_v35  ;;  %v6704_v35 = vld [vmem:[#allocation13 + $0xac4] ss:$8 sps:$4 sm:$0xff]  }
 0x6d3   :  { %4715 = vmatpush1.bf16.msra.mxu1 %v6567_v5  ;;  %v6722_v5 = vld [vmem:[#allocation16 + $0x60] sm:$0xff]  }
 0x6d4   :  { %4725 = vmatprep.subr.bf16.mxu1 %v6572_v26  ;;  %v6635_v26 = vld [vmem:[#allocation13 + $0x954] ss:$8 sps:$4 sm:$0xff]   ;;  %5656 = vmatprep.subr.bf16.mxu0 %v6722_v5  ;;  %v6702_v5 = vld [vmem:[#allocation13 + $0xac0] ss:$8 sps:$4 sm:$0xff]  }
 0x6d5   :  { %5657 = vmatpush3.bf16.msra.mxu0 %v6723_v39  ;;  %v6710_v39 = vld [vmem:[#allocation13 + $0xae4] ss:$8 sps:$4 sm:$0xff]  }
 0x6d6   :  { %4717 = vmatmul.mubr.bf16.vlgmr.msra.gmra.mrb[40].mxu1 %v2265_v15  ;;  %v6633_v15 = vld [vmem:[#allocation13 + $0x950] ss:$8 sps:$4 sm:$0xff]  }
 0x6d7   :  { %4726 = vmatpush1.bf16.msra.mxu1 %v6570_v58  ;;  %4757 = vmatprep.mubr.bf16.mxu1 %v2268_v16  ;;  %v6724_v58 = vld [vmem:[#allocation16 + $0x68] sm:$0xff]  }
 0x6d8   :  { %4727 = vmatprep.subr.bf16.mxu1 %v6575_v10  ;;  %v6638_v10 = vld [vmem:[#allocation13 + $0x964] ss:$8 sps:$4 sm:$0xff]   ;;  %5658 = vmatprep.subr.bf16.mxu0 %v6724_v58  ;;  %v6708_v58 = vld [vmem:[#allocation13 + $0xae0] ss:$8 sps:$4 sm:$0xff]  }
 0x6d9   :  { %v6725_v16 = vld [vmem:[#allocation16 + $0x28] sm:$0xff]  }
 0x6da   :  { %5659 = vmatpush3.bf16.msra.mxu0 %v6725_v16  ;;  %v6711_v16 = vld [vmem:[#allocation13 + $0xaf0] ss:$8 sps:$4 sm:$0xff]  }
 0x6db   :  { %4728 = vmatpush1.bf16.msra.mxu1 %v6573_v32  ;;  %v6726_v32 = vld [vmem:[#allocation16 + $0x70] sm:$0xff]  }
 0x6dc   :  { %4729 = vmatprep.subr.bf16.mxu1 %v6578_v38  ;;  %v6636_v38 = vld [vmem:[#allocation13 + $0x960] ss:$8 sps:$4 sm:$0xff]   ;;  %5660 = vmatprep.subr.bf16.mxu0 %v6726_v32 }
 0x6df   :  { %4730 = vmatpush1.bf16.msra.mxu1 %v6576_v31  ;;  %v6641_v31 = vld [vmem:[#allocation13 + $0x974] ss:$8 sps:$4 sm:$0xff]  }
 0x6e0   :  { %4731 = vmatprep.subr.bf16.mxu1 %v6581_v23  ;;  %v6727_v23 = vld [vmem:[#allocation16 + $0x30] sm:$0xff]  }
 0x6e1   :  { %5661 = vmatpush3.bf16.msra.mxu0 %v6727_v23 }
 0x6e3   :  { %4732 = vmatpush1.bf16.msra.mxu1 %v6579_v30  ;;  %v6728_v30 = vld [vmem:[#allocation16 + $0x78] sm:$0xff]  }
 0x6e4   :  { %4733 = vmatprep.subr.bf16.mxu1 %v6584_v57  ;;  %v6639_v57 = vld [vmem:[#allocation13 + $0x970] ss:$8 sps:$4 sm:$0xff]   ;;  %5662 = vmatprep.subr.bf16.mxu0 %v6728_v30 }
 0x6e7   :  { %4734 = vmatpush1.bf16.msra.mxu1 %v6582_v47  ;;  %v6644_v47 = vld [vmem:[#allocation13 + $0x984] ss:$8 sps:$4 sm:$0xff]  }
 0x6e8   :  { %4735 = vmatprep.subr.bf16.mxu1 %v6587_v24  ;;  %v6729_v24 = vld [vmem:[#allocation16 + $0x38] sm:$0xff]  }
 0x6e9   :  { %5663 = vmatpush3.bf16.msra.mxu0 %v6729_v24 }
 0x6eb   :  { %4736 = vmatpush1.bf16.msra.mxu1 %v6585_v0  ;;  %v6642_v0 = vld [vmem:[#allocation13 + $0x980] ss:$8 sps:$4 sm:$0xff]  }
 0x6ec   :  { %4737 = vmatprep.subr.bf16.mxu1 %v6590_v51  ;;  %v6647_v51 = vld [vmem:[#allocation13 + $0x994] ss:$8 sps:$4 sm:$0xff]  }
 0x6ef   :  { %4738 = vmatpush1.bf16.msra.mxu1 %v6588_v4  ;;  %v6645_v4 = vld [vmem:[#allocation13 + $0x990] ss:$8 sps:$4 sm:$0xff]  }
 0x6f0   :  { %4739 = vmatprep.subr.bf16.mxu1 %v6593_v17  ;;  %v6650_v17 = vld [vmem:[#allocation13 + $0x9a4] ss:$8 sps:$4 sm:$0xff]  }
 0x6f3   :  { %4740 = vmatpush1.bf16.msra.mxu1 %v6591_v63  ;;  %v6648_v63 = vld [vmem:[#allocation13 + $0x9a0] ss:$8 sps:$4 sm:$0xff]  }
 0x6f4   :  { %4741 = vmatprep.subr.bf16.mxu1 %v6596_v44  ;;  %v6653_v44 = vld [vmem:[#allocation13 + $0x9b4] ss:$8 sps:$4 sm:$0xff]  }
 0x6f7   :  { %4742 = vmatpush1.bf16.msra.mxu1 %v6594_v9  ;;  %v6651_v9 = vld [vmem:[#allocation13 + $0x9b0] ss:$8 sps:$4 sm:$0xff]  }
 0x6f8   :  { %4743 = vmatprep.subr.bf16.mxu1 %v6599_v42  ;;  %v6656_v42 = vld [vmem:[#allocation13 + $0x9c4] ss:$8 sps:$4 sm:$0xff]  }
 0x6fb   :  { %4744 = vmatpush1.bf16.msra.mxu1 %v6597_v19  ;;  %v6654_v19 = vld [vmem:[#allocation13 + $0x9c0] ss:$8 sps:$4 sm:$0xff]  }
 0x6fc   :  { %4745 = vmatprep.subr.bf16.mxu1 %v6602_v1  ;;  %v6659_v1 = vld [vmem:[#allocation13 + $0x9d4] ss:$8 sps:$4 sm:$0xff]  }
 0x6ff   :  { %4746 = vmatpush1.bf16.msra.mxu1 %v6600_v46  ;;  %v6657_v46 = vld [vmem:[#allocation13 + $0x9d0] ss:$8 sps:$4 sm:$0xff]  }
 0x700   :  { %4747 = vmatprep.subr.bf16.mxu1 %v6605_v25  ;;  %v6662_v25 = vld [vmem:[#allocation13 + $0x9e4] ss:$8 sps:$4 sm:$0xff]  }
 0x703   :  { %4748 = vmatpush1.bf16.msra.mxu1 %v6603_v20  ;;  %v6660_v20 = vld [vmem:[#allocation13 + $0x9e0] ss:$8 sps:$4 sm:$0xff]  }
 0x704   :  { %4749 = vmatprep.subr.bf16.mxu1 %v6608_v34  ;;  %v2181_v34 = vadd.f32 %v8124_v13, %v8093_v29  ;;  %v6669_v29 = vld [vmem:[#allocation13 + $0xa10] ss:$8 sps:$4 sm:$0xff]  }
 0x707   :  { %4750 = vmatpush1.bf16.msra.mxu1 %v6606_v59  ;;  %v6665_v59 = vld [vmem:[#allocation13 + $0x9f4] ss:$8 sps:$4 sm:$0xff]  }
 0x708   :  { %4751 = vmatprep.subr.bf16.mxu1 %v6611_v50  ;;  %v2184_v50 = vadd.f32 %v8124_v13, %v8102_v41  ;;  %v6672_v41 = vld [vmem:[#allocation13 + $0xa20] ss:$8 sps:$4 sm:$0xff]  }
 0x70a   :  { %v2206_v61 = vmax.f32 %v2184_v50, 0.0 }
 0x70b   :  { %4752 = vmatpush1.bf16.msra.mxu1 %v6609_v11  ;;  %v6663_v11 = vld [vmem:[#allocation13 + $0x9f0] ss:$8 sps:$4 sm:$0xff]  }
 0x70c   :  { %4753 = vmatprep.subr.bf16.mxu1 %v6614_v62  ;;  %v2203_v62 = vmax.f32 %v2181_v34, 0.0  ;;  %v2272_v18 = vpack.c.bf16 %v2206_v61, %v2206_v61 }
 0x70e   :  { %v2269_v21 = vpack.c.bf16 %v2203_v62, %v2203_v62 }
 0x70f   :  { %4754 = vmatpush1.bf16.msra.mxu1 %v6612_v28  ;;  %v6668_v28 = vld [vmem:[#allocation13 + $0xa04] ss:$8 sps:$4 sm:$0xff]  }
 0x710   :  { %4755 = vmatprep.subr.bf16.mxu1 %v6617_v36  ;;  %v6666_v36 = vld [vmem:[#allocation13 + $0xa00] ss:$8 sps:$4 sm:$0xff]  }
 0x713   :  { %4756 = vmatpush1.bf16.msra.mxu1 %v6615_v2  ;;  %v6671_v2 = vld [vmem:[#allocation13 + $0xa14] ss:$8 sps:$4 sm:$0xff]  }
 0x714   :  { %4766 = vmatprep.subr.bf16.mxu1 %v6620_v40  ;;  %v6674_v40 = vld [vmem:[#allocation13 + $0xa24] ss:$8 sps:$4 sm:$0xff]  }
 0x716   :  { %4758 = vmatmul.mubr.bf16.vlgmr.msra.gmra.mrb[40].mxu1 %v2267_v43  ;;  %v6680_v43 = vld [vmem:[#allocation13 + $0xa44] ss:$8 sps:$4 sm:$0xff]  }
 0x717   :  { %4767 = vmatpush1.bf16.msra.mxu1 %v6618_v27  ;;  %4798 = vmatprep.mubr.bf16.mxu1 %v2270_v56  ;;  %v6675_v27 = vld [vmem:[#allocation13 + $0xa30] ss:$8 sps:$4 sm:$0xff]   ;;  %v6683_v56 = vld [vmem:[#allocation13 + $0xa54] ss:$8 sps:$4 sm:$0xff]  }
 0x718   :  { %4768 = vmatprep.subr.bf16.mxu1 %v6623_v14  ;;  %v6678_v14 = vld [vmem:[#allocation13 + $0xa40] ss:$8 sps:$4 sm:$0xff]  }
 0x71b   :  { %4769 = vmatpush1.bf16.msra.mxu1 %v6621_v33  ;;  %v6689_v33 = vld [vmem:[#allocation13 + $0xa74] ss:$8 sps:$4 sm:$0xff]  }
 0x71c   :  { %4770 = vmatprep.subr.bf16.mxu1 %v6626_v12  ;;  %v6687_v12 = vld [vmem:[#allocation13 + $0xa70] ss:$8 sps:$4 sm:$0xff]  }
 0x71f   :  { %4771 = vmatpush1.bf16.msra.mxu1 %v6624_v22  ;;  %v6695_v22 = vld [vmem:[#allocation13 + $0xa94] ss:$8 sps:$4 sm:$0xff]  }
 0x720   :  { %4772 = vmatprep.subr.bf16.mxu1 %v6629_v7  ;;  %v6693_v7 = vld [vmem:[#allocation13 + $0xa90] ss:$8 sps:$4 sm:$0xff]  }
 0x723   :  { %4773 = vmatpush1.bf16.msra.mxu1 %v6627_v6  ;;  %v6701_v6 = vld [vmem:[#allocation13 + $0xab4] ss:$8 sps:$4 sm:$0xff]  }
 0x724   :  { %4774 = vmatprep.subr.bf16.mxu1 %v6632_v37  ;;  %v6699_v37 = vld [vmem:[#allocation13 + $0xab0] ss:$8 sps:$4 sm:$0xff]  }
 0x727   :  { %4775 = vmatpush1.bf16.msra.mxu1 %v6630_v60  ;;  %v6707_v60 = vld [vmem:[#allocation13 + $0xad4] ss:$8 sps:$4 sm:$0xff]  }
 0x728   :  { %4776 = vmatprep.subr.bf16.mxu1 %v6635_v26  ;;  %v6705_v26 = vld [vmem:[#allocation13 + $0xad0] ss:$8 sps:$4 sm:$0xff]  }
 0x72b   :  { %4777 = vmatpush1.bf16.msra.mxu1 %v6633_v15  ;;  %v2183_v15 = vadd.f32 %v8124_v13, %v8099_v48 }
 0x72c   :  { %4778 = vmatprep.subr.bf16.mxu1 %v6638_v10  ;;  %v6713_v10 = vld [vmem:[#allocation13 + $0xaf4] ss:$8 sps:$4 sm:$0xff]  }
 0x72d   :  { %v2205_v32 = vmax.f32 %v2183_v15, 0.0 }
 0x72f   :  { %4779 = vmatpush1.bf16.msra.mxu1 %v6636_v38  ;;  %v2271_v38 = vpack.c.bf16 %v2205_v32, %v2205_v32 }
 0x730   :  { %4780 = vmatprep.subr.bf16.mxu1 %v6641_v31  ;;  %v2627_v31 = vlaneseq }
 0x732   :  { %v2628_v23 = vshrl.u32 %v2627_v31, 7 }
 0x733   :  { %4781 = vmatpush1.bf16.msra.mxu1 %v6639_v57  ;;  %v2625_v57 = vld [vmem:[#allocation15] sm:$0x3] }
 0x734   :  { %4782 = vmatprep.subr.bf16.mxu1 %v6644_v47  ;;  %v2629_v30 = vsub.s32 0, %v2628_v23  ;;  %v2633_v47 = vsub.s32 1, %v2628_v23 }
 0x736   :  { %v2630_v24 = vrot.slane %v2625_v57, %v2629_v30 }
 0x737   :  { %4783 = vmatpush1.bf16.msra.mxu1 %v6642_v0  ;;  %v2634_v0 = vrot.slane %v2625_v57, %v2633_v47 }
 0x738   :  { %4784 = vmatprep.subr.bf16.mxu1 %v6647_v51 }
 0x73b   :  { %4785 = vmatpush1.bf16.msra.mxu1 %v6645_v4 }
 0x73c   :  { %4786 = vmatprep.subr.bf16.mxu1 %v6650_v17 }
 0x73f   :  { %4787 = vmatpush1.bf16.msra.mxu1 %v6648_v63 }
 0x740   :  { %4788 = vmatprep.subr.bf16.mxu1 %v6653_v44 }
 0x743   :  { %4789 = vmatpush1.bf16.msra.mxu1 %v6651_v9 }
 0x744   :  { %4790 = vmatprep.subr.bf16.mxu1 %v6656_v42 }
 0x747   :  { %4791 = vmatpush1.bf16.msra.mxu1 %v6654_v19 }
 0x748   :  { %4792 = vmatprep.subr.bf16.mxu1 %v6659_v1 }
 0x74b   :  { %4793 = vmatpush1.bf16.msra.mxu1 %v6657_v46  ;;  %v5511_v46 = vld [vmem:[#allocation18] ss:$0 sm:$0xff] }
 0x74c   :  { %4794 = vmatprep.subr.bf16.mxu1 %v6662_v25 }
 0x74f   :  { %4795 = vmatpush1.bf16.msra.mxu1 %v6660_v20 }
 0x750   :  { %4796 = vmatprep.subr.bf16.mxu1 %v6665_v59 }
 0x753   :  { %4797 = vmatpush1.bf16.msra.mxu1 %v6663_v11 }
 0x754   :  { %4807 = vmatprep.subr.bf16.mxu1 %v6668_v28 }
 0x756   :  { %4799 = vmatmul.mubr.bf16.vlgmr.msra.gmra.mrb[40].mxu1 %v2269_v21 }
 0x757   :  { %4808 = vmatpush1.bf16.msra.mxu1 %v6666_v36  ;;  %4839 = vmatprep.mubr.bf16.mxu1 %v2272_v18 }
 0x758   :  { %4809 = vmatprep.subr.bf16.mxu1 %v6671_v2 }
 0x75b   :  { %4810 = vmatpush1.bf16.msra.mxu1 %v6669_v29 }
 0x75c   :  { %4811 = vmatprep.subr.bf16.mxu1 %v6674_v40 }
 0x75f   :  { %4812 = vmatpush1.bf16.msra.mxu1 %v6672_v41 }
 0x760   :  { %4813 = vmatprep.subr.bf16.mxu1 %v6677_v52 }
 0x763   :  { %4814 = vmatpush1.bf16.msra.mxu1 %v6675_v27 }
 0x764   :  { %4815 = vmatprep.subr.bf16.mxu1 %v6680_v43 }
 0x767   :  { %4816 = vmatpush1.bf16.msra.mxu1 %v6678_v14 }
 0x768   :  { %4817 = vmatprep.subr.bf16.mxu1 %v6683_v56 }
 0x76b   :  { %4818 = vmatpush1.bf16.msra.mxu1 %v6681_v54 }
 0x76c   :  { %4819 = vmatprep.subr.bf16.mxu1 %v6686_v3 }
 0x76f   :  { %4820 = vmatpush1.bf16.msra.mxu1 %v6684_v8 }
 0x770   :  { %4821 = vmatprep.subr.bf16.mxu1 %v6689_v33 }
 0x773   :  { %4822 = vmatpush1.bf16.msra.mxu1 %v6687_v12 }
 0x774   :  { %4823 = vmatprep.subr.bf16.mxu1 %v6692_v49 }
 0x777   :  { %4824 = vmatpush1.bf16.msra.mxu1 %v6690_v45 }
 0x778   :  { %4825 = vmatprep.subr.bf16.mxu1 %v6695_v22 }
 0x77b   :  { %4826 = vmatpush1.bf16.msra.mxu1 %v6693_v7 }
 0x77c   :  { %4827 = vmatprep.subr.bf16.mxu1 %v6698_v53 }
 0x77f   :  { %4828 = vmatpush1.bf16.msra.mxu1 %v6696_v55 }
 0x780   :  { %4829 = vmatprep.subr.bf16.mxu1 %v6701_v6 }
 0x783   :  { %4830 = vmatpush1.bf16.msra.mxu1 %v6699_v37 }
 0x784   :  { %4831 = vmatprep.subr.bf16.mxu1 %v6704_v35 }
 0x787   :  { %4832 = vmatpush1.bf16.msra.mxu1 %v6702_v5 }
 0x788   :  { %4833 = vmatprep.subr.bf16.mxu1 %v6707_v60 }
 0x78b   :  { %4834 = vmatpush1.bf16.msra.mxu1 %v6705_v26 }
 0x78c   :  { %4835 = vmatprep.subr.bf16.mxu1 %v6710_v39 }
 0x78f   :  { %4836 = vmatpush1.bf16.msra.mxu1 %v6708_v58 }
 0x790   :  { %4837 = vmatprep.subr.bf16.mxu1 %v6713_v10 }
 0x793   :  { %4838 = vmatpush1.bf16.msra.mxu1 %v6711_v16 }
 0x796   :  { %4840 = vmatmul.mubr.bf16.vlgmr.msra.gmra.mrb[40].mxu1 %v2271_v38 }
 0x869   :  { %v4841_v51 = vpop.f32.mrb[40].mxu1 }
 0x86a   :  { %v6110_v4 = vadd.f32 %v4841_v51, %v2630_v24  ;;  %v4843_v17 = vpop.f32.mrb[41].mxu1 }
 0x86b   :  { %v6111_v48 = vadd.f32 %v4843_v17, %v2634_v0  ;;  %v4845_v13 = vpop.f32.mrb[42].mxu1 }
 0x86c   :  { %v4848_v63 = vmax.f32 %v6110_v4, 0.0  ;;  %v4846_v44 = vpop.f32.mrb[43].mxu1 }
 0x86d   :  { %v4849_v9 = vmax.f32 %v6111_v48, 0.0 }
 0x86e   :  { %v4850_v19 = vpack.c.bf16 %v4848_v63, %v4848_v63 }
 0x86f   :  { %v4851_v42 = vpack.c.bf16 %v4849_v9, %v4849_v9 }
 0x871   :  { %5019 = vmatprep.mubr.bf16.mxu0 %v4851_v42 }
 0x872   :  { %5020 = vmatmul.mubr.bf16.vlgmr.msra.gmra.mrb[100].mxu0 %v4850_v19 }
 0x945   :  { %v5664_v1 = vpop.f32.mrb[100].mxu0 }
 0x946   :  { %v5665_v25 = vpop.f32.mrb[101].mxu0 }
 0x947   :  { %v5666_v20 = vadd.f32 %v5665_v25, %v5664_v1  ;;  %v5667_v34 = vpop.f32.mrb[102].mxu0 }
 0x948   :  { %v5668_v59 = vpop.f32.mrb[103].mxu0 }
 0x949   :  { %v5022_v50 = vadd.f32 %v5666_v20, %v5511_v46 }
 0x94b   :  { %5027 = vst [vmem:[%s8154_s11] sm:$0xff] %v5022_v50 }
 0x94c   :  { %5032 = vsyncpa [#allocation6], 1 }
 0x94d   :  { %5033 = vsyncpa [#allocation8], 1 }
 0x94e   :  { %5034 = vsyncpa [#allocation11], 1 }
 0x94f   :  { %5035 = vsyncpa [#allocation14], 1 }
 0x950   :  { %5036 = vsyncpa [#allocation17], 1 }

</bundles_post_ra>
